<compile_context>
chip_gen: v7x
topology: tpu7x:2x2x1
jax: 0.10.0
libtpu: 0.0.40
codegen_flags: <defaults>
</compile_context>

<pallas_src>
import functools
import math

import jax
import jax.numpy as jnp
from jax import lax
from jax.experimental import pallas as pl
from jax.experimental.pallas import tpu as pltpu

# ---- hyper-parameters (small shapes consistent with the module) ----
IMAGE_DIM = 16
COLOR_CHANNELS = 3
PATCH_SIZE = 4
EMBEDDING_DIM = 32
NUM_HEADS = 4          # must divide EMBEDDING_DIM
MLP_SIZE = 64
ATTENTION_BLOCKS = 2
NUM_CLASSES = 3
LN_EPS = 1e-5

assert EMBEDDING_DIM % NUM_HEADS == 0


# --------------------------------------------------------------------------
# The single fused ViT kernel: one grid step == one image.
# --------------------------------------------------------------------------
def _vit_kernel(xp_ref, w_patch_ref, b_patch_ref, cls_ref, pos_ref,
                ln1_g_ref, ln1_b_ref, w_qkv_ref, b_qkv_ref, w_out_ref, b_out_ref,
                ln2_g_ref, ln2_b_ref, w_ff1_ref, b_ff1_ref, w_ff2_ref, b_ff2_ref,
                cls_ln_g_ref, cls_ln_b_ref, w_c1_ref, b_c1_ref, w_c2_ref, b_c2_ref,
                out_ref, *, num_layers, num_heads):
    f32 = jnp.float32
    S, E = pos_ref.shape
    Dh = E // num_heads
    scale = 1.0 / math.sqrt(Dh)

    def ln(x, g, b):
        mu = jnp.mean(x, axis=-1, keepdims=True)
        xc = x - mu
        var = jnp.mean(xc * xc, axis=-1, keepdims=True)
        return xc * lax.rsqrt(var + LN_EPS) * g + b

    def erf(x):
        # Abramowitz & Stegun 7.1.26 (|error| < 1.5e-7): only exp + elementwise.
        p = 0.3275911
        a1, a2, a3, a4, a5 = (0.254829592, -0.284496736, 1.421413741,
                              -1.453152027, 1.061405429)
        ax = jnp.abs(x)
        t = 1.0 / (1.0 + p * ax)
        poly = ((((a5 * t + a4) * t + a3) * t + a2) * t + a1) * t
        y = 1.0 - poly * jnp.exp(-ax * ax)
        return jnp.where(x >= 0.0, y, -y)

    def gelu(x):  # exact-erf GELU (matches PyTorch activation='gelu')
        return 0.5 * x * (1.0 + erf(x * (1.0 / math.sqrt(2.0))))

    # ---- patch embedding + cls token + positional embedding ----
    # xp row 0 is zeros (the cls slot); rows 1..S-1 are the flattened patches.
    xp = xp_ref[0].astype(f32)                                            # (S, K)
    b_patch = b_patch_ref[...].astype(f32)                                # (1, E)
    pe = jnp.dot(xp, w_patch_ref[...].astype(f32),
                 preferred_element_type=f32) + b_patch                    # (S, E)
    row = lax.broadcasted_iota(jnp.int32, (S, E), 0)
    cls_fix = jnp.broadcast_to(cls_ref[...].astype(f32) - b_patch, (S, E))
    tokens = pe + pos_ref[...].astype(f32) + jnp.where(row == 0, cls_fix, 0.0)

    # ---- transformer encoder layers (norm_first, dropout = 0) ----
    for l in range(num_layers):
        # --- self-attention block: tokens += MHA(LN1(tokens)) ---
        h = ln(tokens, ln1_g_ref[l].astype(f32), ln1_b_ref[l].astype(f32))
        qkv = jnp.dot(h, w_qkv_ref[l].astype(f32),
                      preferred_element_type=f32) + b_qkv_ref[l].astype(f32)  # (S, 3E)
        w_out = w_out_ref[l].astype(f32)                                       # (E, E)

        attn = jnp.zeros((S, E), f32)
        for hh in range(num_heads):
            lo = hh * Dh
            hi = (hh + 1) * Dh
            q_h = qkv[:, lo:hi]                        # (S, Dh)
            k_h = qkv[:, E + lo:E + hi]                # (S, Dh)
            v_h = qkv[:, 2 * E + lo:2 * E + hi]        # (S, Dh)
            # q @ k^T without a host/kernel transpose: contract over Dh.
            s = lax.dot_general(q_h, k_h, (((1,), (1,)), ((), ())),
                                preferred_element_type=f32) * scale       # (S, S)
            m = jnp.max(s, axis=-1, keepdims=True)
            p = jnp.exp(s - m)
            p = p / jnp.sum(p, axis=-1, keepdims=True)
            o_h = jnp.dot(p, v_h, preferred_element_type=f32)             # (S, Dh)
            # Fold head-merge into the output projection (no concat needed).
            attn = attn + jnp.dot(o_h, w_out[lo:hi, :],
                                  preferred_element_type=f32)             # (S, E)
        tokens = tokens + attn + b_out_ref[l].astype(f32)

        # --- feed-forward block: tokens += FF(LN2(tokens)) ---
        h2 = ln(tokens, ln2_g_ref[l].astype(f32), ln2_b_ref[l].astype(f32))
        f1 = gelu(jnp.dot(h2, w_ff1_ref[l].astype(f32),
                          preferred_element_type=f32) + b_ff1_ref[l].astype(f32))
        f2 = jnp.dot(f1, w_ff2_ref[l].astype(f32),
                     preferred_element_type=f32) + b_ff2_ref[l].astype(f32)
        tokens = tokens + f2

    # ---- classifier on the cls token ----
    c = ln(tokens[0:1, :], cls_ln_g_ref[...].astype(f32),
           cls_ln_b_ref[...].astype(f32))
    hcls = gelu(jnp.dot(c, w_c1_ref[...].astype(f32),
                        preferred_element_type=f32) + b_c1_ref[...].astype(f32))
    logits = jnp.dot(hcls, w_c2_ref[...].astype(f32),
                     preferred_element_type=f32) + b_c2_ref[...].astype(f32)   # (1, NC)
    out_ref[0] = logits.astype(out_ref.dtype)


def _resident_spec(arr):
    """Full-array block, constant index_map -> weight stays resident in VMEM."""
    nd = arr.ndim
    return pl.BlockSpec(arr.shape, lambda b, _nd=nd: (0,) * _nd)


# --------------------------------------------------------------------------
# Wrapper: one layout pass for patch extraction + ONE pallas_call.
# --------------------------------------------------------------------------
def vit_forward(packed, x):
    B, C, H, W = x.shape
    P = PATCH_SIZE
    E = EMBEDDING_DIM
    MLP = MLP_SIZE
    nh = NUM_HEADS
    NC = NUM_CLASSES
    Hp, Wp = H // P, W // P
    N = Hp * Wp
    S = N + 1
    K = C * P * P
    L = packed["w_qkv"].shape[0]

    # Patch extraction: conv(k=stride=P) == per-patch linear projection.
    # TODO(synk): fold this NCHW layout pass into the kernel (Element blocks / NHWC).
    xp = x.reshape(B, C, Hp, P, Wp, P).transpose(0, 2, 4, 1, 3, 5).reshape(B, N, K)
    # Prepend a zero row per image: it becomes the cls-token slot inside the kernel.
    xp = jnp.concatenate([jnp.zeros((B, 1, K), xp.dtype), xp], axis=1)     # (B, S, K)

    names = ["w_patch", "b_patch", "cls", "pos",
             "ln1_g", "ln1_b", "w_qkv", "b_qkv", "w_out", "b_out",
             "ln2_g", "ln2_b", "w_ff1", "b_ff1", "w_ff2", "b_ff2",
             "cls_ln_g", "cls_ln_b", "w_c1", "b_c1", "w_c2", "b_c2"]
    args = [xp] + [packed[n] for n in names]
    in_specs = [pl.BlockSpec((1, S, K), lambda b: (b, 0, 0))]
    in_specs += [_resident_spec(packed[n]) for n in names]

    kernel = functools.partial(_vit_kernel, num_layers=L, num_heads=nh)

    itemsize = 4
    flops = 2 * B * (S * K * E
                     + L * (S * E * 3 * E + 2 * S * S * E + S * E * E + 2 * S * E * MLP)
                     + E * E + E * NC)
    transcendentals = B * (L * (nh * S * S + S * MLP) + E)
    bytes_accessed = itemsize * (sum(int(a.size) for a in args) + B * NC)

    out = pl.pallas_call(
        kernel,
        out_shape=jax.ShapeDtypeStruct((B, 1, NC), x.dtype),
        grid_spec=pltpu.PrefetchScalarGridSpec(
            num_scalar_prefetch=0,
            grid=(B,),                               # one image per step; 2 TCs on v7x
            in_specs=in_specs,
            out_specs=pl.BlockSpec((1, 1, NC), lambda b: (b, 0, 0)),
        ),
        compiler_params=pltpu.CompilerParams(
            dimension_semantics=("parallel",),
        ),
        cost_estimate=pl.CostEstimate(
            flops=flops, transcendentals=transcendentals,
            bytes_accessed=bytes_accessed),
    )(*args)
    return out.reshape(B, NC)


# --------------------------------------------------------------------------
# Parameter packing: torch-style params -> kernel-ready (stacked, 2D biases).
# Done ONCE outside the jitted forward.
# --------------------------------------------------------------------------
def pack_params(params):
    E = EMBEDDING_DIM
    K = COLOR_CHANNELS * PATCH_SIZE * PATCH_SIZE
    MLP = MLP_SIZE
    NC = NUM_CLASSES

    def stk(name, shape):
        return jnp.stack([lyr[name].reshape(shape) for lyr in params["layers"]])

    return dict(
        w_patch=params["patch_w"].reshape(E, K).T,                    # (K, E)
        b_patch=params["patch_b"].reshape(1, E),
        cls=params["cls"].reshape(1, E),
        pos=params["pos"].reshape(-1, E),                             # (S, E)
        ln1_g=stk("ln1_g", (1, E)), ln1_b=stk("ln1_b", (1, E)),
        w_qkv=stk("w_qkv", (E, 3 * E)), b_qkv=stk("b_qkv", (1, 3 * E)),
        w_out=stk("w_out", (E, E)), b_out=stk("b_out", (1, E)),
        ln2_g=stk("ln2_g", (1, E)), ln2_b=stk("ln2_b", (1, E)),
        w_ff1=stk("w_ff1", (E, MLP)), b_ff1=stk("b_ff1", (1, MLP)),
        w_ff2=stk("w_ff2", (MLP, E)), b_ff2=stk("b_ff2", (1, E)),
        cls_ln_g=params["cls_ln_g"].reshape(1, E),
        cls_ln_b=params["cls_ln_b"].reshape(1, E),
        w_c1=params["w_c1"], b_c1=params["b_c1"].reshape(1, E),
        w_c2=params["w_c2"], b_c2=params["b_c2"].reshape(1, NC),
    )


# --------------------------------------------------------------------------
# Pure-JAX reference (mirrors the PyTorch module, for correctness checking)
# --------------------------------------------------------------------------
def _ln_ref(x, g, b):
    mu = jnp.mean(x, axis=-1, keepdims=True)
    var = jnp.mean((x - mu) ** 2, axis=-1, keepdims=True)
    return (x - mu) * lax.rsqrt(var + LN_EPS) * g + b


def _reference_forward(params, x):
    P = PATCH_SIZE
    nh = NUM_HEADS
    y = lax.conv_general_dilated(
        x, params["patch_w"], (P, P), "VALID",
        dimension_numbers=("NCHW", "OIHW", "NCHW"),
    ) + params["patch_b"].reshape(1, -1, 1, 1)
    B, E, Hp, Wp = y.shape
    tokens = y.reshape(B, E, Hp * Wp).transpose(0, 2, 1)
    tokens = jnp.concatenate(
        [jnp.broadcast_to(params["cls"], (B, 1, E)), tokens], axis=1) + params["pos"]
    S = tokens.shape[1]
    Dh = E // nh
    for lyr in params["layers"]:
        h = _ln_ref(tokens, lyr["ln1_g"], lyr["ln1_b"])
        qkv = h @ lyr["w_qkv"] + lyr["b_qkv"]
        q, k, v = jnp.split(qkv, 3, axis=-1)

        def heads(t):
            return t.reshape(B, S, nh, Dh).transpose(0, 2, 1, 3)

        q, k, v = heads(q), heads(k), heads(v)
        s = jnp.einsum("bhqd,bhkd->bhqk", q, k) * (1.0 / math.sqrt(Dh))
        p = jax.nn.softmax(s, axis=-1)
        a = jnp.einsum("bhqk,bhkd->bhqd", p, v)
        a = a.transpose(0, 2, 1, 3).reshape(B, S, E)
        tokens = tokens + (a @ lyr["w_out"] + lyr["b_out"])
        h2 = _ln_ref(tokens, lyr["ln2_g"], lyr["ln2_b"])
        f = jax.nn.gelu(h2 @ lyr["w_ff1"] + lyr["b_ff1"], approximate=False)
        tokens = tokens + (f @ lyr["w_ff2"] + lyr["b_ff2"])
    clt = _ln_ref(tokens[:, 0], params["cls_ln_g"], params["cls_ln_b"])
    h = jax.nn.gelu(clt @ params["w_c1"] + params["b_c1"], approximate=False)
    return h @ params["w_c2"] + params["b_c2"]


# --------------------------------------------------------------------------
# Parameter init
# --------------------------------------------------------------------------
def init_params(key):
    E, C, P = EMBEDDING_DIM, COLOR_CHANNELS, PATCH_SIZE
    Npatch = (IMAGE_DIM // PATCH_SIZE) ** 2
    keys = iter(jax.random.split(key, 64))

    def nrm(shape, s=0.02):
        return jax.random.normal(next(keys), shape, jnp.float32) * s

    layers = []
    for _ in range(ATTENTION_BLOCKS):
        layers.append(dict(
            ln1_g=jnp.ones((E,), jnp.float32), ln1_b=jnp.zeros((E,), jnp.float32),
            w_qkv=nrm((E, 3 * E)), b_qkv=nrm((3 * E,)),
            w_out=nrm((E, E)), b_out=nrm((E,)),
            ln2_g=jnp.ones((E,), jnp.float32), ln2_b=jnp.zeros((E,), jnp.float32),
            w_ff1=nrm((E, MLP_SIZE)), b_ff1=nrm((MLP_SIZE,)),
            w_ff2=nrm((MLP_SIZE, E)), b_ff2=nrm((E,)),
        ))
    return dict(
        cls=nrm((1, 1, E), 1.0),
        pos=nrm((1, Npatch + 1, E), 1.0),
        patch_w=nrm((E, C, P, P)),
        patch_b=nrm((E,)),
        layers=layers,
        cls_ln_g=jnp.ones((E,), jnp.float32), cls_ln_b=jnp.zeros((E,), jnp.float32),
        w_c1=nrm((E, E)), b_c1=nrm((E,)),
        w_c2=nrm((E, NUM_CLASSES)), b_c2=nrm((NUM_CLASSES,)),
    )


if __name__ == "__main__":
    key = jax.random.PRNGKey(0)
    kp, kx = jax.random.split(key)
    params = init_params(kp)
    packed = pack_params(params)   # once, outside the jitted forward

    B = 2
    x = jax.random.normal(kx, (B, COLOR_CHANNELS, IMAGE_DIM, IMAGE_DIM), jnp.float32)

    fwd = jax.jit(vit_forward)
    out = jax.block_until_ready(fwd(packed, x))

    ref = jax.block_until_ready(_reference_forward(params, x))

    assert out.shape == (B, NUM_CLASSES), out.shape
    assert bool(jnp.all(jnp.isfinite(out)))
    assert jnp.allclose(out, ref, atol=2e-2, rtol=2e-2), (out, ref)

    print("KERNEL_OK")
</pallas_src>

<mosaic_0001>
module attributes {stable_mosaic.version = 11 : i64} {
  func.func @_vit_kernel(%arg0: i32, %arg1: memref<1x17x48xf32, #tpu.memory_space<vmem>>, %arg2: memref<48x32xf32, #tpu.memory_space<vmem>>, %arg3: memref<1x32xf32, #tpu.memory_space<vmem>>, %arg4: memref<1x32xf32, #tpu.memory_space<vmem>>, %arg5: memref<17x32xf32, #tpu.memory_space<vmem>>, %arg6: memref<2x1x32xf32, #tpu.memory_space<vmem>>, %arg7: memref<2x1x32xf32, #tpu.memory_space<vmem>>, %arg8: memref<2x32x96xf32, #tpu.memory_space<vmem>>, %arg9: memref<2x1x96xf32, #tpu.memory_space<vmem>>, %arg10: memref<2x32x32xf32, #tpu.memory_space<vmem>>, %arg11: memref<2x1x32xf32, #tpu.memory_space<vmem>>, %arg12: memref<2x1x32xf32, #tpu.memory_space<vmem>>, %arg13: memref<2x1x32xf32, #tpu.memory_space<vmem>>, %arg14: memref<2x32x64xf32, #tpu.memory_space<vmem>>, %arg15: memref<2x1x64xf32, #tpu.memory_space<vmem>>, %arg16: memref<2x64x32xf32, #tpu.memory_space<vmem>>, %arg17: memref<2x1x32xf32, #tpu.memory_space<vmem>>, %arg18: memref<1x32xf32, #tpu.memory_space<vmem>>, %arg19: memref<1x32xf32, #tpu.memory_space<vmem>>, %arg20: memref<32x32xf32, #tpu.memory_space<vmem>>, %arg21: memref<1x32xf32, #tpu.memory_space<vmem>>, %arg22: memref<32x3xf32, #tpu.memory_space<vmem>>, %arg23: memref<1x3xf32, #tpu.memory_space<vmem>>, %arg24: memref<1x1x3xf32, #tpu.memory_space<vmem>>) attributes {dimension_semantics = [#tpu.dimension_semantics<parallel>], iteration_bounds = array<i64: 2>, scalar_prefetch = 0 : i64, scratch_operands = 0 : i64, tpu.core_type = #tpu.core_type<tc>, window_params = [{transform_indices = @transform_0, window_bounds = array<i64: 1, 17, 48>}, {pipeline_mode = #tpu.pipeline_mode<synchronous>, transform_indices = @transform_1, window_bounds = array<i64: 48, 32>}, {pipeline_mode = #tpu.pipeline_mode<synchronous>, transform_indices = @transform_2, window_bounds = array<i64: 1, 32>}, {pipeline_mode = #tpu.pipeline_mode<synchronous>, transform_indices = @transform_3, window_bounds = array<i64: 1, 32>}, {pipeline_mode = #tpu.pipeline_mode<synchronous>, transform_indices = @transform_4, window_bounds = array<i64: 17, 32>}, {pipeline_mode = #tpu.pipeline_mode<synchronous>, transform_indices = @transform_5, window_bounds = array<i64: 2, 1, 32>}, {pipeline_mode = #tpu.pipeline_mode<synchronous>, transform_indices = @transform_6, window_bounds = array<i64: 2, 1, 32>}, {pipeline_mode = #tpu.pipeline_mode<synchronous>, transform_indices = @transform_7, window_bounds = array<i64: 2, 32, 96>}, {pipeline_mode = #tpu.pipeline_mode<synchronous>, transform_indices = @transform_8, window_bounds = array<i64: 2, 1, 96>}, {pipeline_mode = #tpu.pipeline_mode<synchronous>, transform_indices = @transform_9, window_bounds = array<i64: 2, 32, 32>}, {pipeline_mode = #tpu.pipeline_mode<synchronous>, transform_indices = @transform_10, window_bounds = array<i64: 2, 1, 32>}, {pipeline_mode = #tpu.pipeline_mode<synchronous>, transform_indices = @transform_11, window_bounds = array<i64: 2, 1, 32>}, {pipeline_mode = #tpu.pipeline_mode<synchronous>, transform_indices = @transform_12, window_bounds = array<i64: 2, 1, 32>}, {pipeline_mode = #tpu.pipeline_mode<synchronous>, transform_indices = @transform_13, window_bounds = array<i64: 2, 32, 64>}, {pipeline_mode = #tpu.pipeline_mode<synchronous>, transform_indices = @transform_14, window_bounds = array<i64: 2, 1, 64>}, {pipeline_mode = #tpu.pipeline_mode<synchronous>, transform_indices = @transform_15, window_bounds = array<i64: 2, 64, 32>}, {pipeline_mode = #tpu.pipeline_mode<synchronous>, transform_indices = @transform_16, window_bounds = array<i64: 2, 1, 32>}, {pipeline_mode = #tpu.pipeline_mode<synchronous>, transform_indices = @transform_17, window_bounds = array<i64: 1, 32>}, {pipeline_mode = #tpu.pipeline_mode<synchronous>, transform_indices = @transform_18, window_bounds = array<i64: 1, 32>}, {pipeline_mode = #tpu.pipeline_mode<synchronous>, transform_indices = @transform_19, window_bounds = array<i64: 32, 32>}, {pipeline_mode = #tpu.pipeline_mode<synchronous>, transform_indices = @transform_20, window_bounds = array<i64: 1, 32>}, {pipeline_mode = #tpu.pipeline_mode<synchronous>, transform_indices = @transform_21, window_bounds = array<i64: 32, 3>}, {pipeline_mode = #tpu.pipeline_mode<synchronous>, transform_indices = @transform_22, window_bounds = array<i64: 1, 3>}, {transform_indices = @transform_23, window_bounds = array<i64: 1, 1, 3>}]} {
    %c0 = arith.constant 0 : index
    %c0_0 = arith.constant 0 : index
    %c0_1 = arith.constant 0 : index
    %0 = vector.load %arg1[%c0, %c0_0, %c0_1] : memref<1x17x48xf32, #tpu.memory_space<vmem>>, vector<1x17x48xf32>
    %1 = vector.shape_cast %0 : vector<1x17x48xf32> to vector<17x48xf32>
    %c0_2 = arith.constant 0 : index
    %c0_3 = arith.constant 0 : index
    %2 = vector.load %arg3[%c0_2, %c0_3] : memref<1x32xf32, #tpu.memory_space<vmem>>, vector<1x32xf32>
    %c0_4 = arith.constant 0 : index
    %c0_5 = arith.constant 0 : index
    %3 = vector.load %arg2[%c0_4, %c0_5] : memref<48x32xf32, #tpu.memory_space<vmem>>, vector<48x32xf32>
    %cst = arith.constant dense<0.000000e+00> : vector<17x32xf32>
    %4 = tpu.matmul %1, %3, %cst {dimension_numbers = #tpu.dot_dimension_numbers<[1], [0], [0], [1], [0, 0, 1, 1], [], []>} : vector<17x48xf32>, vector<48x32xf32>, vector<17x32xf32> -> vector<17x32xf32>
    %5 = vector.broadcast %2 : vector<1x32xf32> to vector<17x32xf32>
    %6 = arith.addf %4, %5 : vector<17x32xf32>
    %7 = tpu.iota {dimensions = array<i32: 0>} : vector<17x32xi32>
    %c0_6 = arith.constant 0 : index
    %c0_7 = arith.constant 0 : index
    %8 = vector.load %arg4[%c0_6, %c0_7] : memref<1x32xf32, #tpu.memory_space<vmem>>, vector<1x32xf32>
    %9 = arith.subf %8, %2 : vector<1x32xf32>
    %10 = vector.shape_cast %9 : vector<1x32xf32> to vector<1x32xf32>
    %11 = vector.broadcast %10 : vector<1x32xf32> to vector<17x32xf32>
    %c0_8 = arith.constant 0 : index
    %c0_9 = arith.constant 0 : index
    %12 = vector.load %arg5[%c0_8, %c0_9] : memref<17x32xf32, #tpu.memory_space<vmem>>, vector<17x32xf32>
    %13 = arith.addf %6, %12 : vector<17x32xf32>
    %c0_i32 = arith.constant 0 : i32
    %14 = vector.broadcast %c0_i32 : i32 to vector<17x32xi32>
    %15 = arith.cmpi eq, %7, %14 : vector<17x32xi32>
    %cst_10 = arith.constant 0.000000e+00 : f32
    %16 = vector.broadcast %cst_10 : f32 to vector<17x32xf32>
    %17 = arith.select %15, %11, %16 : vector<17x32xi1>, vector<17x32xf32>
    %18 = arith.addf %13, %17 : vector<17x32xf32>
    %c0_11 = arith.constant 0 : index
    %c0_12 = arith.constant 0 : index
    %c0_13 = arith.constant 0 : index
    %19 = vector.load %arg6[%c0_11, %c0_12, %c0_13] : memref<2x1x32xf32, #tpu.memory_space<vmem>>, vector<1x1x32xf32>
    %20 = vector.shape_cast %19 : vector<1x1x32xf32> to vector<1x32xf32>
    %c0_14 = arith.constant 0 : index
    %c0_15 = arith.constant 0 : index
    %c0_16 = arith.constant 0 : index
    %21 = vector.load %arg7[%c0_14, %c0_15, %c0_16] : memref<2x1x32xf32, #tpu.memory_space<vmem>>, vector<1x1x32xf32>
    %22 = vector.shape_cast %21 : vector<1x1x32xf32> to vector<1x32xf32>
    %cst_17 = arith.constant dense<0.000000e+00> : vector<17xf32>
    %23 = vector.multi_reduction <add>, %18, %cst_17 [1] : vector<17x32xf32> to vector<17xf32>
    %24 = vector.shape_cast %23 : vector<17xf32> to vector<17x1xf32>
    %cst_18 = arith.constant 3.200000e+01 : f32
    %25 = vector.broadcast %cst_18 : f32 to vector<17x1xf32>
    %26 = arith.divf %24, %25 : vector<17x1xf32>
    %27 = vector.broadcast %26 : vector<17x1xf32> to vector<17x32xf32>
    %28 = arith.subf %18, %27 : vector<17x32xf32>
    %29 = arith.mulf %28, %28 : vector<17x32xf32>
    %cst_19 = arith.constant dense<0.000000e+00> : vector<17xf32>
    %30 = vector.multi_reduction <add>, %29, %cst_19 [1] : vector<17x32xf32> to vector<17xf32>
    %31 = vector.shape_cast %30 : vector<17xf32> to vector<17x1xf32>
    %cst_20 = arith.constant 3.200000e+01 : f32
    %32 = vector.broadcast %cst_20 : f32 to vector<17x1xf32>
    %33 = arith.divf %31, %32 : vector<17x1xf32>
    %cst_21 = arith.constant 9.99999974E-6 : f32
    %34 = vector.broadcast %cst_21 : f32 to vector<17x1xf32>
    %35 = arith.addf %33, %34 : vector<17x1xf32>
    %36 = math.rsqrt %35 : vector<17x1xf32>
    %37 = vector.broadcast %36 : vector<17x1xf32> to vector<17x32xf32>
    %38 = arith.mulf %28, %37 : vector<17x32xf32>
    %39 = vector.broadcast %20 : vector<1x32xf32> to vector<17x32xf32>
    %40 = arith.mulf %38, %39 : vector<17x32xf32>
    %41 = vector.broadcast %22 : vector<1x32xf32> to vector<17x32xf32>
    %42 = arith.addf %40, %41 : vector<17x32xf32>
    %c0_22 = arith.constant 0 : index
    %c0_23 = arith.constant 0 : index
    %c0_24 = arith.constant 0 : index
    %43 = vector.load %arg8[%c0_22, %c0_23, %c0_24] : memref<2x32x96xf32, #tpu.memory_space<vmem>>, vector<1x32x96xf32>
    %44 = vector.shape_cast %43 : vector<1x32x96xf32> to vector<32x96xf32>
    %cst_25 = arith.constant dense<0.000000e+00> : vector<17x96xf32>
    %45 = tpu.matmul %42, %44, %cst_25 {dimension_numbers = #tpu.dot_dimension_numbers<[1], [0], [0], [1], [0, 0, 1, 1], [], []>} : vector<17x32xf32>, vector<32x96xf32>, vector<17x96xf32> -> vector<17x96xf32>
    %c0_26 = arith.constant 0 : index
    %c0_27 = arith.constant 0 : index
    %c0_28 = arith.constant 0 : index
    %46 = vector.load %arg9[%c0_26, %c0_27, %c0_28] : memref<2x1x96xf32, #tpu.memory_space<vmem>>, vector<1x1x96xf32>
    %47 = vector.shape_cast %46 : vector<1x1x96xf32> to vector<1x96xf32>
    %48 = vector.broadcast %47 : vector<1x96xf32> to vector<17x96xf32>
    %49 = arith.addf %45, %48 : vector<17x96xf32>
    %c0_29 = arith.constant 0 : index
    %c0_30 = arith.constant 0 : index
    %c0_31 = arith.constant 0 : index
    %50 = vector.load %arg10[%c0_29, %c0_30, %c0_31] : memref<2x32x32xf32, #tpu.memory_space<vmem>>, vector<1x32x32xf32>
    %51 = vector.shape_cast %50 : vector<1x32x32xf32> to vector<32x32xf32>
    %cst_32 = arith.constant 0.000000e+00 : f32
    %52 = vector.broadcast %cst_32 : f32 to vector<17x32xf32>
    %53 = vector.extract_strided_slice %49 {offsets = [0, 0], sizes = [17, 8], strides = [1, 1]} : vector<17x96xf32> to vector<17x8xf32>
    %54 = vector.extract_strided_slice %49 {offsets = [0, 32], sizes = [17, 8], strides = [1, 1]} : vector<17x96xf32> to vector<17x8xf32>
    %55 = vector.extract_strided_slice %49 {offsets = [0, 64], sizes = [17, 8], strides = [1, 1]} : vector<17x96xf32> to vector<17x8xf32>
    %cst_33 = arith.constant dense<0.000000e+00> : vector<17x17xf32>
    %56 = tpu.matmul %53, %54, %cst_33 {dimension_numbers = #tpu.dot_dimension_numbers<[1], [1], [0], [0], [0, 0, 1, 0], [], []>} : vector<17x8xf32>, vector<17x8xf32>, vector<17x17xf32> -> vector<17x17xf32>
    %cst_34 = arith.constant 0.353553385 : f32
    %57 = vector.broadcast %cst_34 : f32 to vector<17x17xf32>
    %58 = arith.mulf %56, %57 : vector<17x17xf32>
    %cst_35 = arith.constant dense<0xFF800000> : vector<17xf32>
    %59 = vector.multi_reduction <maximumf>, %58, %cst_35 [1] : vector<17x17xf32> to vector<17xf32>
    %60 = vector.shape_cast %59 : vector<17xf32> to vector<17x1xf32>
    %61 = vector.broadcast %60 : vector<17x1xf32> to vector<17x17xf32>
    %62 = arith.subf %58, %61 : vector<17x17xf32>
    %63 = math.exp %62 : vector<17x17xf32>
    %cst_36 = arith.constant dense<0.000000e+00> : vector<17xf32>
    %64 = vector.multi_reduction <add>, %63, %cst_36 [1] : vector<17x17xf32> to vector<17xf32>
    %65 = vector.shape_cast %64 : vector<17xf32> to vector<17x1xf32>
    %66 = vector.broadcast %65 : vector<17x1xf32> to vector<17x17xf32>
    %67 = arith.divf %63, %66 : vector<17x17xf32>
    %cst_37 = arith.constant dense<0.000000e+00> : vector<17x8xf32>
    %68 = tpu.matmul %67, %55, %cst_37 {dimension_numbers = #tpu.dot_dimension_numbers<[1], [0], [0], [1], [0, 0, 1, 1], [], []>} : vector<17x17xf32>, vector<17x8xf32>, vector<17x8xf32> -> vector<17x8xf32>
    %69 = vector.extract_strided_slice %51 {offsets = [0, 0], sizes = [8, 32], strides = [1, 1]} : vector<32x32xf32> to vector<8x32xf32>
    %cst_38 = arith.constant dense<0.000000e+00> : vector<17x32xf32>
    %70 = tpu.matmul %68, %69, %cst_38 {dimension_numbers = #tpu.dot_dimension_numbers<[1], [0], [0], [1], [0, 0, 1, 1], [], []>} : vector<17x8xf32>, vector<8x32xf32>, vector<17x32xf32> -> vector<17x32xf32>
    %71 = arith.addf %52, %70 : vector<17x32xf32>
    %72 = vector.extract_strided_slice %49 {offsets = [0, 8], sizes = [17, 8], strides = [1, 1]} : vector<17x96xf32> to vector<17x8xf32>
    %73 = vector.extract_strided_slice %49 {offsets = [0, 40], sizes = [17, 8], strides = [1, 1]} : vector<17x96xf32> to vector<17x8xf32>
    %74 = vector.extract_strided_slice %49 {offsets = [0, 72], sizes = [17, 8], strides = [1, 1]} : vector<17x96xf32> to vector<17x8xf32>
    %cst_39 = arith.constant dense<0.000000e+00> : vector<17x17xf32>
    %75 = tpu.matmul %72, %73, %cst_39 {dimension_numbers = #tpu.dot_dimension_numbers<[1], [1], [0], [0], [0, 0, 1, 0], [], []>} : vector<17x8xf32>, vector<17x8xf32>, vector<17x17xf32> -> vector<17x17xf32>
    %cst_40 = arith.constant 0.353553385 : f32
    %76 = vector.broadcast %cst_40 : f32 to vector<17x17xf32>
    %77 = arith.mulf %75, %76 : vector<17x17xf32>
    %cst_41 = arith.constant dense<0xFF800000> : vector<17xf32>
    %78 = vector.multi_reduction <maximumf>, %77, %cst_41 [1] : vector<17x17xf32> to vector<17xf32>
    %79 = vector.shape_cast %78 : vector<17xf32> to vector<17x1xf32>
    %80 = vector.broadcast %79 : vector<17x1xf32> to vector<17x17xf32>
    %81 = arith.subf %77, %80 : vector<17x17xf32>
    %82 = math.exp %81 : vector<17x17xf32>
    %cst_42 = arith.constant dense<0.000000e+00> : vector<17xf32>
    %83 = vector.multi_reduction <add>, %82, %cst_42 [1] : vector<17x17xf32> to vector<17xf32>
    %84 = vector.shape_cast %83 : vector<17xf32> to vector<17x1xf32>
    %85 = vector.broadcast %84 : vector<17x1xf32> to vector<17x17xf32>
    %86 = arith.divf %82, %85 : vector<17x17xf32>
    %cst_43 = arith.constant dense<0.000000e+00> : vector<17x8xf32>
    %87 = tpu.matmul %86, %74, %cst_43 {dimension_numbers = #tpu.dot_dimension_numbers<[1], [0], [0], [1], [0, 0, 1, 1], [], []>} : vector<17x17xf32>, vector<17x8xf32>, vector<17x8xf32> -> vector<17x8xf32>
    %88 = vector.extract_strided_slice %51 {offsets = [8, 0], sizes = [8, 32], strides = [1, 1]} : vector<32x32xf32> to vector<8x32xf32>
    %cst_44 = arith.constant dense<0.000000e+00> : vector<17x32xf32>
    %89 = tpu.matmul %87, %88, %cst_44 {dimension_numbers = #tpu.dot_dimension_numbers<[1], [0], [0], [1], [0, 0, 1, 1], [], []>} : vector<17x8xf32>, vector<8x32xf32>, vector<17x32xf32> -> vector<17x32xf32>
    %90 = arith.addf %71, %89 : vector<17x32xf32>
    %91 = vector.extract_strided_slice %49 {offsets = [0, 16], sizes = [17, 8], strides = [1, 1]} : vector<17x96xf32> to vector<17x8xf32>
    %92 = vector.extract_strided_slice %49 {offsets = [0, 48], sizes = [17, 8], strides = [1, 1]} : vector<17x96xf32> to vector<17x8xf32>
    %93 = vector.extract_strided_slice %49 {offsets = [0, 80], sizes = [17, 8], strides = [1, 1]} : vector<17x96xf32> to vector<17x8xf32>
    %cst_45 = arith.constant dense<0.000000e+00> : vector<17x17xf32>
    %94 = tpu.matmul %91, %92, %cst_45 {dimension_numbers = #tpu.dot_dimension_numbers<[1], [1], [0], [0], [0, 0, 1, 0], [], []>} : vector<17x8xf32>, vector<17x8xf32>, vector<17x17xf32> -> vector<17x17xf32>
    %cst_46 = arith.constant 0.353553385 : f32
    %95 = vector.broadcast %cst_46 : f32 to vector<17x17xf32>
    %96 = arith.mulf %94, %95 : vector<17x17xf32>
    %cst_47 = arith.constant dense<0xFF800000> : vector<17xf32>
    %97 = vector.multi_reduction <maximumf>, %96, %cst_47 [1] : vector<17x17xf32> to vector<17xf32>
    %98 = vector.shape_cast %97 : vector<17xf32> to vector<17x1xf32>
    %99 = vector.broadcast %98 : vector<17x1xf32> to vector<17x17xf32>
    %100 = arith.subf %96, %99 : vector<17x17xf32>
    %101 = math.exp %100 : vector<17x17xf32>
    %cst_48 = arith.constant dense<0.000000e+00> : vector<17xf32>
    %102 = vector.multi_reduction <add>, %101, %cst_48 [1] : vector<17x17xf32> to vector<17xf32>
    %103 = vector.shape_cast %102 : vector<17xf32> to vector<17x1xf32>
    %104 = vector.broadcast %103 : vector<17x1xf32> to vector<17x17xf32>
    %105 = arith.divf %101, %104 : vector<17x17xf32>
    %cst_49 = arith.constant dense<0.000000e+00> : vector<17x8xf32>
    %106 = tpu.matmul %105, %93, %cst_49 {dimension_numbers = #tpu.dot_dimension_numbers<[1], [0], [0], [1], [0, 0, 1, 1], [], []>} : vector<17x17xf32>, vector<17x8xf32>, vector<17x8xf32> -> vector<17x8xf32>
    %107 = vector.extract_strided_slice %51 {offsets = [16, 0], sizes = [8, 32], strides = [1, 1]} : vector<32x32xf32> to vector<8x32xf32>
    %cst_50 = arith.constant dense<0.000000e+00> : vector<17x32xf32>
    %108 = tpu.matmul %106, %107, %cst_50 {dimension_numbers = #tpu.dot_dimension_numbers<[1], [0], [0], [1], [0, 0, 1, 1], [], []>} : vector<17x8xf32>, vector<8x32xf32>, vector<17x32xf32> -> vector<17x32xf32>
    %109 = arith.addf %90, %108 : vector<17x32xf32>
    %110 = vector.extract_strided_slice %49 {offsets = [0, 24], sizes = [17, 8], strides = [1, 1]} : vector<17x96xf32> to vector<17x8xf32>
    %111 = vector.extract_strided_slice %49 {offsets = [0, 56], sizes = [17, 8], strides = [1, 1]} : vector<17x96xf32> to vector<17x8xf32>
    %112 = vector.extract_strided_slice %49 {offsets = [0, 88], sizes = [17, 8], strides = [1, 1]} : vector<17x96xf32> to vector<17x8xf32>
    %cst_51 = arith.constant dense<0.000000e+00> : vector<17x17xf32>
    %113 = tpu.matmul %110, %111, %cst_51 {dimension_numbers = #tpu.dot_dimension_numbers<[1], [1], [0], [0], [0, 0, 1, 0], [], []>} : vector<17x8xf32>, vector<17x8xf32>, vector<17x17xf32> -> vector<17x17xf32>
    %cst_52 = arith.constant 0.353553385 : f32
    %114 = vector.broadcast %cst_52 : f32 to vector<17x17xf32>
    %115 = arith.mulf %113, %114 : vector<17x17xf32>
    %cst_53 = arith.constant dense<0xFF800000> : vector<17xf32>
    %116 = vector.multi_reduction <maximumf>, %115, %cst_53 [1] : vector<17x17xf32> to vector<17xf32>
    %117 = vector.shape_cast %116 : vector<17xf32> to vector<17x1xf32>
    %118 = vector.broadcast %117 : vector<17x1xf32> to vector<17x17xf32>
    %119 = arith.subf %115, %118 : vector<17x17xf32>
    %120 = math.exp %119 : vector<17x17xf32>
    %cst_54 = arith.constant dense<0.000000e+00> : vector<17xf32>
    %121 = vector.multi_reduction <add>, %120, %cst_54 [1] : vector<17x17xf32> to vector<17xf32>
    %122 = vector.shape_cast %121 : vector<17xf32> to vector<17x1xf32>
    %123 = vector.broadcast %122 : vector<17x1xf32> to vector<17x17xf32>
    %124 = arith.divf %120, %123 : vector<17x17xf32>
    %cst_55 = arith.constant dense<0.000000e+00> : vector<17x8xf32>
    %125 = tpu.matmul %124, %112, %cst_55 {dimension_numbers = #tpu.dot_dimension_numbers<[1], [0], [0], [1], [0, 0, 1, 1], [], []>} : vector<17x17xf32>, vector<17x8xf32>, vector<17x8xf32> -> vector<17x8xf32>
    %126 = vector.extract_strided_slice %51 {offsets = [24, 0], sizes = [8, 32], strides = [1, 1]} : vector<32x32xf32> to vector<8x32xf32>
    %cst_56 = arith.constant dense<0.000000e+00> : vector<17x32xf32>
    %127 = tpu.matmul %125, %126, %cst_56 {dimension_numbers = #tpu.dot_dimension_numbers<[1], [0], [0], [1], [0, 0, 1, 1], [], []>} : vector<17x8xf32>, vector<8x32xf32>, vector<17x32xf32> -> vector<17x32xf32>
    %128 = arith.addf %109, %127 : vector<17x32xf32>
    %129 = arith.addf %18, %128 : vector<17x32xf32>
    %c0_57 = arith.constant 0 : index
    %c0_58 = arith.constant 0 : index
    %c0_59 = arith.constant 0 : index
    %130 = vector.load %arg11[%c0_57, %c0_58, %c0_59] : memref<2x1x32xf32, #tpu.memory_space<vmem>>, vector<1x1x32xf32>
    %131 = vector.shape_cast %130 : vector<1x1x32xf32> to vector<1x32xf32>
    %132 = vector.broadcast %131 : vector<1x32xf32> to vector<17x32xf32>
    %133 = arith.addf %129, %132 : vector<17x32xf32>
    %c0_60 = arith.constant 0 : index
    %c0_61 = arith.constant 0 : index
    %c0_62 = arith.constant 0 : index
    %134 = vector.load %arg12[%c0_60, %c0_61, %c0_62] : memref<2x1x32xf32, #tpu.memory_space<vmem>>, vector<1x1x32xf32>
    %135 = vector.shape_cast %134 : vector<1x1x32xf32> to vector<1x32xf32>
    %c0_63 = arith.constant 0 : index
    %c0_64 = arith.constant 0 : index
    %c0_65 = arith.constant 0 : index
    %136 = vector.load %arg13[%c0_63, %c0_64, %c0_65] : memref<2x1x32xf32, #tpu.memory_space<vmem>>, vector<1x1x32xf32>
    %137 = vector.shape_cast %136 : vector<1x1x32xf32> to vector<1x32xf32>
    %cst_66 = arith.constant dense<0.000000e+00> : vector<17xf32>
    %138 = vector.multi_reduction <add>, %133, %cst_66 [1] : vector<17x32xf32> to vector<17xf32>
    %139 = vector.shape_cast %138 : vector<17xf32> to vector<17x1xf32>
    %cst_67 = arith.constant 3.200000e+01 : f32
    %140 = vector.broadcast %cst_67 : f32 to vector<17x1xf32>
    %141 = arith.divf %139, %140 : vector<17x1xf32>
    %142 = vector.broadcast %141 : vector<17x1xf32> to vector<17x32xf32>
    %143 = arith.subf %133, %142 : vector<17x32xf32>
    %144 = arith.mulf %143, %143 : vector<17x32xf32>
    %cst_68 = arith.constant dense<0.000000e+00> : vector<17xf32>
    %145 = vector.multi_reduction <add>, %144, %cst_68 [1] : vector<17x32xf32> to vector<17xf32>
    %146 = vector.shape_cast %145 : vector<17xf32> to vector<17x1xf32>
    %cst_69 = arith.constant 3.200000e+01 : f32
    %147 = vector.broadcast %cst_69 : f32 to vector<17x1xf32>
    %148 = arith.divf %146, %147 : vector<17x1xf32>
    %cst_70 = arith.constant 9.99999974E-6 : f32
    %149 = vector.broadcast %cst_70 : f32 to vector<17x1xf32>
    %150 = arith.addf %148, %149 : vector<17x1xf32>
    %151 = math.rsqrt %150 : vector<17x1xf32>
    %152 = vector.broadcast %151 : vector<17x1xf32> to vector<17x32xf32>
    %153 = arith.mulf %143, %152 : vector<17x32xf32>
    %154 = vector.broadcast %135 : vector<1x32xf32> to vector<17x32xf32>
    %155 = arith.mulf %153, %154 : vector<17x32xf32>
    %156 = vector.broadcast %137 : vector<1x32xf32> to vector<17x32xf32>
    %157 = arith.addf %155, %156 : vector<17x32xf32>
    %c0_71 = arith.constant 0 : index
    %c0_72 = arith.constant 0 : index
    %c0_73 = arith.constant 0 : index
    %158 = vector.load %arg14[%c0_71, %c0_72, %c0_73] : memref<2x32x64xf32, #tpu.memory_space<vmem>>, vector<1x32x64xf32>
    %159 = vector.shape_cast %158 : vector<1x32x64xf32> to vector<32x64xf32>
    %cst_74 = arith.constant dense<0.000000e+00> : vector<17x64xf32>
    %160 = tpu.matmul %157, %159, %cst_74 {dimension_numbers = #tpu.dot_dimension_numbers<[1], [0], [0], [1], [0, 0, 1, 1], [], []>} : vector<17x32xf32>, vector<32x64xf32>, vector<17x64xf32> -> vector<17x64xf32>
    %c0_75 = arith.constant 0 : index
    %c0_76 = arith.constant 0 : index
    %c0_77 = arith.constant 0 : index
    %161 = vector.load %arg15[%c0_75, %c0_76, %c0_77] : memref<2x1x64xf32, #tpu.memory_space<vmem>>, vector<1x1x64xf32>
    %162 = vector.shape_cast %161 : vector<1x1x64xf32> to vector<1x64xf32>
    %163 = vector.broadcast %162 : vector<1x64xf32> to vector<17x64xf32>
    %164 = arith.addf %160, %163 : vector<17x64xf32>
    %cst_78 = arith.constant 5.000000e-01 : f32
    %165 = vector.broadcast %cst_78 : f32 to vector<17x64xf32>
    %166 = arith.mulf %165, %164 : vector<17x64xf32>
    %cst_79 = arith.constant 0.707106769 : f32
    %167 = vector.broadcast %cst_79 : f32 to vector<17x64xf32>
    %168 = arith.mulf %164, %167 : vector<17x64xf32>
    %169 = math.absf %168 : vector<17x64xf32>
    %cst_80 = arith.constant 0.327591091 : f32
    %170 = vector.broadcast %cst_80 : f32 to vector<17x64xf32>
    %171 = arith.mulf %170, %169 : vector<17x64xf32>
    %cst_81 = arith.constant 1.000000e+00 : f32
    %172 = vector.broadcast %cst_81 : f32 to vector<17x64xf32>
    %173 = arith.addf %172, %171 : vector<17x64xf32>
    %cst_82 = arith.constant 1.000000e+00 : f32
    %174 = vector.broadcast %cst_82 : f32 to vector<17x64xf32>
    %175 = arith.divf %174, %173 : vector<17x64xf32>
    %cst_83 = arith.constant 1.06140542 : f32
    %176 = vector.broadcast %cst_83 : f32 to vector<17x64xf32>
    %177 = arith.mulf %176, %175 : vector<17x64xf32>
    %cst_84 = arith.constant -1.45315206 : f32
    %178 = vector.broadcast %cst_84 : f32 to vector<17x64xf32>
    %179 = arith.addf %177, %178 : vector<17x64xf32>
    %180 = arith.mulf %179, %175 : vector<17x64xf32>
    %cst_85 = arith.constant 1.42141378 : f32
    %181 = vector.broadcast %cst_85 : f32 to vector<17x64xf32>
    %182 = arith.addf %180, %181 : vector<17x64xf32>
    %183 = arith.mulf %182, %175 : vector<17x64xf32>
    %cst_86 = arith.constant -0.284496725 : f32
    %184 = vector.broadcast %cst_86 : f32 to vector<17x64xf32>
    %185 = arith.addf %183, %184 : vector<17x64xf32>
    %186 = arith.mulf %185, %175 : vector<17x64xf32>
    %cst_87 = arith.constant 0.254829586 : f32
    %187 = vector.broadcast %cst_87 : f32 to vector<17x64xf32>
    %188 = arith.addf %186, %187 : vector<17x64xf32>
    %189 = arith.mulf %188, %175 : vector<17x64xf32>
    %cst_88 = arith.constant 0.000000e+00 : f32
    %190 = vector.broadcast %cst_88 : f32 to vector<17x64xf32>
    %191 = arith.subf %190, %169 : vector<17x64xf32>
    %192 = arith.mulf %191, %169 : vector<17x64xf32>
    %193 = math.exp %192 : vector<17x64xf32>
    %194 = arith.mulf %189, %193 : vector<17x64xf32>
    %cst_89 = arith.constant 1.000000e+00 : f32
    %195 = vector.broadcast %cst_89 : f32 to vector<17x64xf32>
    %196 = arith.subf %195, %194 : vector<17x64xf32>
    %cst_90 = arith.constant 0.000000e+00 : f32
    %197 = vector.broadcast %cst_90 : f32 to vector<17x64xf32>
    %198 = arith.cmpf oge, %168, %197 : vector<17x64xf32>
    %cst_91 = arith.constant 0.000000e+00 : f32
    %199 = vector.broadcast %cst_91 : f32 to vector<17x64xf32>
    %200 = arith.subf %199, %196 : vector<17x64xf32>
    %201 = arith.select %198, %196, %200 : vector<17x64xi1>, vector<17x64xf32>
    %cst_92 = arith.constant 1.000000e+00 : f32
    %202 = vector.broadcast %cst_92 : f32 to vector<17x64xf32>
    %203 = arith.addf %202, %201 : vector<17x64xf32>
    %204 = arith.mulf %166, %203 : vector<17x64xf32>
    %c0_93 = arith.constant 0 : index
    %c0_94 = arith.constant 0 : index
    %c0_95 = arith.constant 0 : index
    %205 = vector.load %arg16[%c0_93, %c0_94, %c0_95] : memref<2x64x32xf32, #tpu.memory_space<vmem>>, vector<1x64x32xf32>
    %206 = vector.shape_cast %205 : vector<1x64x32xf32> to vector<64x32xf32>
    %cst_96 = arith.constant dense<0.000000e+00> : vector<17x32xf32>
    %207 = tpu.matmul %204, %206, %cst_96 {dimension_numbers = #tpu.dot_dimension_numbers<[1], [0], [0], [1], [0, 0, 1, 1], [], []>} : vector<17x64xf32>, vector<64x32xf32>, vector<17x32xf32> -> vector<17x32xf32>
    %c0_97 = arith.constant 0 : index
    %c0_98 = arith.constant 0 : index
    %c0_99 = arith.constant 0 : index
    %208 = vector.load %arg17[%c0_97, %c0_98, %c0_99] : memref<2x1x32xf32, #tpu.memory_space<vmem>>, vector<1x1x32xf32>
    %209 = vector.shape_cast %208 : vector<1x1x32xf32> to vector<1x32xf32>
    %210 = vector.broadcast %209 : vector<1x32xf32> to vector<17x32xf32>
    %211 = arith.addf %207, %210 : vector<17x32xf32>
    %212 = arith.addf %133, %211 : vector<17x32xf32>
    %c1 = arith.constant 1 : index
    %c0_100 = arith.constant 0 : index
    %c0_101 = arith.constant 0 : index
    %213 = vector.load %arg6[%c1, %c0_100, %c0_101] : memref<2x1x32xf32, #tpu.memory_space<vmem>>, vector<1x1x32xf32>
    %214 = vector.shape_cast %213 : vector<1x1x32xf32> to vector<1x32xf32>
    %c1_102 = arith.constant 1 : index
    %c0_103 = arith.constant 0 : index
    %c0_104 = arith.constant 0 : index
    %215 = vector.load %arg7[%c1_102, %c0_103, %c0_104] : memref<2x1x32xf32, #tpu.memory_space<vmem>>, vector<1x1x32xf32>
    %216 = vector.shape_cast %215 : vector<1x1x32xf32> to vector<1x32xf32>
    %cst_105 = arith.constant dense<0.000000e+00> : vector<17xf32>
    %217 = vector.multi_reduction <add>, %212, %cst_105 [1] : vector<17x32xf32> to vector<17xf32>
    %218 = vector.shape_cast %217 : vector<17xf32> to vector<17x1xf32>
    %cst_106 = arith.constant 3.200000e+01 : f32
    %219 = vector.broadcast %cst_106 : f32 to vector<17x1xf32>
    %220 = arith.divf %218, %219 : vector<17x1xf32>
    %221 = vector.broadcast %220 : vector<17x1xf32> to vector<17x32xf32>
    %222 = arith.subf %212, %221 : vector<17x32xf32>
    %223 = arith.mulf %222, %222 : vector<17x32xf32>
    %cst_107 = arith.constant dense<0.000000e+00> : vector<17xf32>
    %224 = vector.multi_reduction <add>, %223, %cst_107 [1] : vector<17x32xf32> to vector<17xf32>
    %225 = vector.shape_cast %224 : vector<17xf32> to vector<17x1xf32>
    %cst_108 = arith.constant 3.200000e+01 : f32
    %226 = vector.broadcast %cst_108 : f32 to vector<17x1xf32>
    %227 = arith.divf %225, %226 : vector<17x1xf32>
    %cst_109 = arith.constant 9.99999974E-6 : f32
    %228 = vector.broadcast %cst_109 : f32 to vector<17x1xf32>
    %229 = arith.addf %227, %228 : vector<17x1xf32>
    %230 = math.rsqrt %229 : vector<17x1xf32>
    %231 = vector.broadcast %230 : vector<17x1xf32> to vector<17x32xf32>
    %232 = arith.mulf %222, %231 : vector<17x32xf32>
    %233 = vector.broadcast %214 : vector<1x32xf32> to vector<17x32xf32>
    %234 = arith.mulf %232, %233 : vector<17x32xf32>
    %235 = vector.broadcast %216 : vector<1x32xf32> to vector<17x32xf32>
    %236 = arith.addf %234, %235 : vector<17x32xf32>
    %c1_110 = arith.constant 1 : index
    %c0_111 = arith.constant 0 : index
    %c0_112 = arith.constant 0 : index
    %237 = vector.load %arg8[%c1_110, %c0_111, %c0_112] : memref<2x32x96xf32, #tpu.memory_space<vmem>>, vector<1x32x96xf32>
    %238 = vector.shape_cast %237 : vector<1x32x96xf32> to vector<32x96xf32>
    %cst_113 = arith.constant dense<0.000000e+00> : vector<17x96xf32>
    %239 = tpu.matmul %236, %238, %cst_113 {dimension_numbers = #tpu.dot_dimension_numbers<[1], [0], [0], [1], [0, 0, 1, 1], [], []>} : vector<17x32xf32>, vector<32x96xf32>, vector<17x96xf32> -> vector<17x96xf32>
    %c1_114 = arith.constant 1 : index
    %c0_115 = arith.constant 0 : index
    %c0_116 = arith.constant 0 : index
    %240 = vector.load %arg9[%c1_114, %c0_115, %c0_116] : memref<2x1x96xf32, #tpu.memory_space<vmem>>, vector<1x1x96xf32>
    %241 = vector.shape_cast %240 : vector<1x1x96xf32> to vector<1x96xf32>
    %242 = vector.broadcast %241 : vector<1x96xf32> to vector<17x96xf32>
    %243 = arith.addf %239, %242 : vector<17x96xf32>
    %c1_117 = arith.constant 1 : index
    %c0_118 = arith.constant 0 : index
    %c0_119 = arith.constant 0 : index
    %244 = vector.load %arg10[%c1_117, %c0_118, %c0_119] : memref<2x32x32xf32, #tpu.memory_space<vmem>>, vector<1x32x32xf32>
    %245 = vector.shape_cast %244 : vector<1x32x32xf32> to vector<32x32xf32>
    %cst_120 = arith.constant 0.000000e+00 : f32
    %246 = vector.broadcast %cst_120 : f32 to vector<17x32xf32>
    %247 = vector.extract_strided_slice %243 {offsets = [0, 0], sizes = [17, 8], strides = [1, 1]} : vector<17x96xf32> to vector<17x8xf32>
    %248 = vector.extract_strided_slice %243 {offsets = [0, 32], sizes = [17, 8], strides = [1, 1]} : vector<17x96xf32> to vector<17x8xf32>
    %249 = vector.extract_strided_slice %243 {offsets = [0, 64], sizes = [17, 8], strides = [1, 1]} : vector<17x96xf32> to vector<17x8xf32>
    %cst_121 = arith.constant dense<0.000000e+00> : vector<17x17xf32>
    %250 = tpu.matmul %247, %248, %cst_121 {dimension_numbers = #tpu.dot_dimension_numbers<[1], [1], [0], [0], [0, 0, 1, 0], [], []>} : vector<17x8xf32>, vector<17x8xf32>, vector<17x17xf32> -> vector<17x17xf32>
    %cst_122 = arith.constant 0.353553385 : f32
    %251 = vector.broadcast %cst_122 : f32 to vector<17x17xf32>
    %252 = arith.mulf %250, %251 : vector<17x17xf32>
    %cst_123 = arith.constant dense<0xFF800000> : vector<17xf32>
    %253 = vector.multi_reduction <maximumf>, %252, %cst_123 [1] : vector<17x17xf32> to vector<17xf32>
    %254 = vector.shape_cast %253 : vector<17xf32> to vector<17x1xf32>
    %255 = vector.broadcast %254 : vector<17x1xf32> to vector<17x17xf32>
    %256 = arith.subf %252, %255 : vector<17x17xf32>
    %257 = math.exp %256 : vector<17x17xf32>
    %cst_124 = arith.constant dense<0.000000e+00> : vector<17xf32>
    %258 = vector.multi_reduction <add>, %257, %cst_124 [1] : vector<17x17xf32> to vector<17xf32>
    %259 = vector.shape_cast %258 : vector<17xf32> to vector<17x1xf32>
    %260 = vector.broadcast %259 : vector<17x1xf32> to vector<17x17xf32>
    %261 = arith.divf %257, %260 : vector<17x17xf32>
    %cst_125 = arith.constant dense<0.000000e+00> : vector<17x8xf32>
    %262 = tpu.matmul %261, %249, %cst_125 {dimension_numbers = #tpu.dot_dimension_numbers<[1], [0], [0], [1], [0, 0, 1, 1], [], []>} : vector<17x17xf32>, vector<17x8xf32>, vector<17x8xf32> -> vector<17x8xf32>
    %263 = vector.extract_strided_slice %245 {offsets = [0, 0], sizes = [8, 32], strides = [1, 1]} : vector<32x32xf32> to vector<8x32xf32>
    %cst_126 = arith.constant dense<0.000000e+00> : vector<17x32xf32>
    %264 = tpu.matmul %262, %263, %cst_126 {dimension_numbers = #tpu.dot_dimension_numbers<[1], [0], [0], [1], [0, 0, 1, 1], [], []>} : vector<17x8xf32>, vector<8x32xf32>, vector<17x32xf32> -> vector<17x32xf32>
    %265 = arith.addf %246, %264 : vector<17x32xf32>
    %266 = vector.extract_strided_slice %243 {offsets = [0, 8], sizes = [17, 8], strides = [1, 1]} : vector<17x96xf32> to vector<17x8xf32>
    %267 = vector.extract_strided_slice %243 {offsets = [0, 40], sizes = [17, 8], strides = [1, 1]} : vector<17x96xf32> to vector<17x8xf32>
    %268 = vector.extract_strided_slice %243 {offsets = [0, 72], sizes = [17, 8], strides = [1, 1]} : vector<17x96xf32> to vector<17x8xf32>
    %cst_127 = arith.constant dense<0.000000e+00> : vector<17x17xf32>
    %269 = tpu.matmul %266, %267, %cst_127 {dimension_numbers = #tpu.dot_dimension_numbers<[1], [1], [0], [0], [0, 0, 1, 0], [], []>} : vector<17x8xf32>, vector<17x8xf32>, vector<17x17xf32> -> vector<17x17xf32>
    %cst_128 = arith.constant 0.353553385 : f32
    %270 = vector.broadcast %cst_128 : f32 to vector<17x17xf32>
    %271 = arith.mulf %269, %270 : vector<17x17xf32>
    %cst_129 = arith.constant dense<0xFF800000> : vector<17xf32>
    %272 = vector.multi_reduction <maximumf>, %271, %cst_129 [1] : vector<17x17xf32> to vector<17xf32>
    %273 = vector.shape_cast %272 : vector<17xf32> to vector<17x1xf32>
    %274 = vector.broadcast %273 : vector<17x1xf32> to vector<17x17xf32>
    %275 = arith.subf %271, %274 : vector<17x17xf32>
    %276 = math.exp %275 : vector<17x17xf32>
    %cst_130 = arith.constant dense<0.000000e+00> : vector<17xf32>
    %277 = vector.multi_reduction <add>, %276, %cst_130 [1] : vector<17x17xf32> to vector<17xf32>
    %278 = vector.shape_cast %277 : vector<17xf32> to vector<17x1xf32>
    %279 = vector.broadcast %278 : vector<17x1xf32> to vector<17x17xf32>
    %280 = arith.divf %276, %279 : vector<17x17xf32>
    %cst_131 = arith.constant dense<0.000000e+00> : vector<17x8xf32>
    %281 = tpu.matmul %280, %268, %cst_131 {dimension_numbers = #tpu.dot_dimension_numbers<[1], [0], [0], [1], [0, 0, 1, 1], [], []>} : vector<17x17xf32>, vector<17x8xf32>, vector<17x8xf32> -> vector<17x8xf32>
    %282 = vector.extract_strided_slice %245 {offsets = [8, 0], sizes = [8, 32], strides = [1, 1]} : vector<32x32xf32> to vector<8x32xf32>
    %cst_132 = arith.constant dense<0.000000e+00> : vector<17x32xf32>
    %283 = tpu.matmul %281, %282, %cst_132 {dimension_numbers = #tpu.dot_dimension_numbers<[1], [0], [0], [1], [0, 0, 1, 1], [], []>} : vector<17x8xf32>, vector<8x32xf32>, vector<17x32xf32> -> vector<17x32xf32>
    %284 = arith.addf %265, %283 : vector<17x32xf32>
    %285 = vector.extract_strided_slice %243 {offsets = [0, 16], sizes = [17, 8], strides = [1, 1]} : vector<17x96xf32> to vector<17x8xf32>
    %286 = vector.extract_strided_slice %243 {offsets = [0, 48], sizes = [17, 8], strides = [1, 1]} : vector<17x96xf32> to vector<17x8xf32>
    %287 = vector.extract_strided_slice %243 {offsets = [0, 80], sizes = [17, 8], strides = [1, 1]} : vector<17x96xf32> to vector<17x8xf32>
    %cst_133 = arith.constant dense<0.000000e+00> : vector<17x17xf32>
    %288 = tpu.matmul %285, %286, %cst_133 {dimension_numbers = #tpu.dot_dimension_numbers<[1], [1], [0], [0], [0, 0, 1, 0], [], []>} : vector<17x8xf32>, vector<17x8xf32>, vector<17x17xf32> -> vector<17x17xf32>
    %cst_134 = arith.constant 0.353553385 : f32
    %289 = vector.broadcast %cst_134 : f32 to vector<17x17xf32>
    %290 = arith.mulf %288, %289 : vector<17x17xf32>
    %cst_135 = arith.constant dense<0xFF800000> : vector<17xf32>
    %291 = vector.multi_reduction <maximumf>, %290, %cst_135 [1] : vector<17x17xf32> to vector<17xf32>
    %292 = vector.shape_cast %291 : vector<17xf32> to vector<17x1xf32>
    %293 = vector.broadcast %292 : vector<17x1xf32> to vector<17x17xf32>
    %294 = arith.subf %290, %293 : vector<17x17xf32>
    %295 = math.exp %294 : vector<17x17xf32>
    %cst_136 = arith.constant dense<0.000000e+00> : vector<17xf32>
    %296 = vector.multi_reduction <add>, %295, %cst_136 [1] : vector<17x17xf32> to vector<17xf32>
    %297 = vector.shape_cast %296 : vector<17xf32> to vector<17x1xf32>
    %298 = vector.broadcast %297 : vector<17x1xf32> to vector<17x17xf32>
    %299 = arith.divf %295, %298 : vector<17x17xf32>
    %cst_137 = arith.constant dense<0.000000e+00> : vector<17x8xf32>
    %300 = tpu.matmul %299, %287, %cst_137 {dimension_numbers = #tpu.dot_dimension_numbers<[1], [0], [0], [1], [0, 0, 1, 1], [], []>} : vector<17x17xf32>, vector<17x8xf32>, vector<17x8xf32> -> vector<17x8xf32>
    %301 = vector.extract_strided_slice %245 {offsets = [16, 0], sizes = [8, 32], strides = [1, 1]} : vector<32x32xf32> to vector<8x32xf32>
    %cst_138 = arith.constant dense<0.000000e+00> : vector<17x32xf32>
    %302 = tpu.matmul %300, %301, %cst_138 {dimension_numbers = #tpu.dot_dimension_numbers<[1], [0], [0], [1], [0, 0, 1, 1], [], []>} : vector<17x8xf32>, vector<8x32xf32>, vector<17x32xf32> -> vector<17x32xf32>
    %303 = arith.addf %284, %302 : vector<17x32xf32>
    %304 = vector.extract_strided_slice %243 {offsets = [0, 24], sizes = [17, 8], strides = [1, 1]} : vector<17x96xf32> to vector<17x8xf32>
    %305 = vector.extract_strided_slice %243 {offsets = [0, 56], sizes = [17, 8], strides = [1, 1]} : vector<17x96xf32> to vector<17x8xf32>
    %306 = vector.extract_strided_slice %243 {offsets = [0, 88], sizes = [17, 8], strides = [1, 1]} : vector<17x96xf32> to vector<17x8xf32>
    %cst_139 = arith.constant dense<0.000000e+00> : vector<17x17xf32>
    %307 = tpu.matmul %304, %305, %cst_139 {dimension_numbers = #tpu.dot_dimension_numbers<[1], [1], [0], [0], [0, 0, 1, 0], [], []>} : vector<17x8xf32>, vector<17x8xf32>, vector<17x17xf32> -> vector<17x17xf32>
    %cst_140 = arith.constant 0.353553385 : f32
    %308 = vector.broadcast %cst_140 : f32 to vector<17x17xf32>
    %309 = arith.mulf %307, %308 : vector<17x17xf32>
    %cst_141 = arith.constant dense<0xFF800000> : vector<17xf32>
    %310 = vector.multi_reduction <maximumf>, %309, %cst_141 [1] : vector<17x17xf32> to vector<17xf32>
    %311 = vector.shape_cast %310 : vector<17xf32> to vector<17x1xf32>
    %312 = vector.broadcast %311 : vector<17x1xf32> to vector<17x17xf32>
    %313 = arith.subf %309, %312 : vector<17x17xf32>
    %314 = math.exp %313 : vector<17x17xf32>
    %cst_142 = arith.constant dense<0.000000e+00> : vector<17xf32>
    %315 = vector.multi_reduction <add>, %314, %cst_142 [1] : vector<17x17xf32> to vector<17xf32>
    %316 = vector.shape_cast %315 : vector<17xf32> to vector<17x1xf32>
    %317 = vector.broadcast %316 : vector<17x1xf32> to vector<17x17xf32>
    %318 = arith.divf %314, %317 : vector<17x17xf32>
    %cst_143 = arith.constant dense<0.000000e+00> : vector<17x8xf32>
    %319 = tpu.matmul %318, %306, %cst_143 {dimension_numbers = #tpu.dot_dimension_numbers<[1], [0], [0], [1], [0, 0, 1, 1], [], []>} : vector<17x17xf32>, vector<17x8xf32>, vector<17x8xf32> -> vector<17x8xf32>
    %320 = vector.extract_strided_slice %245 {offsets = [24, 0], sizes = [8, 32], strides = [1, 1]} : vector<32x32xf32> to vector<8x32xf32>
    %cst_144 = arith.constant dense<0.000000e+00> : vector<17x32xf32>
    %321 = tpu.matmul %319, %320, %cst_144 {dimension_numbers = #tpu.dot_dimension_numbers<[1], [0], [0], [1], [0, 0, 1, 1], [], []>} : vector<17x8xf32>, vector<8x32xf32>, vector<17x32xf32> -> vector<17x32xf32>
    %322 = arith.addf %303, %321 : vector<17x32xf32>
    %323 = arith.addf %212, %322 : vector<17x32xf32>
    %c1_145 = arith.constant 1 : index
    %c0_146 = arith.constant 0 : index
    %c0_147 = arith.constant 0 : index
    %324 = vector.load %arg11[%c1_145, %c0_146, %c0_147] : memref<2x1x32xf32, #tpu.memory_space<vmem>>, vector<1x1x32xf32>
    %325 = vector.shape_cast %324 : vector<1x1x32xf32> to vector<1x32xf32>
    %326 = vector.broadcast %325 : vector<1x32xf32> to vector<17x32xf32>
    %327 = arith.addf %323, %326 : vector<17x32xf32>
    %c1_148 = arith.constant 1 : index
    %c0_149 = arith.constant 0 : index
    %c0_150 = arith.constant 0 : index
    %328 = vector.load %arg12[%c1_148, %c0_149, %c0_150] : memref<2x1x32xf32, #tpu.memory_space<vmem>>, vector<1x1x32xf32>
    %329 = vector.shape_cast %328 : vector<1x1x32xf32> to vector<1x32xf32>
    %c1_151 = arith.constant 1 : index
    %c0_152 = arith.constant 0 : index
    %c0_153 = arith.constant 0 : index
    %330 = vector.load %arg13[%c1_151, %c0_152, %c0_153] : memref<2x1x32xf32, #tpu.memory_space<vmem>>, vector<1x1x32xf32>
    %331 = vector.shape_cast %330 : vector<1x1x32xf32> to vector<1x32xf32>
    %cst_154 = arith.constant dense<0.000000e+00> : vector<17xf32>
    %332 = vector.multi_reduction <add>, %327, %cst_154 [1] : vector<17x32xf32> to vector<17xf32>
    %333 = vector.shape_cast %332 : vector<17xf32> to vector<17x1xf32>
    %cst_155 = arith.constant 3.200000e+01 : f32
    %334 = vector.broadcast %cst_155 : f32 to vector<17x1xf32>
    %335 = arith.divf %333, %334 : vector<17x1xf32>
    %336 = vector.broadcast %335 : vector<17x1xf32> to vector<17x32xf32>
    %337 = arith.subf %327, %336 : vector<17x32xf32>
    %338 = arith.mulf %337, %337 : vector<17x32xf32>
    %cst_156 = arith.constant dense<0.000000e+00> : vector<17xf32>
    %339 = vector.multi_reduction <add>, %338, %cst_156 [1] : vector<17x32xf32> to vector<17xf32>
    %340 = vector.shape_cast %339 : vector<17xf32> to vector<17x1xf32>
    %cst_157 = arith.constant 3.200000e+01 : f32
    %341 = vector.broadcast %cst_157 : f32 to vector<17x1xf32>
    %342 = arith.divf %340, %341 : vector<17x1xf32>
    %cst_158 = arith.constant 9.99999974E-6 : f32
    %343 = vector.broadcast %cst_158 : f32 to vector<17x1xf32>
    %344 = arith.addf %342, %343 : vector<17x1xf32>
    %345 = math.rsqrt %344 : vector<17x1xf32>
    %346 = vector.broadcast %345 : vector<17x1xf32> to vector<17x32xf32>
    %347 = arith.mulf %337, %346 : vector<17x32xf32>
    %348 = vector.broadcast %329 : vector<1x32xf32> to vector<17x32xf32>
    %349 = arith.mulf %347, %348 : vector<17x32xf32>
    %350 = vector.broadcast %331 : vector<1x32xf32> to vector<17x32xf32>
    %351 = arith.addf %349, %350 : vector<17x32xf32>
    %c1_159 = arith.constant 1 : index
    %c0_160 = arith.constant 0 : index
    %c0_161 = arith.constant 0 : index
    %352 = vector.load %arg14[%c1_159, %c0_160, %c0_161] : memref<2x32x64xf32, #tpu.memory_space<vmem>>, vector<1x32x64xf32>
    %353 = vector.shape_cast %352 : vector<1x32x64xf32> to vector<32x64xf32>
    %cst_162 = arith.constant dense<0.000000e+00> : vector<17x64xf32>
    %354 = tpu.matmul %351, %353, %cst_162 {dimension_numbers = #tpu.dot_dimension_numbers<[1], [0], [0], [1], [0, 0, 1, 1], [], []>} : vector<17x32xf32>, vector<32x64xf32>, vector<17x64xf32> -> vector<17x64xf32>
    %c1_163 = arith.constant 1 : index
    %c0_164 = arith.constant 0 : index
    %c0_165 = arith.constant 0 : index
    %355 = vector.load %arg15[%c1_163, %c0_164, %c0_165] : memref<2x1x64xf32, #tpu.memory_space<vmem>>, vector<1x1x64xf32>
    %356 = vector.shape_cast %355 : vector<1x1x64xf32> to vector<1x64xf32>
    %357 = vector.broadcast %356 : vector<1x64xf32> to vector<17x64xf32>
    %358 = arith.addf %354, %357 : vector<17x64xf32>
    %cst_166 = arith.constant 5.000000e-01 : f32
    %359 = vector.broadcast %cst_166 : f32 to vector<17x64xf32>
    %360 = arith.mulf %359, %358 : vector<17x64xf32>
    %cst_167 = arith.constant 0.707106769 : f32
    %361 = vector.broadcast %cst_167 : f32 to vector<17x64xf32>
    %362 = arith.mulf %358, %361 : vector<17x64xf32>
    %363 = math.absf %362 : vector<17x64xf32>
    %cst_168 = arith.constant 0.327591091 : f32
    %364 = vector.broadcast %cst_168 : f32 to vector<17x64xf32>
    %365 = arith.mulf %364, %363 : vector<17x64xf32>
    %cst_169 = arith.constant 1.000000e+00 : f32
    %366 = vector.broadcast %cst_169 : f32 to vector<17x64xf32>
    %367 = arith.addf %366, %365 : vector<17x64xf32>
    %cst_170 = arith.constant 1.000000e+00 : f32
    %368 = vector.broadcast %cst_170 : f32 to vector<17x64xf32>
    %369 = arith.divf %368, %367 : vector<17x64xf32>
    %cst_171 = arith.constant 1.06140542 : f32
    %370 = vector.broadcast %cst_171 : f32 to vector<17x64xf32>
    %371 = arith.mulf %370, %369 : vector<17x64xf32>
    %cst_172 = arith.constant -1.45315206 : f32
    %372 = vector.broadcast %cst_172 : f32 to vector<17x64xf32>
    %373 = arith.addf %371, %372 : vector<17x64xf32>
    %374 = arith.mulf %373, %369 : vector<17x64xf32>
    %cst_173 = arith.constant 1.42141378 : f32
    %375 = vector.broadcast %cst_173 : f32 to vector<17x64xf32>
    %376 = arith.addf %374, %375 : vector<17x64xf32>
    %377 = arith.mulf %376, %369 : vector<17x64xf32>
    %cst_174 = arith.constant -0.284496725 : f32
    %378 = vector.broadcast %cst_174 : f32 to vector<17x64xf32>
    %379 = arith.addf %377, %378 : vector<17x64xf32>
    %380 = arith.mulf %379, %369 : vector<17x64xf32>
    %cst_175 = arith.constant 0.254829586 : f32
    %381 = vector.broadcast %cst_175 : f32 to vector<17x64xf32>
    %382 = arith.addf %380, %381 : vector<17x64xf32>
    %383 = arith.mulf %382, %369 : vector<17x64xf32>
    %cst_176 = arith.constant 0.000000e+00 : f32
    %384 = vector.broadcast %cst_176 : f32 to vector<17x64xf32>
    %385 = arith.subf %384, %363 : vector<17x64xf32>
    %386 = arith.mulf %385, %363 : vector<17x64xf32>
    %387 = math.exp %386 : vector<17x64xf32>
    %388 = arith.mulf %383, %387 : vector<17x64xf32>
    %cst_177 = arith.constant 1.000000e+00 : f32
    %389 = vector.broadcast %cst_177 : f32 to vector<17x64xf32>
    %390 = arith.subf %389, %388 : vector<17x64xf32>
    %cst_178 = arith.constant 0.000000e+00 : f32
    %391 = vector.broadcast %cst_178 : f32 to vector<17x64xf32>
    %392 = arith.cmpf oge, %362, %391 : vector<17x64xf32>
    %cst_179 = arith.constant 0.000000e+00 : f32
    %393 = vector.broadcast %cst_179 : f32 to vector<17x64xf32>
    %394 = arith.subf %393, %390 : vector<17x64xf32>
    %395 = arith.select %392, %390, %394 : vector<17x64xi1>, vector<17x64xf32>
    %cst_180 = arith.constant 1.000000e+00 : f32
    %396 = vector.broadcast %cst_180 : f32 to vector<17x64xf32>
    %397 = arith.addf %396, %395 : vector<17x64xf32>
    %398 = arith.mulf %360, %397 : vector<17x64xf32>
    %c1_181 = arith.constant 1 : index
    %c0_182 = arith.constant 0 : index
    %c0_183 = arith.constant 0 : index
    %399 = vector.load %arg16[%c1_181, %c0_182, %c0_183] : memref<2x64x32xf32, #tpu.memory_space<vmem>>, vector<1x64x32xf32>
    %400 = vector.shape_cast %399 : vector<1x64x32xf32> to vector<64x32xf32>
    %cst_184 = arith.constant dense<0.000000e+00> : vector<17x32xf32>
    %401 = tpu.matmul %398, %400, %cst_184 {dimension_numbers = #tpu.dot_dimension_numbers<[1], [0], [0], [1], [0, 0, 1, 1], [], []>} : vector<17x64xf32>, vector<64x32xf32>, vector<17x32xf32> -> vector<17x32xf32>
    %c1_185 = arith.constant 1 : index
    %c0_186 = arith.constant 0 : index
    %c0_187 = arith.constant 0 : index
    %402 = vector.load %arg17[%c1_185, %c0_186, %c0_187] : memref<2x1x32xf32, #tpu.memory_space<vmem>>, vector<1x1x32xf32>
    %403 = vector.shape_cast %402 : vector<1x1x32xf32> to vector<1x32xf32>
    %404 = vector.broadcast %403 : vector<1x32xf32> to vector<17x32xf32>
    %405 = arith.addf %401, %404 : vector<17x32xf32>
    %406 = arith.addf %327, %405 : vector<17x32xf32>
    %407 = vector.extract_strided_slice %406 {offsets = [0, 0], sizes = [1, 32], strides = [1, 1]} : vector<17x32xf32> to vector<1x32xf32>
    %c0_188 = arith.constant 0 : index
    %c0_189 = arith.constant 0 : index
    %408 = vector.load %arg18[%c0_188, %c0_189] : memref<1x32xf32, #tpu.memory_space<vmem>>, vector<1x32xf32>
    %c0_190 = arith.constant 0 : index
    %c0_191 = arith.constant 0 : index
    %409 = vector.load %arg19[%c0_190, %c0_191] : memref<1x32xf32, #tpu.memory_space<vmem>>, vector<1x32xf32>
    %cst_192 = arith.constant dense<0.000000e+00> : vector<1xf32>
    %410 = vector.multi_reduction <add>, %407, %cst_192 [1] : vector<1x32xf32> to vector<1xf32>
    %411 = vector.shape_cast %410 : vector<1xf32> to vector<1x1xf32>
    %cst_193 = arith.constant 3.200000e+01 : f32
    %412 = vector.broadcast %cst_193 : f32 to vector<1x1xf32>
    %413 = arith.divf %411, %412 : vector<1x1xf32>
    %414 = vector.broadcast %413 : vector<1x1xf32> to vector<1x32xf32>
    %415 = arith.subf %407, %414 : vector<1x32xf32>
    %416 = arith.mulf %415, %415 : vector<1x32xf32>
    %cst_194 = arith.constant dense<0.000000e+00> : vector<1xf32>
    %417 = vector.multi_reduction <add>, %416, %cst_194 [1] : vector<1x32xf32> to vector<1xf32>
    %418 = vector.shape_cast %417 : vector<1xf32> to vector<1x1xf32>
    %cst_195 = arith.constant 3.200000e+01 : f32
    %419 = vector.broadcast %cst_195 : f32 to vector<1x1xf32>
    %420 = arith.divf %418, %419 : vector<1x1xf32>
    %cst_196 = arith.constant 9.99999974E-6 : f32
    %421 = vector.broadcast %cst_196 : f32 to vector<1x1xf32>
    %422 = arith.addf %420, %421 : vector<1x1xf32>
    %423 = math.rsqrt %422 : vector<1x1xf32>
    %424 = vector.broadcast %423 : vector<1x1xf32> to vector<1x32xf32>
    %425 = arith.mulf %415, %424 : vector<1x32xf32>
    %426 = arith.mulf %425, %408 : vector<1x32xf32>
    %427 = arith.addf %426, %409 : vector<1x32xf32>
    %c0_197 = arith.constant 0 : index
    %c0_198 = arith.constant 0 : index
    %428 = vector.load %arg20[%c0_197, %c0_198] : memref<32x32xf32, #tpu.memory_space<vmem>>, vector<32x32xf32>
    %cst_199 = arith.constant dense<0.000000e+00> : vector<1x32xf32>
    %429 = tpu.matmul %427, %428, %cst_199 {dimension_numbers = #tpu.dot_dimension_numbers<[1], [0], [0], [1], [0, 0, 1, 1], [], []>} : vector<1x32xf32>, vector<32x32xf32>, vector<1x32xf32> -> vector<1x32xf32>
    %c0_200 = arith.constant 0 : index
    %c0_201 = arith.constant 0 : index
    %430 = vector.load %arg21[%c0_200, %c0_201] : memref<1x32xf32, #tpu.memory_space<vmem>>, vector<1x32xf32>
    %431 = arith.addf %429, %430 : vector<1x32xf32>
    %cst_202 = arith.constant 5.000000e-01 : f32
    %432 = vector.broadcast %cst_202 : f32 to vector<1x32xf32>
    %433 = arith.mulf %432, %431 : vector<1x32xf32>
    %cst_203 = arith.constant 0.707106769 : f32
    %434 = vector.broadcast %cst_203 : f32 to vector<1x32xf32>
    %435 = arith.mulf %431, %434 : vector<1x32xf32>
    %436 = math.absf %435 : vector<1x32xf32>
    %cst_204 = arith.constant 0.327591091 : f32
    %437 = vector.broadcast %cst_204 : f32 to vector<1x32xf32>
    %438 = arith.mulf %437, %436 : vector<1x32xf32>
    %cst_205 = arith.constant 1.000000e+00 : f32
    %439 = vector.broadcast %cst_205 : f32 to vector<1x32xf32>
    %440 = arith.addf %439, %438 : vector<1x32xf32>
    %cst_206 = arith.constant 1.000000e+00 : f32
    %441 = vector.broadcast %cst_206 : f32 to vector<1x32xf32>
    %442 = arith.divf %441, %440 : vector<1x32xf32>
    %cst_207 = arith.constant 1.06140542 : f32
    %443 = vector.broadcast %cst_207 : f32 to vector<1x32xf32>
    %444 = arith.mulf %443, %442 : vector<1x32xf32>
    %cst_208 = arith.constant -1.45315206 : f32
    %445 = vector.broadcast %cst_208 : f32 to vector<1x32xf32>
    %446 = arith.addf %444, %445 : vector<1x32xf32>
    %447 = arith.mulf %446, %442 : vector<1x32xf32>
    %cst_209 = arith.constant 1.42141378 : f32
    %448 = vector.broadcast %cst_209 : f32 to vector<1x32xf32>
    %449 = arith.addf %447, %448 : vector<1x32xf32>
    %450 = arith.mulf %449, %442 : vector<1x32xf32>
    %cst_210 = arith.constant -0.284496725 : f32
    %451 = vector.broadcast %cst_210 : f32 to vector<1x32xf32>
    %452 = arith.addf %450, %451 : vector<1x32xf32>
    %453 = arith.mulf %452, %442 : vector<1x32xf32>
    %cst_211 = arith.constant 0.254829586 : f32
    %454 = vector.broadcast %cst_211 : f32 to vector<1x32xf32>
    %455 = arith.addf %453, %454 : vector<1x32xf32>
    %456 = arith.mulf %455, %442 : vector<1x32xf32>
    %cst_212 = arith.constant 0.000000e+00 : f32
    %457 = vector.broadcast %cst_212 : f32 to vector<1x32xf32>
    %458 = arith.subf %457, %436 : vector<1x32xf32>
    %459 = arith.mulf %458, %436 : vector<1x32xf32>
    %460 = math.exp %459 : vector<1x32xf32>
    %461 = arith.mulf %456, %460 : vector<1x32xf32>
    %cst_213 = arith.constant 1.000000e+00 : f32
    %462 = vector.broadcast %cst_213 : f32 to vector<1x32xf32>
    %463 = arith.subf %462, %461 : vector<1x32xf32>
    %cst_214 = arith.constant 0.000000e+00 : f32
    %464 = vector.broadcast %cst_214 : f32 to vector<1x32xf32>
    %465 = arith.cmpf oge, %435, %464 : vector<1x32xf32>
    %cst_215 = arith.constant 0.000000e+00 : f32
    %466 = vector.broadcast %cst_215 : f32 to vector<1x32xf32>
    %467 = arith.subf %466, %463 : vector<1x32xf32>
    %468 = arith.select %465, %463, %467 : vector<1x32xi1>, vector<1x32xf32>
    %cst_216 = arith.constant 1.000000e+00 : f32
    %469 = vector.broadcast %cst_216 : f32 to vector<1x32xf32>
    %470 = arith.addf %469, %468 : vector<1x32xf32>
    %471 = arith.mulf %433, %470 : vector<1x32xf32>
    %c0_217 = arith.constant 0 : index
    %c0_218 = arith.constant 0 : index
    %472 = vector.load %arg22[%c0_217, %c0_218] : memref<32x3xf32, #tpu.memory_space<vmem>>, vector<32x3xf32>
    %cst_219 = arith.constant dense<0.000000e+00> : vector<1x3xf32>
    %473 = tpu.matmul %471, %472, %cst_219 {dimension_numbers = #tpu.dot_dimension_numbers<[1], [0], [0], [1], [0, 0, 1, 1], [], []>} : vector<1x32xf32>, vector<32x3xf32>, vector<1x3xf32> -> vector<1x3xf32>
    %c0_220 = arith.constant 0 : index
    %c0_221 = arith.constant 0 : index
    %474 = vector.load %arg23[%c0_220, %c0_221] : memref<1x3xf32, #tpu.memory_space<vmem>>, vector<1x3xf32>
    %475 = arith.addf %473, %474 : vector<1x3xf32>
    %c0_222 = arith.constant 0 : index
    %c0_223 = arith.constant 0 : index
    %c0_224 = arith.constant 0 : index
    %476 = vector.load %arg24[%c0_222, %c0_223, %c0_224] : memref<1x1x3xf32, #tpu.memory_space<vmem>>, vector<1x1x3xf32>
    %477 = vector.shape_cast %476 : vector<1x1x3xf32> to vector<1x3xf32>
    %478 = vector.shape_cast %475 : vector<1x3xf32> to vector<1x1x3xf32>
    tpu.vector_store %arg24[%c0_222, %c0_223, %c0_224], %478 {strides = array<i32>} : memref<1x1x3xf32, #tpu.memory_space<vmem>>, vector<1x1x3xf32>,
    return
  }
  func.func @transform_0(%arg0: i32) -> (i32, i32, i32) {
    %c0_i32 = arith.constant 0 : i32
    %c0_i32_0 = arith.constant 0 : i32
    %c0_i32_1 = arith.constant 0 : i32
    return %arg0, %c0_i32, %c0_i32_0 : i32, i32, i32
  }
  func.func @transform_1(%arg0: i32) -> (i32, i32) {
    %c0_i32 = arith.constant 0 : i32
    %c0_i32_0 = arith.constant 0 : i32
    %c0_i32_1 = arith.constant 0 : i32
    return %c0_i32, %c0_i32_0 : i32, i32
  }
  func.func @transform_2(%arg0: i32) -> (i32, i32) {
    %c0_i32 = arith.constant 0 : i32
    %c0_i32_0 = arith.constant 0 : i32
    %c0_i32_1 = arith.constant 0 : i32
    return %c0_i32, %c0_i32_0 : i32, i32
  }
  func.func @transform_3(%arg0: i32) -> (i32, i32) {
    %c0_i32 = arith.constant 0 : i32
    %c0_i32_0 = arith.constant 0 : i32
    %c0_i32_1 = arith.constant 0 : i32
    return %c0_i32, %c0_i32_0 : i32, i32
  }
  func.func @transform_4(%arg0: i32) -> (i32, i32) {
    %c0_i32 = arith.constant 0 : i32
    %c0_i32_0 = arith.constant 0 : i32
    %c0_i32_1 = arith.constant 0 : i32
    return %c0_i32, %c0_i32_0 : i32, i32
  }
  func.func @transform_5(%arg0: i32) -> (i32, i32, i32) {
    %c0_i32 = arith.constant 0 : i32
    %c0_i32_0 = arith.constant 0 : i32
    %c0_i32_1 = arith.constant 0 : i32
    %c0_i32_2 = arith.constant 0 : i32
    return %c0_i32, %c0_i32_0, %c0_i32_1 : i32, i32, i32
  }
  func.func @transform_6(%arg0: i32) -> (i32, i32, i32) {
    %c0_i32 = arith.constant 0 : i32
    %c0_i32_0 = arith.constant 0 : i32
    %c0_i32_1 = arith.constant 0 : i32
    %c0_i32_2 = arith.constant 0 : i32
    return %c0_i32, %c0_i32_0, %c0_i32_1 : i32, i32, i32
  }
  func.func @transform_7(%arg0: i32) -> (i32, i32, i32) {
    %c0_i32 = arith.constant 0 : i32
    %c0_i32_0 = arith.constant 0 : i32
    %c0_i32_1 = arith.constant 0 : i32
    %c0_i32_2 = arith.constant 0 : i32
    return %c0_i32, %c0_i32_0, %c0_i32_1 : i32, i32, i32
  }
  func.func @transform_8(%arg0: i32) -> (i32, i32, i32) {
    %c0_i32 = arith.constant 0 : i32
    %c0_i32_0 = arith.constant 0 : i32
    %c0_i32_1 = arith.constant 0 : i32
    %c0_i32_2 = arith.constant 0 : i32
    return %c0_i32, %c0_i32_0, %c0_i32_1 : i32, i32, i32
  }
  func.func @transform_9(%arg0: i32) -> (i32, i32, i32) {
    %c0_i32 = arith.constant 0 : i32
    %c0_i32_0 = arith.constant 0 : i32
    %c0_i32_1 = arith.constant 0 : i32
    %c0_i32_2 = arith.constant 0 : i32
    return %c0_i32, %c0_i32_0, %c0_i32_1 : i32, i32, i32
  }
  func.func @transform_10(%arg0: i32) -> (i32, i32, i32) {
    %c0_i32 = arith.constant 0 : i32
    %c0_i32_0 = arith.constant 0 : i32
    %c0_i32_1 = arith.constant 0 : i32
    %c0_i32_2 = arith.constant 0 : i32
    return %c0_i32, %c0_i32_0, %c0_i32_1 : i32, i32, i32
  }
  func.func @transform_11(%arg0: i32) -> (i32, i32, i32) {
    %c0_i32 = arith.constant 0 : i32
    %c0_i32_0 = arith.constant 0 : i32
    %c0_i32_1 = arith.constant 0 : i32
    %c0_i32_2 = arith.constant 0 : i32
    return %c0_i32, %c0_i32_0, %c0_i32_1 : i32, i32, i32
  }
  func.func @transform_12(%arg0: i32) -> (i32, i32, i32) {
    %c0_i32 = arith.constant 0 : i32
    %c0_i32_0 = arith.constant 0 : i32
    %c0_i32_1 = arith.constant 0 : i32
    %c0_i32_2 = arith.constant 0 : i32
    return %c0_i32, %c0_i32_0, %c0_i32_1 : i32, i32, i32
  }
  func.func @transform_13(%arg0: i32) -> (i32, i32, i32) {
    %c0_i32 = arith.constant 0 : i32
    %c0_i32_0 = arith.constant 0 : i32
    %c0_i32_1 = arith.constant 0 : i32
    %c0_i32_2 = arith.constant 0 : i32
    return %c0_i32, %c0_i32_0, %c0_i32_1 : i32, i32, i32
  }
  func.func @transform_14(%arg0: i32) -> (i32, i32, i32) {
    %c0_i32 = arith.constant 0 : i32
    %c0_i32_0 = arith.constant 0 : i32
    %c0_i32_1 = arith.constant 0 : i32
    %c0_i32_2 = arith.constant 0 : i32
    return %c0_i32, %c0_i32_0, %c0_i32_1 : i32, i32, i32
  }
  func.func @transform_15(%arg0: i32) -> (i32, i32, i32) {
    %c0_i32 = arith.constant 0 : i32
    %c0_i32_0 = arith.constant 0 : i32
    %c0_i32_1 = arith.constant 0 : i32
    %c0_i32_2 = arith.constant 0 : i32
    return %c0_i32, %c0_i32_0, %c0_i32_1 : i32, i32, i32
  }
  func.func @transform_16(%arg0: i32) -> (i32, i32, i32) {
    %c0_i32 = arith.constant 0 : i32
    %c0_i32_0 = arith.constant 0 : i32
    %c0_i32_1 = arith.constant 0 : i32
    %c0_i32_2 = arith.constant 0 : i32
    return %c0_i32, %c0_i32_0, %c0_i32_1 : i32, i32, i32
  }
  func.func @transform_17(%arg0: i32) -> (i32, i32) {
    %c0_i32 = arith.constant 0 : i32
    %c0_i32_0 = arith.constant 0 : i32
    %c0_i32_1 = arith.constant 0 : i32
    return %c0_i32, %c0_i32_0 : i32, i32
  }
  func.func @transform_18(%arg0: i32) -> (i32, i32) {
    %c0_i32 = arith.constant 0 : i32
    %c0_i32_0 = arith.constant 0 : i32
    %c0_i32_1 = arith.constant 0 : i32
    return %c0_i32, %c0_i32_0 : i32, i32
  }
  func.func @transform_19(%arg0: i32) -> (i32, i32) {
    %c0_i32 = arith.constant 0 : i32
    %c0_i32_0 = arith.constant 0 : i32
    %c0_i32_1 = arith.constant 0 : i32
    return %c0_i32, %c0_i32_0 : i32, i32
  }
  func.func @transform_20(%arg0: i32) -> (i32, i32) {
    %c0_i32 = arith.constant 0 : i32
    %c0_i32_0 = arith.constant 0 : i32
    %c0_i32_1 = arith.constant 0 : i32
    return %c0_i32, %c0_i32_0 : i32, i32
  }
  func.func @transform_21(%arg0: i32) -> (i32, i32) {
    %c0_i32 = arith.constant 0 : i32
    %c0_i32_0 = arith.constant 0 : i32
    %c0_i32_1 = arith.constant 0 : i32
    return %c0_i32, %c0_i32_0 : i32, i32
  }
  func.func @transform_22(%arg0: i32) -> (i32, i32) {
    %c0_i32 = arith.constant 0 : i32
    %c0_i32_0 = arith.constant 0 : i32
    %c0_i32_1 = arith.constant 0 : i32
    return %c0_i32, %c0_i32_0 : i32, i32
  }
  func.func @transform_23(%arg0: i32) -> (i32, i32, i32) {
    %c0_i32 = arith.constant 0 : i32
    %c0_i32_0 = arith.constant 0 : i32
    %c0_i32_1 = arith.constant 0 : i32
    return %arg0, %c0_i32, %c0_i32_0 : i32, i32, i32
  }
}

</mosaic_0001>

<bundles_post_ra>
// kernel: vit_forward.1
= control target key start
LH: loop header
LB: loop body
LE: loop exit
PB: predicated region body
PF: predicated region fallthrough
CT: control target
= control target key end

     0   :  { %s7314_s0 = inlined_call_operand.vmem [shape: f32[2,17,48], index: 0, kind: input, shape index: {}]   ;;  %s7315_s1 = inlined_call_operand.vmem [shape: f32[48,32], index: 1, kind: input, shape index: {}]   ;;  %s7316_s2 = inlined_call_operand.vmem [shape: f32[1,32], index: 2, kind: input, shape index: {}]   ;;  %s7317_s3 = inlined_call_operand.vmem [shape: f32[1,32], index: 3, kind: input, shape index: {}]   ;;  %s7318_s4 = inlined_call_operand.vmem [shape: f32[17,32], index: 4, kind: input, shape index: {}]   ;;  %s7319_s5 = inlined_call_operand.vmem [shape: f32[2,1,32], index: 5, kind: input, shape index: {}]   ;;  %s7320_s6 = inlined_call_operand.vmem [shape: f32[2,1,32], index: 6, kind: input, shape index: {}]   ;;  %s7321_s7 = inlined_call_operand.vmem [shape: f32[2,32,96], index: 7, kind: input, shape index: {}]   ;;  %s7322_s8 = inlined_call_operand.vmem [shape: f32[2,1,96], index: 8, kind: input, shape index: {}]   ;;  %s7323_s9 = inlined_call_operand.vmem [shape: f32[2,32,32], index: 9, kind: input, shape index: {}]   ;;  %s7324_s10 = inlined_call_operand.vmem [shape: f32[2,1,32], index: 10, kind: input, shape index: {}]   ;;  %s7325_s11 = inlined_call_operand.vmem [shape: f32[2,1,32], index: 11, kind: input, shape index: {}]   ;;  %s7326_s12 = inlined_call_operand.vmem [shape: f32[2,1,32], index: 12, kind: input, shape index: {}]   ;;  %s7327_s13 = inlined_call_operand.vmem [shape: f32[2,32,64], index: 13, kind: input, shape index: {}]   ;;  %s7328_s14 = inlined_call_operand.vmem [shape: f32[2,1,64], index: 14, kind: input, shape index: {}]   ;;  %s7329_s15 = inlined_call_operand.vmem [shape: f32[2,64,32], index: 15, kind: input, shape index: {}]   ;;  %s7330_s16 = inlined_call_operand.vmem [shape: f32[2,1,32], index: 16, kind: input, shape index: {}]   ;;  %s7331_s17 = inlined_call_operand.vmem [shape: f32[1,32], index: 17, kind: input, shape index: {}]   ;;  %s7332_s18 = inlined_call_operand.vmem [shape: f32[1,32], index: 18, kind: input, shape index: {}]   ;;  %s7333_s19 = inlined_call_operand.vmem [shape: f32[32,32], index: 19, kind: input, shape index: {}]   ;;  %s7334_s20 = inlined_call_operand.vmem [shape: f32[1,32], index: 20, kind: input, shape index: {}]   ;;  %s7335_s21 = inlined_call_operand.vmem [shape: f32[32,3], index: 21, kind: input, shape index: {}]   ;;  %s7336_s22 = inlined_call_operand.vmem [shape: f32[1,3], index: 22, kind: input, shape index: {}]   ;;  %s7337_s23 = inlined_call_operand.hbm [shape: f32[2,1,3], index: 23, kind: output, shape index: {}]  }
   0x1   :  { %7373 = sst [smem:[#allocation10_spill]] %s7314_s0 }
   0x2   :  { %7374 = sst [smem:[#allocation11_spill]] %s7315_s1 }
   0x3   :  { %7375 = sst [smem:[#allocation12_spill]] %s7316_s2 }
   0x4   :  { %7376 = sst [smem:[#allocation13_spill]] %s7317_s3 }
   0x5   :  { %7377 = sst [smem:[#allocation14_spill]] %s7318_s4 }
   0x6   :  { %7378 = sst [smem:[#allocation15_spill]] %s7319_s5 }
   0x7   :  { %7379 = sst [smem:[#allocation16_spill]] %s7320_s6 }
   0x8   :  { %7380 = sst [smem:[#allocation17_spill]] %s7321_s7 }
   0x9   :  { %7381 = sst [smem:[#allocation18_spill]] %s7322_s8 }
   0xa   :  { %7382 = sst [smem:[#allocation19_spill]] %s7323_s9 }
   0xb   :  { %28 = vsyncpa [#allocation3], 0 }
   0xc   :  { %30 = vsyncpa [#allocation3 + $0x1], 0  ;;  %s6276_s4 = smov 0   ;;  %s6278_s30 = smov 0  }
   0xd   :  { %s6280_s24 = smov 0   ;;  %s6282_s25 = smov 0  }
   0xe LB: > { %7383 = sst [smem:[#allocation5_spill]] %s6127_s4  ;;  %s6297_s5 = sadd.s32 4294967295, %s6139_s25   ;;  %s6139_s25 = sphi %s6282_s25, %s7416_s25   ;;  %s6135_s24 = sphi %s6280_s24, %s7418_s24   ;;  %s6131_s30 = sphi %s6278_s30, %s7420_s30   ;;  %s6127_s4 = sphi %s6276_s4, %s7419_s4  }
   0xf   : > { %7384 = sst [smem:[#allocation6_spill]] %s6135_s24  ;;  %s4803_s1 = sadd.s32 4294967294, %s6139_s25  }
  0x10   : > { %s6301_s26 = sadd.s32 1, %s6139_s25   ;;  %s531_s2 = sadd.s32 1, %s6135_s24 }
  0x11   : > { %7385 = sst [smem:[#allocation7_spill]] %s6301_s26  ;;  %s528_s6 = ssub.s32 %s6139_s25, %s6301_s26 }
  0x12   : > { %p541_p0 = scmp.ne.s32.totalorder %s6135_s24, %s6131_s30  ;;  %p529_p1 = scmp.eq.s32.totalorder %s528_s6, 0 }
  0x13   : > { %p542_p2 = scmp.eq.s32.totalorder %s6297_s5, 1  ;;  %p547_p3 = scmp.ne.s32.totalorder %s6131_s30, %s6127_s4 }
  0x14   : > { %p548_p4 = scmp.eq.s32.totalorder %s4803_s1, 1  ;;  %p4806_p7 = scmp.ge.s32.totalorder %s6139_s25, 1 }
  0x15   : > { %s6312_s27 = scalar_select %p529_p1, %s6135_s24, %s531_s2  }
  0x16   : > { %p6314_p5 = por %p542_p2, %p541_p0  ;;  %p6318_p6 = por %p548_p4, %p547_p3 }
  0x17   : > { %7386 = sst [smem:[#allocation8_spill]] %s6312_s27  ;;  %p640_p8 = scmp.lt.s32.totalorder %s6139_s25, 3 }
  0x18   : > { %s7388_s28 = scalar_select %p6318_p6, 1, 0 }
  0x19   : > { %p641_p9 = pnand %p4806_p7, %p640_p8 }
  0x1a   : > { %7389 = sst [smem:[#allocation9_spill]] %s7388_s28  ;;  %s7390_s0 = sld [smem:[#allocation11_spill]] (!%p641_p9)  ;;  %v6141_v3 = vmov (!%p641_p9), 0.0|0.0   ;;  %vm6142_vm0 = vmmov (!%p641_p9), 0   ;;  %v6143_v6 = vmov (!%p641_p9), 0.0   ;;  %vm724_vm1 = vcmask (!%p641_p9), 392192  }
  0x1b   : > { %644 = sbr.rel (%p641_p9) target bundleno = 8537 (0x2159), region = 112  ;;  %5668 = vmatprep.subr.bf16.mxu0 (!%p641_p9), %v6141_v3  ;;  %5191 = vmatprep.mubr.msk.f32.mxu0 (!%p641_p9), %vm6142_vm0, %v6143_v6  ;;  %p703_p10 = scmp.lt.s32.totalorder (!%p641_p9), %s6297_s5, 1  ;;  %v719_v14 = vlaneseq (!%p641_p9)  ;;  %vm843_vm3 = vcmask (!%p641_p9), 261120   ;;  %vm850_vm4 = vcmask (!%p641_p9), 253952   ;;  %vm1016_vm5 = vcmask (!%p641_p9), 64512  }
  0x1c   : > { %5677 = vmatprep.subr.bf16.mxu1 (!%p641_p9), %v6141_v3  ;;  %5208 = vmatprep.mubr.msk.f32.mxu1 (!%p641_p9), %vm6142_vm0, %v6143_v6  ;;  %s7391_s28 = sld [smem:[#allocation10_spill]] (!%p641_p9)  ;;  %s7392_s29 = sld [smem:[#allocation12_spill]] (!%p641_p9)  ;;  %vm6453_vm6 = vmpackc.low (!%p641_p9), %vm1016_vm5, %vm1016_vm5  ;;  %vm1112_vm7 = vcmask (!%p641_p9), 138240   ;;  %vm1119_vm8 = vcmask (!%p641_p9), 131072   ;;  %vm1164_vm9 = vcmask (!%p641_p9), 1040384   ;;  %vm2594_vm11 = vcmask (!%p641_p9), 523264  }
  0x1d   : > { %v720_v15 = vshrl.u32 (!%p641_p9), %v719_v14, 7  ;;  %s7393_s26 = sld [smem:[#allocation13_spill]] (!%p641_p9)  ;;  %s7394_s2 = sld [smem:[#allocation14_spill]] (!%p641_p9) }
  0x1e   : > { %s7399_s8 = sld [smem:[#allocation18_spill]] (!%p641_p9)  ;;  %s7368_s24 = smov (!%p641_p9), 96  }
  0x1f   : > { %v721_v18 = vsub.s32 (!%p641_p9), 0, %v720_v15  ;;  %vm832_vm2 = vcmp.eq.s32.totalorder (!%p641_p9), %v720_v15, 0  ;;  %s7366_s6 = smov (!%p641_p9), 88   ;;  %s7352_s3 = smov (!%p641_p9), 80  }
  0x20   : > { %v712_v0 = vld [vmem:[%s7390_s0] sm:$0xff] (!%p641_p9)  ;;  %v713_v1 = vld [vmem:[%s7390_s0 + $0x8] sm:$0xff] (!%p641_p9)  ;;  %v714_v2 = vld [vmem:[%s7390_s0 + $0x10] sm:$0xff] (!%p641_p9)  ;;  %s7402_s9 = sld [smem:[#allocation19_spill]] (!%p641_p9) }
  0x21   : > { %v5669_v4 = vpack.c.bf16 (!%p641_p9), %v713_v1, %v712_v0  ;;  %v715_v5 = vld [vmem:[%s7390_s0 + $0x18] sm:$0xff] (!%p641_p9)  ;;  %v716_v8 = vld [vmem:[%s7390_s0 + $0x20] sm:$0xff] (!%p641_p9)  ;;  %v717_v9 = vld [vmem:[%s7390_s0 + $0x28] sm:$0xff] (!%p641_p9)  ;;  %s7406_s0 = smov (!%p641_p9), 64  }
  0x22   : > { %v5672_v7 = vpack.c.bf16 %v715_v5, %v714_v2  ;;  %s704_s27 = scalar_select %p703_p10, %s6297_s5, 1  ;;  %v5675_v10 = vpack.c.bf16 %v717_v9, %v716_v8  ;;  %v711_v16 = vld [vmem:[%s7392_s29] sm:$0x1] }
  0x23   : > { %5670 = vmatpush3.bf16.msra.mxu0 %v5669_v4  ;;  %v818_v17 = vld [vmem:[%s7393_s26] sm:$0x1]  ;;  %v722_v20 = vrot.slane %v711_v16, %v721_v18  ;;  %v827_v29 = vld [vmem:[%s7394_s2 + $0x8] sm:$0xff]  ;;  %v828_v36 = vld [vmem:[%s7394_s2 + $0x10] sm:$0x1]  ;;  %s7395_s26 = sld [smem:[#allocation17_spill]] }
  0x24   : > { %5671 = vmatprep.subr.bf16.mxu0 %v6141_v3  ;;  %s5793_s1 = smul.u32 24, %s704_s27  ;;  %v819_v19 = vsub.f32 %v818_v17, %v711_v16  ;;  %v826_v23 = vld [vmem:[%s7394_s2] sm:$0xff]  ;;  %s7398_s27 = sld [smem:[#allocation16_spill]] }
  0x25   : > { %s7354_s29 = smov 56   ;;  %s7407_s2 = smov 56  }
  0x26   : > { %s707_s4 = scalar_lea.vmem %s7391_s28, %s5793_s1  ;;  %v824_v21 = vrot.slane %v819_v19, %v721_v18  ;;  %s7348_s28 = smov 64  }
  0x27   : > { %5673 = vmatpush3.bf16.msra.mxu0 %v5672_v7  ;;  %v708_v11 = vld [vmem:[%s707_s4] sm:$0xff]  ;;  %v709_v12 = vld [vmem:[%s707_s4 + $0x8] sm:$0xff]  ;;  %v710_v13 = vld [vmem:[%s707_s4 + $0x10] sm:$0x1]  ;;  %s7396_s4 = sld [smem:[#allocation15_spill]] }
  0x28   : > { %5674 = vmatprep.subr.bf16.mxu0 %v6141_v3  ;;  %v835_v26 = vsel %vm832_vm2, %v824_v21, 0.0  ;;  %vm4733_vm2 = vcmask 16384  }
  0x29   : > { %v903_v57 = vld [vmem:[%s7395_s26] sm:$0xff]  ;;  %v904_v58 = vld [vmem:[%s7395_s26 + $0x8] sm:$0xff]  ;;  %v905_v59 = vld [vmem:[%s7395_s26 + $0x10] sm:$0xff] }
  0x2a   : > { %v5678_v60 = vpack.c.bf16 %v904_v58, %v903_v57  ;;  %v906_v61 = vld [vmem:[%s7395_s26 + $0x18] sm:$0xff] }
  0x2b   : > { %5676 = vmatpush3.bf16.msra.mxu0 %v5675_v10  ;;  %v5681_v62 = vpack.c.bf16 %v906_v61, %v905_v59 }
  0x2c   : > { %5687 = vmatprep.subr.bf16.mxu0 %v6141_v3  ;;  %5679 = vmatpush3.bf16.msra.mxu1 %v5678_v60 }
  0x2d   : > { %5680 = vmatprep.subr.bf16.mxu1 %v6141_v3  ;;  %s7397_s1 = smov %s7396_s4 }
  0x2e   : > { %5192 = vmatmul.mubr.msk.f32.vlgmr.msra.gmra.mrb[0].mxu0 %vm724_vm1, %v708_v11  ;;  %v4811_v11 = vld [vmem:[%s7396_s4] ss:$0 sm:$0xff]  ;;  %s7356_s4 = smov 120  }
  0x2f   : > { %5194 = vmatprep.mubr.msk.f32.mxu0 %vm6142_vm0, %v6143_v6 }
  0x30   : > { %5682 = vmatpush3.bf16.msra.mxu1 %v5681_v62 }
  0x31   : > { %5683 = vmatprep.subr.bf16.mxu1 %v6141_v3 }
  0x32   : > { %5195 = vmatmul.mubr.msk.f32.gmra.mrb[2].mxu0 %vm724_vm1, %v709_v12 }
  0x33   : > { %5197 = vmatprep.mubr.msk.f32.mxu0 %vm6142_vm0, %v6143_v6 }
  0x36   : > { %5198 = vmatmul.mubr.msk.f32.gmra.mrb[4].mxu0 %vm724_vm1, %v710_v13  ;;  %v4812_v13 = vld [vmem:[%s7398_s27] ss:$0 sm:$0xff] }
  0x37   : > { %5238 = vmatprep.mubr.msk.f32.mxu0 %vm6142_vm0, %v6143_v6 }
 0x101   : > { %v800_v22 = vpop.f32.mrb[0].mxu0 }
 0x102   : > { %v801_v24 = vadd.f32 %v800_v22, %v722_v20  ;;  %v5193_v25 = vpop.f32.mrb[1].mxu0 }
 0x104   : > { %v829_v27 = vadd.f32 %v826_v23, %v801_v24 }
 0x105   : > { %v805_v28 = vpop.f32.mrb[2].mxu0 }
 0x106   : > { %v806_v30 = vadd.f32 %v805_v28, %v722_v20  ;;  %v5196_v31 = vpop.f32.mrb[3].mxu0  ;;  %v6374_v32 = vadd.f32 %v835_v26, %v829_v27  ;;  %v4813_v26 = vld [vmem:[%s7399_s8] ss:$0 sm:$0xff] }
 0x108   : > { %v6376_v33 = vadd.f32 %v827_v29, %v806_v30  ;;  %v844_v34 = vsel %vm843_vm3, %v6374_v32, 0.0 }
 0x109   : > { %845 = vadd.xlane.f32.xlu0 %v844_v34  ;;  %v810_v35 = vpop.f32.mrb[4].mxu0 }
 0x10a   : > { %v811_v37 = vadd.f32 %v810_v35, %v722_v20  ;;  %v847_v38 = vsel %vm843_vm3, %v6376_v33, 0.0  ;;  %v5199_v39 = vpop.f32.mrb[5].mxu0 }
 0x10c   : > { %v6385_v40 = vadd.f32 %v828_v36, %v811_v37 }
 0x10d   : > { %848 = vadd.xlane.f32.xlu0 %v847_v38 }
 0x10e   : > { %v851_v41 = vsel %vm850_vm4, %v6385_v40, 0.0 }
 0x10f   : > { %852 = vadd.xlane.f32.xlu1 %v851_v41 }
 0x196   : > { %v846_v42 = vpop.xlane.xlu0 %845 }
 0x197   : > { %v855_v43 = vmul.f32 0.03125, %v846_v42  ;;  %v4895_v42 = vld [vmem:[%s7402_s9 + $0x30] sm:$0xff] }
 0x199   : > { %v858_v44 = vsub.f32 %v6374_v32, %v855_v43 }
 0x19a   : > { %v849_v45 = vpop.xlane.xlu0 %848 }
 0x19b   : > { %v856_v46 = vmul.f32 0.03125, %v849_v45  ;;  %v861_v47 = vmul.f32 %v858_v44, %v858_v44 }
 0x19c   : > { %v853_v48 = vpop.xlane.xlu1 %852 }
 0x19d   : > { %v859_v49 = vsub.f32 %v6376_v33, %v856_v46  ;;  %v857_v50 = vmul.f32 0.03125, %v853_v48  ;;  %v864_v51 = vsel %vm843_vm3, %v861_v47, 0.0 }
 0x19e   : > { %865 = vadd.xlane.f32.xlu1 %v864_v51 }
 0x19f   : > { %v860_v52 = vsub.f32 %v6385_v40, %v857_v50  ;;  %v862_v53 = vmul.f32 %v859_v49, %v859_v49 }
 0x1a1   : > { %v867_v54 = vsel %vm843_vm3, %v862_v53, 0.0  ;;  %v863_v55 = vmul.f32 %v860_v52, %v860_v52 }
 0x1a2   : > { %868 = vadd.xlane.f32.xlu0 %v867_v54 }
 0x1a3   : > { %v870_v56 = vsel %vm850_vm4, %v863_v55, 0.0 }
 0x1a4   : > { %871 = vadd.xlane.f32.xlu1 %v870_v56 }
 0x22b   : > { %v866_v63 = vpop.xlane.xlu1 %865 }
 0x22c   : > { %v873_v0 = vmul.f32 0.03125, %v866_v63 }
 0x22e   : > { %v876_v1 = vadd.f32 1e-05, %v873_v0 }
 0x22f   : > { %v869_v2 = vpop.xlane.xlu0 %868 }
 0x230   : > { %5927 = vrsqrt.f32 %v876_v1  ;;  %v874_v4 = vmul.f32 0.03125, %v869_v2 }
 0x231   : > { %v872_v5 = vpop.xlane.xlu1 %871 }
 0x232   : > { %v877_v7 = vadd.f32 1e-05, %v874_v4  ;;  %v875_v8 = vmul.f32 0.03125, %v872_v5 }
 0x234   : > { %5929 = vrsqrt.f32 %v877_v7  ;;  %v878_v9 = vadd.f32 1e-05, %v875_v8 }
 0x236   : > { %5931 = vrsqrt.f32 %v878_v9 }
 0x23a   : > { %v5928_v10 = vpop.eup %5927 }
 0x23b   : > { %v882_v12 = vmul.f32 %v5928_v10, %v858_v44 }
 0x23d   : > { %v891_v14 = vmul.f32 %v4811_v11, %v882_v12 }
 0x23e   : > { %v5930_v15 = vpop.eup %5929 }
 0x23f   : > { %v900_v16 = vadd.f32 %v4812_v13, %v891_v14  ;;  %v883_v17 = vmul.f32 %v5930_v15, %v859_v49 }
 0x240   : > { %v5932_v18 = vpop.eup %5931 }
 0x241   : > { %5209 = vmatmul.mubr.msk.f32.vlgmr.msra.gmra.mrb[0].mxu1 %vm843_vm3, %v900_v16  ;;  %v892_v19 = vmul.f32 %v4811_v11, %v883_v17  ;;  %v884_v20 = vmul.f32 %v5932_v18, %v860_v52 }
 0x242   : > { %5211 = vmatprep.mubr.msk.f32.mxu1 %vm6142_vm0, %v6143_v6 }
 0x243   : > { %v901_v21 = vadd.f32 %v4812_v13, %v892_v19  ;;  %v893_v22 = vmul.f32 %v4811_v11, %v884_v20 }
 0x245   : > { %5212 = vmatmul.mubr.msk.f32.gmra.mrb[2].mxu1 %vm843_vm3, %v901_v21  ;;  %v902_v23 = vadd.f32 %v4812_v13, %v893_v22 }
 0x246   : > { %5214 = vmatprep.mubr.msk.f32.mxu1 %vm6142_vm0, %v6143_v6 }
 0x249   : > { %5215 = vmatmul.mubr.msk.f32.gmra.mrb[4].mxu1 %vm843_vm3, %v902_v23 }
 0x24a   : > { %5223 = vmatprep.mubr.msk.f32.mxu1 %vm6142_vm0, %v6143_v6 }
 0x314   : > { %v989_v24 = vpop.f32.mrb[0].mxu1 }
 0x315   : > { %v5210_v25 = vpop.f32.mrb[1].mxu1  ;;  %v6427_v28 = vadd.f32 %v4813_v26, %v989_v24 }
 0x318   : > { %v994_v27 = vpop.f32.mrb[2].mxu1 }
 0x319   : > { %v6429_v29 = vadd.f32 %v4813_v26, %v994_v27  ;;  %v5213_v30 = vpop.f32.mrb[3].mxu1 }
 0x31b   : > { %v6433_v31 = vpack.i.bf16 %v6429_v29, %v6427_v28 }
 0x31c   : > { %v999_v34 = vpop.f32.mrb[4].mxu1 }
 0x31d   : > { %v6435_v35 = vadd.f32 %v4813_v26, %v999_v34  ;;  %5848 = vrot.lane.b32.xlu0 %v6433_v31, %s7368_s24  ;;  %v5216_v36 = vpop.f32.mrb[5].mxu1 }
 0x31f   : > { %1014 = vrot.lane.b32.xlu1 %v6435_v35, %s7368_s24  ;;  %s7405_s24 = smov 120  }
 0x321   : > { %1247 = vrot.lane.b32.xlu0 %v6427_v28, %s7356_s4 }
 0x323   : > { %5853 = vrot.lane.b32.xlu1 %v6433_v31, %s7366_s6 }
 0x325   : > { %1251 = vrot.lane.b32.xlu0 %v6435_v35, %s7356_s4 }
 0x327   : > { %1257 = vrot.lane.b32.xlu1 %v6435_v35, %s7366_s6  ;;  %s7408_s6 = smov 80  }
 0x32b   : > { %1249 = vrot.lane.b32.xlu1 %v6429_v29, %s7356_s4  ;;  %s7364_s4 = smov 48  }
 0x38f   : > { %v5849_v37 = vpop.permute.xlu0 %5848 }
 0x390   : > { %v5851_v38 = vunpack.i.h.bf16 %v5849_v37  ;;  %v5850_v39 = vunpack.i.l.bf16 %v5849_v37 }
 0x391   : > { %v1015_v41 = vpop.permute.xlu1 %1014 }
 0x392   : > { %v5684_v43 = vpack.c.bf16 %v5851_v38, %v5850_v39 }
 0x393   : > { %v1248_v49 = vpop.permute.xlu0 %1247 }
 0x394   : > { %5686 = vmatpush3.bf16.xpose.msk.msra.mxu1 %vm6453_vm6, %v5684_v43 }
 0x395   : > { %5221 = vmatprep.subr.mxu1 %v6143_v6  ;;  %v5854_v44 = vpop.permute.xlu1 %5853 }
 0x396   : > { %v5856_v45 = vunpack.i.h.bf16 %v5854_v44  ;;  %v5855_v46 = vunpack.i.l.bf16 %v5854_v44 }
 0x397   : > { %v1252_v51 = vpop.permute.xlu0 %1251 }
 0x398   : > { %v5691_v47 = vpack.c.bf16 %v5856_v45, %v5855_v46 }
 0x399   : > { %v1258_v48 = vpop.permute.xlu1 %1257 }
 0x39c   : > { %5222 = vmatpush3.xpose.msk.msra.mxu1 %vm1016_vm5, %v1015_v41 }
 0x39d   : > { %5690 = vmatprep.subr.bf16.mxu1 %v6141_v3  ;;  %v1250_v50 = vpop.permute.xlu1 %1249 }
 0x39f   : > { %5224 = vmatmul.mubr.msk.f32.vlgmr.msra.gmra.mrb[6].mxu1 %vm1016_vm5, %v6427_v28 }
 0x3a0   : > { %5693 = vmatpush3.bf16.xpose.msk.msra.mxu1 %vm6453_vm6, %v5691_v47  ;;  %5226 = vmatprep.mubr.msk.f32.mxu1 %vm6142_vm0, %v6143_v6 }
 0x3a1   : > { %5251 = vmatprep.subr.mxu1 %v6143_v6 }
 0x3a3   : > { %5227 = vmatmul.mubr.msk.f32.gmra.mrb[8].mxu1 %vm1016_vm5, %v6429_v29 }
 0x3a4   : > { %5229 = vmatprep.mubr.msk.f32.mxu1 %vm6142_vm0, %v6143_v6 }
 0x3a7   : > { %5230 = vmatmul.mubr.msk.f32.gmra.mrb[10].mxu1 %vm1016_vm5, %v6435_v35 }
 0x3a8   : > { %5252 = vmatpush3.xpose.msk.msra.mxu1 %vm1016_vm5, %v1258_v48  ;;  %5253 = vmatprep.mubr.msk.f32.mxu1 %vm6142_vm0, %v6143_v6 }
 0x3a9   : > { %5277 = vmatprep.subr.mxu1 %v6143_v6 }
 0x3ab   : > { %5254 = vmatmul.mubr.msk.f32.vlgmr.msra.gmra.mrb[12].mxu1 %vm1016_vm5, %v1248_v49 }
 0x3ac   : > { %5256 = vmatprep.mubr.msk.f32.mxu1 %vm6142_vm0, %v6143_v6 }
 0x3af   : > { %5257 = vmatmul.mubr.msk.f32.gmra.mrb[14].mxu1 %vm1016_vm5, %v1250_v50 }
 0x3b0   : > { %5259 = vmatprep.mubr.msk.f32.mxu1 %vm6142_vm0, %v6143_v6 }
 0x3b3   : > { %5260 = vmatmul.mubr.msk.f32.gmra.mrb[16].mxu1 %vm1016_vm5, %v1252_v51 }
 0x3b4   : > { %5279 = vmatprep.mubr.msk.f32.mxu1 %vm6142_vm0, %v6143_v6 }
 0x472   : > { %v1095_v52 = vpop.f32.mrb[6].mxu1 }
 0x473   : > { %v1109_v53 = vmul.f32 0.35355338, %v1095_v52  ;;  %v5225_v54 = vpop.f32.mrb[7].mxu1 }
 0x475   : > { %v1113_v55 = vsel %vm1112_vm7, %v1109_v53, -inf }
 0x476   : > { %1114 = vmax.xlane.f32.xlu1 %v1113_v55  ;;  %v1100_v56 = vpop.f32.mrb[8].mxu1 }
 0x477   : > { %v1110_v57 = vmul.f32 0.35355338, %v1100_v56  ;;  %v5228_v58 = vpop.f32.mrb[9].mxu1 }
 0x479   : > { %v1116_v59 = vsel %vm1112_vm7, %v1110_v57, -inf }
 0x47a   : > { %1117 = vmax.xlane.f32.xlu0 %v1116_v59  ;;  %v1105_v60 = vpop.f32.mrb[10].mxu1 }
 0x47b   : > { %v1111_v61 = vmul.f32 0.35355338, %v1105_v60  ;;  %v5231_v62 = vpop.f32.mrb[11].mxu1 }
 0x47d   : > { %v1120_v63 = vsel %vm1119_vm8, %v1111_v61, -inf }
 0x47e   : > { %1121 = vmax.xlane.f32.xlu0 %v1120_v63  ;;  %v1337_v0 = vpop.f32.mrb[12].mxu1 }
 0x47f   : > { %v1351_v1 = vmul.f32 0.35355338, %v1337_v0  ;;  %v5255_v2 = vpop.f32.mrb[13].mxu1 }
 0x481   : > { %v1354_v4 = vsel %vm1112_vm7, %v1351_v1, -inf }
 0x482   : > { %1355 = vmax.xlane.f32.xlu0 %v1354_v4  ;;  %v1342_v5 = vpop.f32.mrb[14].mxu1 }
 0x483   : > { %v1352_v7 = vmul.f32 0.35355338, %v1342_v5  ;;  %v5258_v8 = vpop.f32.mrb[15].mxu1 }
 0x485   : > { %v1357_v9 = vsel %vm1112_vm7, %v1352_v7, -inf }
 0x486   : > { %1358 = vmax.xlane.f32.xlu1 %v1357_v9  ;;  %v1347_v10 = vpop.f32.mrb[16].mxu1 }
 0x487   : > { %v1353_v11 = vmul.f32 0.35355338, %v1347_v10  ;;  %v5261_v12 = vpop.f32.mrb[17].mxu1 }
 0x489   : > { %v1360_v13 = vsel %vm1119_vm8, %v1353_v11, -inf }
 0x48a   : > { %1361 = vmax.xlane.f32.xlu0 %v1360_v13 }
 0x497   : > { %1151 = vrot.lane.b32.xlu1 %v6435_v35, %s7348_s28 }
 0x4a0   : > { %5858 = vrot.lane.b32.xlu0 %v6433_v31, %s7348_s28  ;;  %s7350_s28 = smov 112  }
 0x503   : > { %v1115_v14 = vpop.xlane.xlu1 %1114 }
 0x504   : > { %v1123_v15 = vsub.f32 %v1109_v53, %v1115_v14 }
 0x506   : > { %v1126_v16 = vmul.f32 1.442695, %v1123_v15 }
 0x507   : > { %v1118_v17 = vpop.xlane.xlu0 %1117 }
 0x508   : > { %5933 = vpow2.f32 %v1126_v16  ;;  %v1124_v18 = vsub.f32 %v1110_v57, %v1118_v17 }
 0x50a   : > { %v1128_v19 = vmul.f32 1.442695, %v1124_v18  ;;  %v1003_v18 = vld [vmem:[%s7402_s9] sm:$0xff] }
 0x50b   : > { %v1122_v20 = vpop.xlane.xlu0 %1121 }
 0x50c   : > { %5935 = vpow2.f32 %v1128_v19  ;;  %v1125_v21 = vsub.f32 %v1111_v61, %v1122_v20  ;;  %v1004_v19 = vld [vmem:[%s7402_s9 + $0x8] sm:$0xff] }
 0x50d   : > { %5278 = vmatpush3.msra.mxu1 %v1004_v19 }
 0x50e   : > { %v1130_v22 = vmul.f32 1.442695, %v1125_v21  ;;  %5697 = vmatprep.subr.bf16.mxu1 %v6141_v3 }
 0x50f   : > { %v1356_v23 = vpop.xlane.xlu0 %1355 }
 0x510   : > { %5937 = vpow2.f32 %v1130_v22  ;;  %v1363_v24 = vsub.f32 %v1351_v1, %v1356_v23 }
 0x512   : > { %v5934_v25 = vpop.eup %5933  ;;  %v1366_v26 = vmul.f32 1.442695, %v1363_v24 }
 0x513   : > { %v1359_v27 = vpop.xlane.xlu1 %1358  ;;  %v1132_v30 = vsel %vm1112_vm7, %v5934_v25, 0.0 }
 0x514   : > { %5939 = vpow2.f32 %v1366_v26  ;;  %v1364_v34 = vsub.f32 %v1352_v7, %v1359_v27  ;;  %1133 = vadd.xlane.f32.xlu1 %v1132_v30 }
 0x516   : > { %v5936_v36 = vpop.eup %5935  ;;  %v1368_v37 = vmul.f32 1.442695, %v1364_v34 }
 0x517   : > { %v1362_v38 = vpop.xlane.xlu0 %1361  ;;  %v1135_v39 = vsel %vm1112_vm7, %v5936_v36, 0.0  ;;  %v1152_v53 = vpop.permute.xlu1 %1151 }
 0x518   : > { %5941 = vpow2.f32 %v1368_v37  ;;  %v1365_v41 = vsub.f32 %v1353_v11, %v1362_v38  ;;  %1136 = vadd.xlane.f32.xlu0 %v1135_v39 }
 0x51a   : > { %v5938_v43 = vpop.eup %5937  ;;  %v1370_v44 = vmul.f32 1.442695, %v1365_v41 }
 0x51b   : > { %v5859_v45 = vpop.permute.xlu0 %5858  ;;  %v1138_v46 = vsel %vm1119_vm8, %v5938_v43, 0.0 }
 0x51c   : > { %5943 = vpow2.f32 %v1370_v44  ;;  %v5861_v47 = vunpack.i.h.bf16 %v5859_v45  ;;  %v5860_v48 = vunpack.i.l.bf16 %v5859_v45  ;;  %1139 = vadd.xlane.f32.xlu1 %v1138_v46 }
 0x51e   : > { %v5940_v49 = vpop.eup %5939  ;;  %v5688_v50 = vpack.c.bf16 %v5861_v47, %v5860_v48 }
 0x51f   : > { %v1372_v51 = vsel %vm1112_vm7, %v5940_v49, 0.0 }
 0x520   : > { %1373 = vadd.xlane.f32.xlu0 %v1372_v51  ;;  %5689 = vmatpush3.bf16.msra.mxu0 %v5688_v50 }
 0x521   : > { %5236 = vmatprep.subr.mxu0 %v6143_v6 }
 0x522   : > { %v5942_v52 = vpop.eup %5941 }
 0x523   : > { %v1375_v54 = vsel %vm1112_vm7, %v5942_v52, 0.0 }
 0x524   : > { %1376 = vadd.xlane.f32.xlu1 %v1375_v54  ;;  %5237 = vmatpush3.msk.msra.mxu0 %vm1164_vm9, %v1152_v53 }
 0x525   : > { %5694 = vmatprep.subr.bf16.mxu0 %v6141_v3 }
 0x526   : > { %v5944_v55 = vpop.eup %5943 }
 0x527   : > { %v1378_v56 = vsel %vm1119_vm8, %v5944_v55, 0.0 }
 0x528   : > { %1379 = vadd.xlane.f32.xlu1 %v1378_v56 }
 0x536   : > { %1391 = vrot.lane.b32.xlu0 %v6435_v35, %s7354_s29 }
 0x539   : > { %5863 = vrot.lane.b32.xlu1 %v6433_v31, %s7354_s29  ;;  %s7358_s29 = smov 104  }
 0x53a   : > { %1674 = vrot.lane.b32.xlu0 %v6435_v35, %s7352_s3 }
 0x53d   : > { %5868 = vrot.lane.b32.xlu1 %v6433_v31, %s7352_s3  ;;  %s7404_s3 = smov 88  }
 0x53e   : > { %1666 = vrot.lane.b32.xlu0 %v6429_v29, %s7350_s28 }
 0x541   : > { %1664 = vrot.lane.b32.xlu1 %v6427_v28, %s7350_s28 }
 0x545   : > { %1668 = vrot.lane.b32.xlu1 %v6435_v35, %s7350_s28  ;;  %s7360_s28 = smov 72  }
 0x5a1   : > { %v1134_v57 = vpop.xlane.xlu1 %1133 }
 0x5a2   : > { %5945 = vrcp.f32 %v1134_v57 }
 0x5a5   : > { %v1137_v58 = vpop.xlane.xlu0 %1136 }
 0x5a6   : > { %5947 = vrcp.f32 %v1137_v58 }
 0x5a9   : > { %v1140_v59 = vpop.xlane.xlu1 %1139 }
 0x5aa   : > { %5949 = vrcp.f32 %v1140_v59 }
 0x5ac   : > { %v5946_v60 = vpop.eup %5945 }
 0x5ad   : > { %v1142_v61 = vmul.f32 %v5946_v60, %v5934_v25  ;;  %v1374_v63 = vpop.xlane.xlu0 %1373 }
 0x5ae   : > { %5951 = vrcp.f32 %v1374_v63 }
 0x5af   : > { %5239 = vmatmul.mubr.msk.f32.vlgmr.msra.gmra.mrb[6].mxu0 %vm1112_vm7, %v1142_v61 }
 0x5b0   : > { %v5948_v62 = vpop.eup %5947  ;;  %5241 = vmatprep.mubr.msk.f32.mxu0 %vm6142_vm0, %v6143_v6 }
 0x5b1   : > { %v1377_v0 = vpop.xlane.xlu1 %1376  ;;  %v1144_v1 = vmul.f32 %v5948_v62, %v5936_v36  ;;  %v1392_v13 = vpop.permute.xlu0 %1391 }
 0x5b2   : > { %5953 = vrcp.f32 %v1377_v0 }
 0x5b3   : > { %5242 = vmatmul.mubr.msk.f32.gmra.mrb[8].mxu0 %vm1112_vm7, %v1144_v1 }
 0x5b4   : > { %v5950_v2 = vpop.eup %5949  ;;  %5244 = vmatprep.mubr.msk.f32.mxu0 %vm6142_vm0, %v6143_v6 }
 0x5b5   : > { %v1380_v4 = vpop.xlane.xlu1 %1379  ;;  %v1146_v5 = vmul.f32 %v5950_v2, %v5938_v43  ;;  %v1675_v43 = vpop.permute.xlu0 %1674 }
 0x5b6   : > { %5955 = vrcp.f32 %v1380_v4 }
 0x5b7   : > { %5245 = vmatmul.mubr.msk.f32.gmra.mrb[10].mxu0 %vm1112_vm7, %v1146_v5 }
 0x5b8   : > { %5268 = vmatprep.mubr.msk.f32.mxu0 %vm6142_vm0, %v6143_v6  ;;  %v5952_v11 = vpop.eup %5951 }
 0x5b9   : > { %v5864_v7 = vpop.permute.xlu1 %5863  ;;  %v1382_v12 = vmul.f32 %v5952_v11, %v5940_v49  ;;  %v1667_v46 = vpop.permute.xlu0 %1666 }
 0x5ba   : > { %v5866_v8 = vunpack.i.h.bf16 %v5864_v7  ;;  %v5865_v9 = vunpack.i.l.bf16 %v5864_v7 }
 0x5bc   : > { %v5695_v10 = vpack.c.bf16 %v5866_v8, %v5865_v9  ;;  %v5954_v14 = vpop.eup %5953 }
 0x5bd   : > { %v1384_v15 = vmul.f32 %v5954_v14, %v5942_v52  ;;  %v5869_v26 = vpop.permute.xlu1 %5868 }
 0x5be   : > { %5696 = vmatpush3.bf16.msra.mxu0 %v5695_v10  ;;  %v5871_v27 = vunpack.i.h.bf16 %v5869_v26  ;;  %v5870_v30 = vunpack.i.l.bf16 %v5869_v26 }
 0x5bf   : > { %5266 = vmatprep.subr.mxu0 %v6143_v6 }
 0x5c0   : > { %v5956_v16 = vpop.eup %5955  ;;  %v5698_v34 = vpack.c.bf16 %v5871_v27, %v5870_v30 }
 0x5c1   : > { %v1386_v17 = vmul.f32 %v5956_v16, %v5944_v55  ;;  %v1665_v45 = vpop.permute.xlu1 %1664 }
 0x5c2   : > { %5267 = vmatpush3.msk.msra.mxu0 %vm1164_vm9, %v1392_v13 }
 0x5c3   : > { %5269 = vmatmul.mubr.msk.f32.vlgmr.msra.gmra.mrb[12].mxu0 %vm1112_vm7, %v1382_v12  ;;  %5288 = vmatprep.subr.mxu0 %v6143_v6 }
 0x5c4   : > { %5271 = vmatprep.mubr.msk.f32.mxu0 %vm6142_vm0, %v6143_v6  ;;  %5289 = vmatpush3.msra.mxu0 %v1003_v18 }
 0x5c5   : > { %5701 = vmatprep.subr.bf16.mxu0 %v6141_v3  ;;  %v1669_v47 = vpop.permute.xlu1 %1668 }
 0x5c7   : > { %5272 = vmatmul.mubr.msk.f32.gmra.mrb[14].mxu0 %vm1112_vm7, %v1384_v15 }
 0x5c8   : > { %5274 = vmatprep.mubr.msk.f32.mxu0 %vm6142_vm0, %v6143_v6 }
 0x5cb   : > { %5275 = vmatmul.mubr.msk.f32.gmra.mrb[16].mxu0 %vm1112_vm7, %v1386_v17 }
 0x5cc   : > { %5290 = vmatprep.mubr.msk.f32.mxu0 %vm6142_vm0, %v6143_v6 }
 0x682   : > { %v1233_v20 = vpop.f32.mrb[6].mxu0 }
 0x683   : > { %v5240_v21 = vpop.f32.mrb[7].mxu0  ;;  %5291 = vmatmul.mubr.msk.f32.vlgmr.msra.gmra.mrb[18].mxu0 %vm1016_vm5, %v1233_v20 }
 0x684   : > { %5293 = vmatprep.mubr.msk.f32.mxu0 %vm6142_vm0, %v6143_v6 }
 0x686   : > { %v1238_v22 = vpop.f32.mrb[8].mxu0 }
 0x687   : > { %v5243_v23 = vpop.f32.mrb[9].mxu0  ;;  %5294 = vmatmul.mubr.msk.f32.gmra.mrb[20].mxu0 %vm1016_vm5, %v1238_v22 }
 0x688   : > { %5296 = vmatprep.mubr.msk.f32.mxu0 %vm6142_vm0, %v6143_v6 }
 0x68a   : > { %v1243_v24 = vpop.f32.mrb[10].mxu0 }
 0x68b   : > { %v5246_v25 = vpop.f32.mrb[11].mxu0  ;;  %5297 = vmatmul.mubr.msk.f32.gmra.mrb[22].mxu0 %vm1016_vm5, %v1243_v24 }
 0x68c   : > { %5320 = vmatprep.mubr.msk.f32.mxu0 %vm6142_vm0, %v6143_v6 }
 0x696   : > { %v1472_v36 = vpop.f32.mrb[12].mxu0 }
 0x697   : > { %v5270_v37 = vpop.f32.mrb[13].mxu0  ;;  %5280 = vmatmul.mubr.msk.f32.vlgmr.msra.gmra.mrb[18].mxu1 %vm1016_vm5, %v1472_v36 }
 0x698   : > { %5700 = vmatpush3.bf16.xpose.msk.msra.mxu1 %vm6453_vm6, %v5698_v34  ;;  %5282 = vmatprep.mubr.msk.f32.mxu1 %vm6142_vm0, %v6143_v6 }
 0x699   : > { %5303 = vmatprep.subr.mxu1 %v6143_v6 }
 0x69a   : > { %v1477_v38 = vpop.f32.mrb[14].mxu0 }
 0x69b   : > { %v5273_v39 = vpop.f32.mrb[15].mxu0  ;;  %5283 = vmatmul.mubr.msk.f32.gmra.mrb[20].mxu1 %vm1016_vm5, %v1477_v38 }
 0x69c   : > { %5285 = vmatprep.mubr.msk.f32.mxu1 %vm6142_vm0, %v6143_v6 }
 0x69e   : > { %v1482_v41 = vpop.f32.mrb[16].mxu0 }
 0x69f   : > { %v5276_v44 = vpop.f32.mrb[17].mxu0  ;;  %5286 = vmatmul.mubr.msk.f32.gmra.mrb[22].mxu1 %vm1016_vm5, %v1482_v41 }
 0x6a0   : > { %5304 = vmatpush3.xpose.msk.msra.mxu1 %vm1016_vm5, %v1675_v43  ;;  %5305 = vmatprep.mubr.msk.f32.mxu1 %vm6142_vm0, %v6143_v6 }
 0x6a1   : > { %5329 = vmatprep.subr.mxu1 %v6143_v6 }
 0x6a3   : > { %5306 = vmatmul.mubr.msk.f32.vlgmr.msra.gmra.mrb[24].mxu1 %vm1016_vm5, %v1665_v45 }
 0x6a4   : > { %5308 = vmatprep.mubr.msk.f32.mxu1 %vm6142_vm0, %v6143_v6 }
 0x6a7   : > { %5309 = vmatmul.mubr.msk.f32.gmra.mrb[26].mxu1 %vm1016_vm5, %v1667_v46 }
 0x6a8   : > { %5311 = vmatprep.mubr.msk.f32.mxu1 %vm6142_vm0, %v6143_v6 }
 0x6ab   : > { %5312 = vmatmul.mubr.msk.f32.gmra.mrb[28].mxu1 %vm1016_vm5, %v1669_v47 }
 0x6ac   : > { %5331 = vmatprep.mubr.msk.f32.mxu1 %vm6142_vm0, %v6143_v6 }
 0x756   : > { %v1650_v48 = vpop.f32.mrb[18].mxu0 }
 0x757   : > { %v5292_v49 = vpop.f32.mrb[19].mxu0 }
 0x75a   : > { %v1655_v50 = vpop.f32.mrb[20].mxu0 }
 0x75b   : > { %v5295_v51 = vpop.f32.mrb[21].mxu0 }
 0x75e   : > { %v1660_v52 = vpop.f32.mrb[22].mxu0 }
 0x75f   : > { %v5298_v53 = vpop.f32.mrb[23].mxu0 }
 0x76a   : > { %v1561_v54 = vpop.f32.mrb[18].mxu1 }
 0x76b   : > { %v6582_v55 = vadd.f32 %v1650_v48, %v1561_v54  ;;  %v5281_v56 = vpop.f32.mrb[19].mxu1 }
 0x76e   : > { %v1566_v57 = vpop.f32.mrb[20].mxu1 }
 0x76f   : > { %v6584_v58 = vadd.f32 %v1655_v50, %v1566_v57  ;;  %v5284_v59 = vpop.f32.mrb[21].mxu1  ;;  %v1005_v57 = vld [vmem:[%s7402_s9 + $0x10] sm:$0xff] }
 0x770   : > { %5330 = vmatpush3.msra.mxu1 %v1005_v57 }
 0x771   : > { %5708 = vmatprep.subr.bf16.mxu1 %v6141_v3 }
 0x772   : > { %v1571_v60 = vpop.f32.mrb[22].mxu1 }
 0x773   : > { %v6586_v61 = vadd.f32 %v1660_v52, %v1571_v60  ;;  %v5287_v62 = vpop.f32.mrb[23].mxu1 }
 0x776   : > { %v1754_v63 = vpop.f32.mrb[24].mxu1 }
 0x777   : > { %v1768_v0 = vmul.f32 0.35355338, %v1754_v63  ;;  %v5307_v1 = vpop.f32.mrb[25].mxu1 }
 0x779   : > { %v1771_v2 = vsel %vm1112_vm7, %v1768_v0, -inf }
 0x77a   : > { %1772 = vmax.xlane.f32.xlu0 %v1771_v2  ;;  %v1759_v4 = vpop.f32.mrb[26].mxu1 }
 0x77b   : > { %v1769_v5 = vmul.f32 0.35355338, %v1759_v4  ;;  %v5310_v7 = vpop.f32.mrb[27].mxu1 }
 0x77d   : > { %v1774_v8 = vsel %vm1112_vm7, %v1769_v5, -inf }
 0x77e   : > { %1775 = vmax.xlane.f32.xlu1 %v1774_v8  ;;  %v1764_v9 = vpop.f32.mrb[28].mxu1 }
 0x77f   : > { %v1770_v10 = vmul.f32 0.35355338, %v1764_v9  ;;  %v5313_v11 = vpop.f32.mrb[29].mxu1 }
 0x781   : > { %v1777_v12 = vsel %vm1119_vm8, %v1770_v10, -inf }
 0x782   : > { %1778 = vmax.xlane.f32.xlu0 %v1777_v12 }
 0x78f   : > { %1808 = vrot.lane.b32.xlu1 %v6435_v35, %s7364_s4 }
 0x793   : > { %5878 = vrot.lane.b32.xlu1 %v6433_v31, %s7360_s28 }
 0x797   : > { %2005 = vrot.lane.b32.xlu1 %v6435_v35, %s7360_s28  ;;  %s7403_s28 = smov 96  }
 0x807   : > { %v1773_v13 = vpop.xlane.xlu0 %1772 }
 0x808   : > { %v1780_v14 = vsub.f32 %v1768_v0, %v1773_v13 }
 0x80a   : > { %v1783_v15 = vmul.f32 1.442695, %v1780_v14 }
 0x80b   : > { %v1776_v16 = vpop.xlane.xlu1 %1775 }
 0x80c   : > { %5957 = vpow2.f32 %v1783_v15  ;;  %v1781_v17 = vsub.f32 %v1769_v5, %v1776_v16 }
 0x80e   : > { %v1785_v18 = vmul.f32 1.442695, %v1781_v17 }
 0x80f   : > { %v1779_v19 = vpop.xlane.xlu0 %1778  ;;  %v1809_v30 = vpop.permute.xlu1 %1808 }
 0x810   : > { %5959 = vpow2.f32 %v1785_v18  ;;  %v1782_v20 = vsub.f32 %v1770_v10, %v1779_v19 }
 0x812   : > { %v1787_v21 = vmul.f32 1.442695, %v1782_v20 }
 0x813   : > { %v5879_v34 = vpop.permute.xlu1 %5878 }
 0x814   : > { %5961 = vpow2.f32 %v1787_v21  ;;  %v5881_v47 = vunpack.i.h.bf16 %v5879_v34  ;;  %v5880_v48 = vunpack.i.l.bf16 %v5879_v34 }
 0x816   : > { %v5958_v22 = vpop.eup %5957  ;;  %v5705_v51 = vpack.c.bf16 %v5881_v47, %v5880_v48 }
 0x817   : > { %v1789_v23 = vsel %vm1112_vm7, %v5958_v22, 0.0  ;;  %v2006_v37 = vpop.permute.xlu1 %2005 }
 0x818   : > { %1790 = vadd.xlane.f32.xlu0 %v1789_v23 }
 0x81a   : > { %v5960_v24 = vpop.eup %5959 }
 0x81b   : > { %v1792_v25 = vsel %vm1112_vm7, %v5960_v24, 0.0 }
 0x81c   : > { %1793 = vadd.xlane.f32.xlu0 %v1792_v25 }
 0x81e   : > { %v5962_v26 = vpop.eup %5961 }
 0x81f   : > { %v1795_v27 = vsel %vm1119_vm8, %v5962_v26, 0.0 }
 0x820   : > { %1796 = vadd.xlane.f32.xlu1 %v1795_v27 }
 0x831   : > { %1997 = vrot.lane.b32.xlu1 %v6429_v29, %s7358_s29 }
 0x832   : > { %5873 = vrot.lane.b32.xlu0 %v6433_v31, %s7364_s4  ;;  %s7409_s4 = smov 112  }
 0x836   : > { %1995 = vrot.lane.b32.xlu0 %v6427_v28, %s7358_s29 }
 0x83a   : > { %1999 = vrot.lane.b32.xlu0 %v6435_v35, %s7358_s29  ;;  %s7362_s29 = smov 40  }
 0x8a5   : > { %v1791_v36 = vpop.xlane.xlu0 %1790 }
 0x8a6   : > { %5963 = vrcp.f32 %v1791_v36 }
 0x8a9   : > { %v1794_v38 = vpop.xlane.xlu0 %1793 }
 0x8aa   : > { %5965 = vrcp.f32 %v1794_v38 }
 0x8ad   : > { %v1797_v39 = vpop.xlane.xlu1 %1796  ;;  %v5874_v41 = vpop.permute.xlu0 %5873 }
 0x8ae   : > { %v5876_v43 = vunpack.i.h.bf16 %v5874_v41  ;;  %v5875_v29 = vunpack.i.l.bf16 %v5874_v41  ;;  %5967 = vrcp.f32 %v1797_v39 }
 0x8b0   : > { %v5702_v44 = vpack.c.bf16 %v5876_v43, %v5875_v29  ;;  %v5964_v45 = vpop.eup %5963 }
 0x8b1   : > { %v1799_v28 = vmul.f32 %v5964_v45, %v5958_v22  ;;  %v1996_v53 = vpop.permute.xlu0 %1995  ;;  %v1998_v54 = vpop.permute.xlu1 %1997 }
 0x8b2   : > { %5703 = vmatpush3.bf16.msra.mxu0 %v5702_v44  ;;  %v1006_v44 = vld [vmem:[%s7402_s9 + $0x18] sm:$0xff] }
 0x8b3   : > { %5318 = vmatprep.subr.mxu0 %v6143_v6 }
 0x8b4   : > { %v5966_v46 = vpop.eup %5965 }
 0x8b5   : > { %v1801_v49 = vmul.f32 %v5966_v46, %v5960_v24  ;;  %v2000_v56 = vpop.permute.xlu0 %1999 }
 0x8b6   : > { %5319 = vmatpush3.msk.msra.mxu0 %vm1164_vm9, %v1809_v30 }
 0x8b7   : > { %5321 = vmatmul.mubr.msk.f32.vlgmr.msra.gmra.mrb[24].mxu0 %vm1112_vm7, %v1799_v28  ;;  %5704 = vmatprep.subr.bf16.mxu0 %v6141_v3 }
 0x8b8   : > { %5323 = vmatprep.mubr.msk.f32.mxu0 %vm6142_vm0, %v6143_v6  ;;  %v5968_v50 = vpop.eup %5967 }
 0x8b9   : > { %v1803_v52 = vmul.f32 %v5968_v50, %v5962_v26 }
 0x8bb   : > { %5324 = vmatmul.mubr.msk.f32.gmra.mrb[26].mxu0 %vm1112_vm7, %v1801_v49 }
 0x8bc   : > { %5326 = vmatprep.mubr.msk.f32.mxu0 %vm6142_vm0, %v6143_v6 }
 0x8bd   : > { %5707 = vmatpush3.bf16.xpose.msk.msra.mxu0 %vm6453_vm6, %v5705_v51 }
 0x8be   : > { %5344 = vmatprep.subr.mxu0 %v6143_v6 }
 0x8bf   : > { %5327 = vmatmul.mubr.msk.f32.gmra.mrb[28].mxu0 %vm1112_vm7, %v1803_v52 }
 0x8c0   : > { %5346 = vmatprep.mubr.msk.f32.mxu0 %vm6142_vm0, %v6143_v6 }
 0x8c5   : > { %5345 = vmatpush3.xpose.msk.msra.mxu0 %vm1016_vm5, %v2006_v37 }
 0x8c6   : > { %5370 = vmatprep.subr.mxu0 %v6143_v6 }
 0x8c8   : > { %5347 = vmatmul.mubr.msk.f32.vlgmr.msra.gmra.mrb[30].mxu0 %vm1016_vm5, %v1996_v53 }
 0x8c9   : > { %5349 = vmatprep.mubr.msk.f32.mxu0 %vm6142_vm0, %v6143_v6  ;;  %5371 = vmatpush3.msra.mxu0 %v1006_v44  ;;  %v2400_v44 = vld [vmem:[%s7327_s13 + $0x10] sm:$0xff] }
 0x8ca   : > { %5717 = vmatprep.subr.bf16.mxu0 %v6141_v3 }
 0x8cc   : > { %5350 = vmatmul.mubr.msk.f32.gmra.mrb[32].mxu0 %vm1016_vm5, %v1998_v54 }
 0x8cd   : > { %5352 = vmatprep.mubr.msk.f32.mxu0 %vm6142_vm0, %v6143_v6 }
 0x8d0   : > { %5353 = vmatmul.mubr.msk.f32.gmra.mrb[34].mxu0 %vm1016_vm5, %v2000_v56 }
 0x8d1   : > { %5372 = vmatprep.mubr.msk.f32.mxu0 %vm6142_vm0, %v6143_v6 }
 0x98a   : > { %v1889_v59 = vpop.f32.mrb[24].mxu0 }
 0x98b   : > { %v5322_v60 = vpop.f32.mrb[25].mxu0  ;;  %5332 = vmatmul.mubr.msk.f32.vlgmr.msra.gmra.mrb[30].mxu1 %vm1016_vm5, %v1889_v59 }
 0x98c   : > { %5334 = vmatprep.mubr.msk.f32.mxu1 %vm6142_vm0, %v6143_v6 }
 0x98e   : > { %v1894_v62 = vpop.f32.mrb[26].mxu0 }
 0x98f   : > { %v5325_v63 = vpop.f32.mrb[27].mxu0  ;;  %5335 = vmatmul.mubr.msk.f32.gmra.mrb[32].mxu1 %vm1016_vm5, %v1894_v62 }
 0x990   : > { %5337 = vmatprep.mubr.msk.f32.mxu1 %vm6142_vm0, %v6143_v6 }
 0x992   : > { %v1899_v0 = vpop.f32.mrb[28].mxu0 }
 0x993   : > { %v5328_v1 = vpop.f32.mrb[29].mxu0  ;;  %5338 = vmatmul.mubr.msk.f32.gmra.mrb[34].mxu1 %vm1016_vm5, %v1899_v0 }
 0x994   : > { %5361 = vmatprep.mubr.msk.f32.mxu1 %vm6142_vm0, %v6143_v6 }
 0x99b   : > { %v2085_v2 = vpop.f32.mrb[30].mxu0 }
 0x99c   : > { %v2099_v4 = vmul.f32 0.35355338, %v2085_v2  ;;  %v5348_v5 = vpop.f32.mrb[31].mxu0 }
 0x99d   : > { %v4869_v5 = vld [vmem:[%s7324_s10] ss:$0 sm:$0xff] }
 0x99e   : > { %v2102_v7 = vsel %vm1112_vm7, %v2099_v4, -inf }
 0x99f   : > { %2103 = vmax.xlane.f32.xlu1 %v2102_v7  ;;  %v2090_v8 = vpop.f32.mrb[32].mxu0 }
 0x9a0   : > { %v2100_v9 = vmul.f32 0.35355338, %v2090_v8  ;;  %v5351_v10 = vpop.f32.mrb[33].mxu0 }
 0x9a2   : > { %v2105_v11 = vsel %vm1112_vm7, %v2100_v9, -inf }
 0x9a3   : > { %2106 = vmax.xlane.f32.xlu0 %v2105_v11  ;;  %v2095_v12 = vpop.f32.mrb[34].mxu0 }
 0x9a4   : > { %v2101_v13 = vmul.f32 0.35355338, %v2095_v12  ;;  %v5354_v14 = vpop.f32.mrb[35].mxu0 }
 0x9a6   : > { %v2108_v15 = vsel %vm1119_vm8, %v2101_v13, -inf }
 0x9a7   : > { %2109 = vmax.xlane.f32.xlu0 %v2108_v15 }
 0xa2c   : > { %v2104_v16 = vpop.xlane.xlu1 %2103 }
 0xa2d   : > { %v2111_v17 = vsub.f32 %v2099_v4, %v2104_v16 }
 0xa2f   : > { %v2114_v18 = vmul.f32 1.442695, %v2111_v17 }
 0xa30   : > { %v2107_v19 = vpop.xlane.xlu0 %2106 }
 0xa31   : > { %5969 = vpow2.f32 %v2114_v18  ;;  %v2112_v20 = vsub.f32 %v2100_v9, %v2107_v19 }
 0xa33   : > { %v2116_v21 = vmul.f32 1.442695, %v2112_v20 }
 0xa34   : > { %v2110_v22 = vpop.xlane.xlu0 %2109 }
 0xa35   : > { %5971 = vpow2.f32 %v2116_v21  ;;  %v2113_v23 = vsub.f32 %v2101_v13, %v2110_v22 }
 0xa37   : > { %v2118_v24 = vmul.f32 1.442695, %v2113_v23 }
 0xa39   : > { %5973 = vpow2.f32 %v2118_v24 }
 0xa3b   : > { %v5970_v25 = vpop.eup %5969 }
 0xa3c   : > { %v2120_v26 = vsel %vm1112_vm7, %v5970_v25, 0.0 }
 0xa3d   : > { %2121 = vadd.xlane.f32.xlu0 %v2120_v26 }
 0xa3f   : > { %v5972_v27 = vpop.eup %5971 }
 0xa40   : > { %v2123_v30 = vsel %vm1112_vm7, %v5972_v27, 0.0 }
 0xa41   : > { %2124 = vadd.xlane.f32.xlu1 %v2123_v30 }
 0xa43   : > { %v5974_v34 = vpop.eup %5973 }
 0xa44   : > { %v2126_v36 = vsel %vm1119_vm8, %v5974_v34, 0.0 }
 0xa45   : > { %2127 = vadd.xlane.f32.xlu0 %v2126_v36 }
 0xa52   : > { %5883 = vrot.lane.b32.xlu1 %v6433_v31, %s7362_s29 }
 0xa5b   : > { %2139 = vrot.lane.b32.xlu0 %v6435_v35, %s7362_s29 }
 0xa5e   : > { %v1978_v37 = vpop.f32.mrb[30].mxu1 }
 0xa5f   : > { %v1992_v38 = vadd.f32 %v1978_v37, %v6582_v55  ;;  %v5333_v39 = vpop.f32.mrb[31].mxu1 }
 0xa62   : > { %v1983_v41 = vpop.f32.mrb[32].mxu1 }
 0xa63   : > { %v1993_v43 = vadd.f32 %v1983_v41, %v6584_v58  ;;  %v5336_v29 = vpop.f32.mrb[33].mxu1  ;;  %v2398_v41 = vld [vmem:[%s7327_s13] sm:$0xff] }
 0xa66   : > { %v1988_v45 = vpop.f32.mrb[34].mxu1 }
 0xa67   : > { %v1994_v31 = vadd.f32 %v1988_v45, %v6586_v61  ;;  %v5339_v28 = vpop.f32.mrb[35].mxu1  ;;  %v2401_v45 = vld [vmem:[%s7327_s13 + $0x18] sm:$0xff] }
 0xaca   : > { %v2122_v35 = vpop.xlane.xlu0 %2121 }
 0xacb   : > { %5975 = vrcp.f32 %v2122_v35 }
 0xace   : > { %v2125_v46 = vpop.xlane.xlu1 %2124 }
 0xacf   : > { %5977 = vrcp.f32 %v2125_v46 }
 0xad2   : > { %v5884_v55 = vpop.permute.xlu1 %5883  ;;  %v2128_v47 = vpop.xlane.xlu0 %2127 }
 0xad3   : > { %v5886_v48 = vunpack.i.h.bf16 %v5884_v55  ;;  %v5885_v58 = vunpack.i.l.bf16 %v5884_v55  ;;  %5979 = vrcp.f32 %v2128_v47 }
 0xad5   : > { %v5709_v49 = vpack.c.bf16 %v5886_v48, %v5885_v58  ;;  %v5976_v50 = vpop.eup %5975 }
 0xad6   : > { %v2130_v51 = vmul.f32 %v5976_v50, %v5970_v25  ;;  %v2140_v52 = vpop.permute.xlu0 %2139 }
 0xad7   : > { %5710 = vmatpush3.bf16.msra.mxu1 %v5709_v49 }
 0xad8   : > { %5359 = vmatprep.subr.mxu1 %v6143_v6 }
 0xad9   : > { %v5978_v53 = vpop.eup %5977 }
 0xada   : > { %v2132_v61 = vmul.f32 %v5978_v53, %v5972_v27 }
 0xadb   : > { %5360 = vmatpush3.msk.msra.mxu1 %vm1164_vm9, %v2140_v52  ;;  %v4870_v52 = vld [vmem:[%s7325_s11] ss:$0 sm:$0xff] }
 0xadc   : > { %5362 = vmatmul.mubr.msk.f32.vlgmr.msra.gmra.mrb[36].mxu1 %vm1112_vm7, %v2130_v51  ;;  %5711 = vmatprep.subr.bf16.mxu1 %v6141_v3 }
 0xadd   : > { %5364 = vmatprep.mubr.msk.f32.mxu1 %vm6142_vm0, %v6143_v6  ;;  %v5980_v54 = vpop.eup %5979 }
 0xade   : > { %v2134_v56 = vmul.f32 %v5980_v54, %v5974_v34 }
 0xae0   : > { %5365 = vmatmul.mubr.msk.f32.gmra.mrb[38].mxu1 %vm1112_vm7, %v2132_v61  ;;  %v4871_v61 = vld [vmem:[%s7326_s12] ss:$0 sm:$0xff] }
 0xae1   : > { %5367 = vmatprep.mubr.msk.f32.mxu1 %vm6142_vm0, %v6143_v6 }
 0xae4   : > { %5368 = vmatmul.mubr.msk.f32.gmra.mrb[40].mxu1 %vm1112_vm7, %v2134_v56 }
 0xae5   : > { %5389 = vmatprep.mubr.msk.f32.mxu1 %vm6142_vm0, %v6143_v6 }
 0xbaf   : > { %v2220_v57 = vpop.f32.mrb[36].mxu1 }
 0xbb0   : > { %v5363_v59 = vpop.f32.mrb[37].mxu1  ;;  %5373 = vmatmul.mubr.msk.f32.vlgmr.msra.gmra.mrb[36].mxu0 %vm1016_vm5, %v2220_v57 }
 0xbb1   : > { %5375 = vmatprep.mubr.msk.f32.mxu0 %vm6142_vm0, %v6143_v6 }
 0xbb3   : > { %v2225_v60 = vpop.f32.mrb[38].mxu1 }
 0xbb4   : > { %v5366_v62 = vpop.f32.mrb[39].mxu1  ;;  %5376 = vmatmul.mubr.msk.f32.gmra.mrb[38].mxu0 %vm1016_vm5, %v2225_v60 }
 0xbb5   : > { %5378 = vmatprep.mubr.msk.f32.mxu0 %vm6142_vm0, %v6143_v6 }
 0xbb7   : > { %v2230_v63 = vpop.f32.mrb[40].mxu1 }
 0xbb8   : > { %v5369_v0 = vpop.f32.mrb[41].mxu1  ;;  %5379 = vmatmul.mubr.msk.f32.gmra.mrb[40].mxu0 %vm1016_vm5, %v2230_v63 }
 0xbb9   : > { %5414 = vmatprep.mubr.msk.f32.mxu0 %vm6142_vm0, %v6143_v6 }
 0xc83   : > { %v2309_v1 = vpop.f32.mrb[36].mxu0 }
 0xc84   : > { %v2323_v2 = vadd.f32 %v2309_v1, %v1992_v38  ;;  %v5374_v4 = vpop.f32.mrb[37].mxu0 }
 0xc85   : > { %v2579_v4 = vld [vmem:[%s7329_s15] sm:$0xff] }
 0xc86   : > { %v2326_v7 = vadd.f32 %v2323_v2, %v6374_v32 }
 0xc87   : > { %v2314_v8 = vpop.f32.mrb[38].mxu0 }
 0xc88   : > { %v6689_v9 = vadd.f32 %v4869_v5, %v2326_v7  ;;  %v2324_v10 = vadd.f32 %v2314_v8, %v1993_v43  ;;  %v5377_v11 = vpop.f32.mrb[39].mxu0  ;;  %v2399_v43 = vld [vmem:[%s7327_s13 + $0x8] sm:$0xff]  ;;  %v2581_v8 = vld [vmem:[%s7329_s15 + $0x10] sm:$0xff] }
 0xc89   : > { %v5712_v29 = vpack.c.bf16 %v2399_v43, %v2398_v41 }
 0xc8a   : > { %v2327_v12 = vadd.f32 %v2324_v10, %v6376_v33  ;;  %v2341_v13 = vsel %vm843_vm3, %v6689_v9, 0.0  ;;  %v2582_v10 = vld [vmem:[%s7329_s15 + $0x18] sm:$0xff] }
 0xc8b   : > { %2342 = vadd.xlane.f32.xlu1 %v2341_v13  ;;  %v2319_v14 = vpop.f32.mrb[40].mxu0  ;;  %5713 = vmatpush3.bf16.msra.mxu1 %v5712_v29  ;;  %v5721_v11 = vpack.c.bf16 %v2582_v10, %v2581_v8  ;;  %v2584_v13 = vld [vmem:[%s7329_s15 + $0x28] sm:$0xff] }
 0xc8c   : > { %v6694_v15 = vadd.f32 %v4869_v5, %v2327_v12  ;;  %v2325_v16 = vadd.f32 %v2319_v14, %v1994_v31  ;;  %v5380_v17 = vpop.f32.mrb[41].mxu0  ;;  %5714 = vmatprep.subr.bf16.mxu1 %v6141_v3  ;;  %v5715_v31 = vpack.c.bf16 %v2401_v45, %v2400_v44  ;;  %v2583_v12 = vld [vmem:[%s7329_s15 + $0x20] sm:$0xff] }
 0xc8d   : > { %v5724_v14 = vpack.c.bf16 %v2584_v13, %v2583_v12  ;;  %v2586_v17 = vld [vmem:[%s7329_s15 + $0x38] sm:$0xff] }
 0xc8e   : > { %v2328_v18 = vadd.f32 %v2325_v16, %v6385_v40  ;;  %v2344_v32 = vsel %vm843_vm3, %v6694_v15, 0.0  ;;  %v2585_v16 = vld [vmem:[%s7329_s15 + $0x30] sm:$0xff] }
 0xc8f   : > { %2345 = vadd.xlane.f32.xlu0 %v2344_v32  ;;  %5716 = vmatpush3.bf16.msra.mxu1 %v5715_v31  ;;  %v4872_v32 = vld [vmem:[%s7328_s14] ss:$0 sm:$0xff] }
 0xc90   : > { %v6699_v19 = vadd.f32 %v4869_v5, %v2328_v18  ;;  %5729 = vmatprep.subr.bf16.mxu1 %v6141_v3  ;;  %v2580_v5 = vld [vmem:[%s7329_s15 + $0x8] sm:$0xff]  ;;  %v5727_v18 = vpack.c.bf16 %v2586_v17, %v2585_v16 }
 0xc91   : > { %v5718_v7 = vpack.c.bf16 %v2580_v5, %v2579_v4 }
 0xc92   : > { %v2347_v33 = vsel %vm850_vm4, %v6699_v19, 0.0 }
 0xc93   : > { %2348 = vadd.xlane.f32.xlu1 %v2347_v33  ;;  %5719 = vmatpush3.bf16.msra.mxu0 %v5718_v7 }
 0xc94   : > { %5720 = vmatprep.subr.bf16.mxu0 %v6141_v3 }
 0xc97   : > { %5722 = vmatpush3.bf16.msra.mxu0 %v5721_v11 }
 0xc98   : > { %5723 = vmatprep.subr.bf16.mxu0 %v6141_v3 }
 0xc9b   : > { %5725 = vmatpush3.bf16.msra.mxu0 %v5724_v14 }
 0xc9c   : > { %5726 = vmatprep.subr.bf16.mxu0 %v6141_v3 }
 0xc9f   : > { %5728 = vmatpush3.bf16.msra.mxu0 %v5727_v18 }
 0xca0   : > { %5735 = vmatprep.subr.bf16.mxu0 %v6141_v3 }
 0xd18   : > { %v2343_v20 = vpop.xlane.xlu1 %2342 }
 0xd19   : > { %v2350_v21 = vmul.f32 0.03125, %v2343_v20 }
 0xd1b   : > { %v2353_v22 = vsub.f32 %v6689_v9, %v2350_v21 }
 0xd1c   : > { %v2346_v23 = vpop.xlane.xlu0 %2345 }
 0xd1d   : > { %v2351_v24 = vmul.f32 0.03125, %v2346_v23  ;;  %v2356_v25 = vmul.f32 %v2353_v22, %v2353_v22 }
 0xd1f   : > { %v2354_v26 = vsub.f32 %v6694_v15, %v2351_v24  ;;  %v2359_v40 = vsel %vm843_vm3, %v2356_v25, 0.0 }
 0xd20   : > { %2360 = vadd.xlane.f32.xlu0 %v2359_v40  ;;  %v2349_v27 = vpop.xlane.xlu1 %2348 }
 0xd21   : > { %v2352_v30 = vmul.f32 0.03125, %v2349_v27  ;;  %v2357_v34 = vmul.f32 %v2354_v26, %v2354_v26 }
 0xd23   : > { %v2355_v36 = vsub.f32 %v6699_v19, %v2352_v30  ;;  %v2362_v37 = vsel %vm843_vm3, %v2357_v34, 0.0 }
 0xd24   : > { %2363 = vadd.xlane.f32.xlu1 %v2362_v37 }
 0xd25   : > { %v2358_v38 = vmul.f32 %v2355_v36, %v2355_v36 }
 0xd27   : > { %v2365_v39 = vsel %vm850_vm4, %v2358_v38, 0.0 }
 0xd28   : > { %2366 = vadd.xlane.f32.xlu0 %v2365_v39 }
 0xdad   : > { %v2361_v28 = vpop.xlane.xlu0 %2360 }
 0xdae   : > { %v2368_v35 = vmul.f32 0.03125, %v2361_v28 }
 0xdb0   : > { %v2371_v46 = vadd.f32 1e-05, %v2368_v35 }
 0xdb1   : > { %v2364_v55 = vpop.xlane.xlu1 %2363 }
 0xdb2   : > { %5981 = vrsqrt.f32 %v2371_v46  ;;  %v2369_v47 = vmul.f32 0.03125, %v2364_v55 }
 0xdb4   : > { %v2372_v48 = vadd.f32 1e-05, %v2369_v47 }
 0xdb5   : > { %v2367_v58 = vpop.xlane.xlu0 %2366 }
 0xdb6   : > { %5983 = vrsqrt.f32 %v2372_v48  ;;  %v2370_v49 = vmul.f32 0.03125, %v2367_v58 }
 0xdb8   : > { %v2373_v50 = vadd.f32 1e-05, %v2370_v49 }
 0xdba   : > { %5985 = vrsqrt.f32 %v2373_v50 }
 0xdbc   : > { %v5982_v51 = vpop.eup %5981 }
 0xdbd   : > { %v2377_v53 = vmul.f32 %v5982_v51, %v2353_v22 }
 0xdbf   : > { %v2386_v54 = vmul.f32 %v4870_v52, %v2377_v53 }
 0xdc0   : > { %v5984_v56 = vpop.eup %5983 }
 0xdc1   : > { %v2395_v57 = vadd.f32 %v4871_v61, %v2386_v54  ;;  %v2378_v59 = vmul.f32 %v5984_v56, %v2354_v26 }
 0xdc3   : > { %5390 = vmatmul.mubr.msk.f32.vlgmr.msra.gmra.mrb[42].mxu1 %vm843_vm3, %v2395_v57  ;;  %v2387_v60 = vmul.f32 %v4870_v52, %v2378_v59 }
 0xdc4   : > { %v5986_v62 = vpop.eup %5985  ;;  %5392 = vmatprep.mubr.msk.f32.mxu1 %vm6142_vm0, %v6143_v6 }
 0xdc5   : > { %v2396_v63 = vadd.f32 %v4871_v61, %v2387_v60  ;;  %v2379_v0 = vmul.f32 %v5986_v62, %v2355_v36 }
 0xdc7   : > { %5393 = vmatmul.mubr.msk.f32.gmra.mrb[44].mxu1 %vm843_vm3, %v2396_v63  ;;  %v2388_v1 = vmul.f32 %v4870_v52, %v2379_v0 }
 0xdc8   : > { %5395 = vmatprep.mubr.msk.f32.mxu1 %vm6142_vm0, %v6143_v6 }
 0xdc9   : > { %v2397_v2 = vadd.f32 %v4871_v61, %v2388_v1 }
 0xdcb   : > { %5396 = vmatmul.mubr.msk.f32.gmra.mrb[46].mxu1 %vm843_vm3, %v2397_v2 }
 0xdcc   : > { %5431 = vmatprep.mubr.msk.f32.mxu1 %vm6142_vm0, %v6143_v6 }
 0xe96   : > { %v2484_v33 = vpop.f32.mrb[42].mxu1 }
 0xe97   : > { %v6769_v20 = vadd.f32 %v4872_v32, %v2484_v33  ;;  %v5391_v21 = vpop.f32.mrb[43].mxu1 }
 0xe99   : > { %v6772_v22 = vmul.f32 0.70710677, %v6769_v20 }
 0xe9a   : > { %v2489_v23 = vpop.f32.mrb[44].mxu1 }
 0xe9b   : > { %v2504_v24 = vand.u32 2147483647, %v6772_v22  ;;  %v6775_v25 = vadd.f32 %v4872_v32, %v2489_v23  ;;  %v5394_v26 = vpop.f32.mrb[45].mxu1  ;;  %vm2564_vm10 = vcmp.ge.f32.partialorder %v6772_v22, 0.0 }
 0xe9d   : > { %v2507_v40 = vmul.f32 0.3275911, %v2504_v24  ;;  %v6778_v27 = vmul.f32 0.70710677, %v6775_v25  ;;  %v2546_v45 = vsub.f32 0.0, %v2504_v24 }
 0xe9e   : > { %v2494_v30 = vpop.f32.mrb[46].mxu1 }
 0xe9f   : > { %v2510_v34 = vadd.f32 1.0, %v2507_v40  ;;  %v2505_v36 = vand.u32 2147483647, %v6778_v27  ;;  %v5397_v37 = vpop.f32.mrb[47].mxu1  ;;  %v6781_v38 = vadd.f32 %v4872_v32, %v2494_v30  ;;  %v2549_v35 = vmul.f32 %v2546_v45, %v2504_v24 }
 0xea0   : > { %v2498_v37 = vmul.f32 0.5, %v6769_v20  ;;  %vm2565_vm12 = vcmp.ge.f32.partialorder %v6778_v27, 0.0 }
 0xea1   : > { %5987 = vrcp.f32 %v2510_v34  ;;  %v2508_v39 = vmul.f32 0.3275911, %v2505_v36  ;;  %v6784_v41 = vmul.f32 0.70710677, %v6781_v38  ;;  %v2547_v46 = vsub.f32 0.0, %v2505_v36 }
 0xea2   : > { %v2552_v58 = vmul.f32 1.442695, %v2549_v35  ;;  %v2499_v35 = vmul.f32 0.5, %v6775_v25  ;;  %v2500_v27 = vmul.f32 0.5, %v6781_v38 }
 0xea3   : > { %v2511_v43 = vadd.f32 1.0, %v2508_v39  ;;  %v2506_v29 = vand.u32 2147483647, %v6784_v41  ;;  %v2550_v49 = vmul.f32 %v2547_v46, %v2505_v36  ;;  %vm2566_vm13 = vcmp.ge.f32.partialorder %v6784_v41, 0.0 }
 0xea5   : > { %5989 = vrcp.f32 %v2511_v43  ;;  %v2509_v44 = vmul.f32 0.3275911, %v2506_v29  ;;  %v2548_v52 = vsub.f32 0.0, %v2506_v29  ;;  %v2554_v54 = vmul.f32 1.442695, %v2550_v49 }
 0xea7   : > { %v2512_v31 = vadd.f32 1.0, %v2509_v44  ;;  %v2551_v60 = vmul.f32 %v2548_v52, %v2506_v29 }
 0xea9   : > { %5991 = vrcp.f32 %v2512_v31  ;;  %v2556_v5 = vmul.f32 1.442695, %v2551_v60 }
 0xeaa   : > { %5993 = vpow2.f32 %v2552_v58  ;;  %v4876_v58 = vld [vmem:[%s7330_s16] ss:$0 sm:$0xff] }
 0xeab   : > { %v5988_v28 = vpop.eup %5987  ;;  %5995 = vpow2.f32 %v2554_v54 }
 0xeac   : > { %v2519_v55 = vmul.f32 1.0614054, %v5988_v28  ;;  %5997 = vpow2.f32 %v2556_v5 }
 0xeae   : > { %v2522_v47 = vadd.f32 -1.4531521, %v2519_v55 }
 0xeaf   : > { %v5990_v48 = vpop.eup %5989 }
 0xeb0   : > { %v2525_v50 = vmul.f32 %v5988_v28, %v2522_v47  ;;  %v2520_v51 = vmul.f32 1.0614054, %v5990_v48 }
 0xeb2   : > { %v2528_v53 = vadd.f32 1.4214138, %v2525_v50  ;;  %v2523_v61 = vadd.f32 -1.4531521, %v2520_v51 }
 0xeb3   : > { %v5992_v56 = vpop.eup %5991 }
 0xeb4   : > { %v2531_v57 = vmul.f32 %v5988_v28, %v2528_v53  ;;  %v2526_v59 = vmul.f32 %v5990_v48, %v2523_v61  ;;  %v2521_v62 = vmul.f32 1.0614054, %v5992_v56  ;;  %v5994_v14 = vpop.eup %5993 }
 0xeb5   : > { %v5996_v23 = vpop.eup %5995 }
 0xeb6   : > { %v2534_v63 = vadd.f32 -0.28449672, %v2531_v57  ;;  %v2529_v0 = vadd.f32 1.4214138, %v2526_v59  ;;  %v2524_v1 = vadd.f32 -1.4531521, %v2521_v62  ;;  %v5998_v29 = vpop.eup %5997 }
 0xeb8   : > { %v2537_v2 = vmul.f32 %v5988_v28, %v2534_v63  ;;  %v2532_v4 = vmul.f32 %v5990_v48, %v2529_v0  ;;  %v2527_v7 = vmul.f32 %v5992_v56, %v2524_v1 }
 0xeba   : > { %v2540_v8 = vadd.f32 0.2548296, %v2537_v2  ;;  %v2535_v10 = vadd.f32 -0.28449672, %v2532_v4  ;;  %v2530_v11 = vadd.f32 1.4214138, %v2527_v7 }
 0xebc   : > { %v2543_v12 = vmul.f32 %v5988_v28, %v2540_v8  ;;  %v2538_v13 = vmul.f32 %v5990_v48, %v2535_v10  ;;  %v2533_v16 = vmul.f32 %v5992_v56, %v2530_v11 }
 0xebe   : > { %v2558_v17 = vmul.f32 %v5994_v14, %v2543_v12  ;;  %v2541_v18 = vadd.f32 0.2548296, %v2538_v13  ;;  %v2536_v32 = vadd.f32 -0.28449672, %v2533_v16  ;;  %v4884_v16 = vld [vmem:[%s7395_s26 + $0x20] sm:$0xff] }
 0xec0   : > { %v2561_v33 = vsub.f32 1.0, %v2558_v17  ;;  %v2544_v21 = vmul.f32 %v5990_v48, %v2541_v18  ;;  %v2539_v24 = vmul.f32 %v5992_v56, %v2536_v32  ;;  %v4885_v17 = vld [vmem:[%s7395_s26 + $0x28] sm:$0xff]  ;;  %v4886_v32 = vld [vmem:[%s7395_s26 + $0x30] sm:$0xff] }
 0xec1   : > { %v5730_v18 = vpack.c.bf16 %v4885_v17, %v4884_v16 }
 0xec2   : > { %v2567_v26 = vsub.f32 0.0, %v2561_v33  ;;  %v2559_v40 = vmul.f32 %v5996_v23, %v2544_v21  ;;  %v2542_v30 = vadd.f32 0.2548296, %v2539_v24 }
 0xec3   : > { %5731 = vmatpush3.bf16.msra.mxu1 %v5730_v18 }
 0xec4   : > { %v2570_v34 = vsel %vm2564_vm10, %v2561_v33, %v2567_v26  ;;  %v2562_v36 = vsub.f32 1.0, %v2559_v40  ;;  %v2545_v43 = vmul.f32 %v5992_v56, %v2542_v30  ;;  %5732 = vmatprep.subr.bf16.mxu1 %v6141_v3  ;;  %v4887_v33 = vld [vmem:[%s7395_s26 + $0x38] sm:$0xff] }
 0xec5   : > { %v2573_v39 = vadd.f32 1.0, %v2570_v34  ;;  %v5733_v21 = vpack.c.bf16 %v4887_v33, %v4886_v32 }
 0xec6   : > { %v2568_v44 = vsub.f32 0.0, %v2562_v36  ;;  %v2560_v31 = vmul.f32 %v5998_v29, %v2545_v43  ;;  %v4882_v29 = vld [vmem:[%s7397_s1 + $0x1] ss:$0 sm:$0xff] }
 0xec7   : > { %v2576_v45 = vmul.f32 %v2573_v39, %v2498_v37  ;;  %5734 = vmatpush3.bf16.msra.mxu1 %v5733_v21 }
 0xec8   : > { %v2571_v28 = vsel %vm2565_vm12, %v2562_v36, %v2568_v44  ;;  %v2563_v55 = vsub.f32 1.0, %v2560_v31  ;;  %5739 = vmatprep.subr.bf16.mxu1 %v6141_v3 }
 0xec9   : > { %v2574_v46 = vadd.f32 1.0, %v2571_v28  ;;  %5415 = vmatmul.mubr.msk.f32.vlgmr.msra.gmra.mrb[42].mxu0 %vm2594_vm11, %v2576_v45  ;;  %v4883_v45 = vld [vmem:[%s7398_s27 + $0x1] ss:$0 sm:$0xff] }
 0xeca   : > { %5417 = vmatprep.mubr.msk.f32.mxu0 %vm6142_vm0, %v6143_v6  ;;  %v2569_v22 = vsub.f32 0.0, %v2563_v55 }
 0xecb   : > { %v2577_v20 = vmul.f32 %v2574_v46, %v2499_v35 }
 0xecc   : > { %v2572_v47 = vsel %vm2566_vm13, %v2563_v55, %v2569_v22 }
 0xecd   : > { %5418 = vmatmul.mubr.msk.f32.gmra.mrb[44].mxu0 %vm2594_vm11, %v2577_v20  ;;  %v2575_v48 = vadd.f32 1.0, %v2572_v47 }
 0xece   : > { %5420 = vmatprep.mubr.msk.f32.mxu0 %vm6142_vm0, %v6143_v6 }
 0xecf   : > { %v2578_v25 = vmul.f32 %v2575_v48, %v2500_v27 }
 0xed1   : > { %5421 = vmatmul.mubr.msk.f32.gmra.mrb[46].mxu0 %vm2594_vm11, %v2578_v25 }
 0xed2   : > { %5446 = vmatprep.mubr.msk.f32.mxu0 %vm6142_vm0, %v6143_v6 }
 0xf9c   : > { %v2670_v41 = vpop.f32.mrb[42].mxu0 }
 0xf9d   : > { %v2671_v49 = vadd.f32 %v4876_v58, %v2670_v41  ;;  %v5416_v50 = vpop.f32.mrb[43].mxu0  ;;  %v4889_v41 = vld [vmem:[%s7399_s8 + $0x1] ss:$0 sm:$0xff] }
 0xf9f   : > { %v6806_v51 = vadd.f32 %v2671_v49, %v6689_v9 }
 0xfa0   : > { %v2675_v38 = vpop.f32.mrb[44].mxu0 }
 0xfa1   : > { %v2676_v52 = vadd.f32 %v4876_v58, %v2675_v38  ;;  %v5419_v53 = vpop.f32.mrb[45].mxu0  ;;  %v2691_v61 = vsel %vm843_vm3, %v6806_v51, 0.0 }
 0xfa2   : > { %2692 = vadd.xlane.f32.xlu1 %v2691_v61 }
 0xfa3   : > { %v6811_v54 = vadd.f32 %v2676_v52, %v6694_v15 }
 0xfa4   : > { %v2680_v56 = vpop.f32.mrb[46].mxu0 }
 0xfa5   : > { %v2694_v57 = vsel %vm843_vm3, %v6811_v54, 0.0  ;;  %v2681_v59 = vadd.f32 %v4876_v58, %v2680_v56  ;;  %v5422_v60 = vpop.f32.mrb[47].mxu0 }
 0xfa6   : > { %2695 = vadd.xlane.f32.xlu0 %v2694_v57 }
 0xfa7   : > { %v6816_v9 = vadd.f32 %v2681_v59, %v6699_v19 }
 0xfa9   : > { %v2697_v62 = vsel %vm850_vm4, %v6816_v9, 0.0 }
 0xfaa   : > { %2698 = vadd.xlane.f32.xlu1 %v2697_v62 }
0x102f   : > { %v2693_v63 = vpop.xlane.xlu1 %2692 }
0x1030   : > { %v2700_v0 = vmul.f32 0.03125, %v2693_v63 }
0x1032   : > { %v2703_v1 = vsub.f32 %v6806_v51, %v2700_v0 }
0x1033   : > { %v2696_v15 = vpop.xlane.xlu0 %2695 }
0x1034   : > { %v2701_v2 = vmul.f32 0.03125, %v2696_v15  ;;  %v2706_v4 = vmul.f32 %v2703_v1, %v2703_v1 }
0x1036   : > { %v2704_v5 = vsub.f32 %v6811_v54, %v2701_v2  ;;  %v2709_v7 = vsel %vm843_vm3, %v2706_v4, 0.0 }
0x1037   : > { %2710 = vadd.xlane.f32.xlu0 %v2709_v7  ;;  %v2699_v8 = vpop.xlane.xlu1 %2698 }
0x1038   : > { %v2707_v10 = vmul.f32 %v2704_v5, %v2704_v5  ;;  %v2702_v19 = vmul.f32 0.03125, %v2699_v8 }
0x103a   : > { %v2712_v11 = vsel %vm843_vm3, %v2707_v10, 0.0  ;;  %v2705_v12 = vsub.f32 %v6816_v9, %v2702_v19 }
0x103b   : > { %2713 = vadd.xlane.f32.xlu1 %v2712_v11 }
0x103c   : > { %v2708_v13 = vmul.f32 %v2705_v12, %v2705_v12 }
0x103e   : > { %v2715_v14 = vsel %vm850_vm4, %v2708_v13, 0.0 }
0x103f   : > { %2716 = vadd.xlane.f32.xlu0 %v2715_v14 }
0x10c4   : > { %v2711_v23 = vpop.xlane.xlu0 %2710 }
0x10c5   : > { %v2718_v24 = vmul.f32 0.03125, %v2711_v23 }
0x10c7   : > { %v2721_v26 = vadd.f32 1e-05, %v2718_v24 }
0x10c8   : > { %v2714_v40 = vpop.xlane.xlu1 %2713 }
0x10c9   : > { %5999 = vrsqrt.f32 %v2721_v26  ;;  %v2719_v30 = vmul.f32 0.03125, %v2714_v40 }
0x10cb   : > { %v2722_v34 = vadd.f32 1e-05, %v2719_v30 }
0x10cc   : > { %v2717_v36 = vpop.xlane.xlu0 %2716 }
0x10cd   : > { %6001 = vrsqrt.f32 %v2722_v34  ;;  %v2720_v37 = vmul.f32 0.03125, %v2717_v36 }
0x10cf   : > { %v2723_v39 = vadd.f32 1e-05, %v2720_v37 }
0x10d1   : > { %6003 = vrsqrt.f32 %v2723_v39 }
0x10d3   : > { %v6000_v43 = vpop.eup %5999 }
0x10d4   : > { %v2727_v44 = vmul.f32 %v6000_v43, %v2703_v1 }
0x10d6   : > { %v2736_v31 = vmul.f32 %v4882_v29, %v2727_v44 }
0x10d7   : > { %v6002_v28 = vpop.eup %6001 }
0x10d8   : > { %v2745_v35 = vadd.f32 %v4883_v45, %v2736_v31  ;;  %v2728_v46 = vmul.f32 %v6002_v28, %v2704_v5 }
0x10da   : > { %5432 = vmatmul.mubr.msk.f32.vlgmr.msra.gmra.mrb[48].mxu1 %vm843_vm3, %v2745_v35  ;;  %v2737_v55 = vmul.f32 %v4882_v29, %v2728_v46 }
0x10db   : > { %5434 = vmatprep.mubr.msk.f32.mxu1 %vm6142_vm0, %v6143_v6  ;;  %v6004_v20 = vpop.eup %6003 }
0x10dc   : > { %v2746_v22 = vadd.f32 %v4883_v45, %v2737_v55  ;;  %v2729_v47 = vmul.f32 %v6004_v20, %v2705_v12 }
0x10de   : > { %5435 = vmatmul.mubr.msk.f32.gmra.mrb[50].mxu1 %vm843_vm3, %v2746_v22  ;;  %v2738_v27 = vmul.f32 %v4882_v29, %v2729_v47 }
0x10df   : > { %5437 = vmatprep.mubr.msk.f32.mxu1 %vm6142_vm0, %v6143_v6 }
0x10e0   : > { %v2747_v48 = vadd.f32 %v4883_v45, %v2738_v27 }
0x10e2   : > { %5438 = vmatmul.mubr.msk.f32.gmra.mrb[52].mxu1 %vm843_vm3, %v2747_v48 }
0x10e3   : > { %5461 = vmatprep.mubr.msk.f32.mxu1 %vm6142_vm0, %v6143_v6 }
0x11ad   : > { %v2836_v25 = vpop.f32.mrb[48].mxu1 }
0x11ae   : > { %v5433_v58 = vpop.f32.mrb[49].mxu1  ;;  %v6858_v50 = vadd.f32 %v4889_v41, %v2836_v25 }
0x11b1   : > { %v2841_v49 = vpop.f32.mrb[50].mxu1 }
0x11b2   : > { %v6860_v38 = vadd.f32 %v4889_v41, %v2841_v49  ;;  %v5436_v52 = vpop.f32.mrb[51].mxu1 }
0x11b4   : > { %v6864_v53 = vpack.i.bf16 %v6860_v38, %v6858_v50 }
0x11b5   : > { %v2846_v61 = vpop.f32.mrb[52].mxu1 }
0x11b6   : > { %5888 = vrot.lane.b32.xlu1 %v6864_v53, %s7403_s28  ;;  %v6868_v56 = vadd.f32 %v4889_v41, %v2846_v61  ;;  %v5439_v57 = vpop.f32.mrb[53].mxu1 }
0x11b8   : > { %2862 = vrot.lane.b32.xlu0 %v6868_v56, %s7403_s28  ;;  %s7413_s28 = smov 40  }
0x11ba   : > { %5893 = vrot.lane.b32.xlu1 %v6864_v53, %s7404_s3 }
0x11bc   : > { %3093 = vrot.lane.b32.xlu0 %v6860_v38, %s7405_s24 }
0x11be   : > { %3101 = vrot.lane.b32.xlu1 %v6868_v56, %s7404_s3 }
0x11c2   : > { %3091 = vrot.lane.b32.xlu1 %v6858_v50, %s7405_s24 }
0x11c6   : > { %3095 = vrot.lane.b32.xlu1 %v6868_v56, %s7405_s24 }
0x1228   : > { %v5889_v59 = vpop.permute.xlu1 %5888 }
0x1229   : > { %v5891_v60 = vunpack.i.h.bf16 %v5889_v59  ;;  %v5890_v62 = vunpack.i.l.bf16 %v5889_v59 }
0x122a   : > { %v2863_v2 = vpop.permute.xlu0 %2862 }
0x122b   : > { %v5736_v63 = vpack.c.bf16 %v5891_v60, %v5890_v62 }
0x122c   : > { %v5894_v0 = vpop.permute.xlu1 %5893 }
0x122d   : > { %5738 = vmatpush3.bf16.xpose.msk.msra.mxu0 %vm6453_vm6, %v5736_v63  ;;  %v5896_v1 = vunpack.i.h.bf16 %v5894_v0  ;;  %v5895_v15 = vunpack.i.l.bf16 %v5894_v0 }
0x122e   : > { %5444 = vmatprep.subr.mxu0 %v6143_v6  ;;  %v3094_v8 = vpop.permute.xlu0 %3093 }
0x122f   : > { %v5743_v4 = vpack.c.bf16 %v5896_v1, %v5895_v15 }
0x1230   : > { %v3102_v5 = vpop.permute.xlu1 %3101 }
0x1234   : > { %v3092_v7 = vpop.permute.xlu1 %3091 }
0x1235   : > { %5445 = vmatpush3.xpose.msk.msra.mxu0 %vm1016_vm5, %v2863_v2 }
0x1236   : > { %5742 = vmatprep.subr.bf16.mxu0 %v6141_v3 }
0x1238   : > { %5447 = vmatmul.mubr.msk.f32.vlgmr.msra.gmra.mrb[48].mxu0 %vm1016_vm5, %v6858_v50  ;;  %v3096_v10 = vpop.permute.xlu1 %3095 }
0x1239   : > { %5745 = vmatpush3.bf16.xpose.msk.msra.mxu0 %vm6453_vm6, %v5743_v4  ;;  %5449 = vmatprep.mubr.msk.f32.mxu0 %vm6142_vm0, %v6143_v6 }
0x123a   : > { %5474 = vmatprep.subr.mxu0 %v6143_v6 }
0x123c   : > { %5450 = vmatmul.mubr.msk.f32.gmra.mrb[50].mxu0 %vm1016_vm5, %v6860_v38 }
0x123d   : > { %5452 = vmatprep.mubr.msk.f32.mxu0 %vm6142_vm0, %v6143_v6 }
0x1240   : > { %5453 = vmatmul.mubr.msk.f32.gmra.mrb[52].mxu0 %vm1016_vm5, %v6868_v56 }
0x1241   : > { %5475 = vmatpush3.xpose.msk.msra.mxu0 %vm1016_vm5, %v3102_v5  ;;  %5476 = vmatprep.mubr.msk.f32.mxu0 %vm6142_vm0, %v6143_v6 }
0x1242   : > { %5500 = vmatprep.subr.mxu0 %v6143_v6 }
0x1244   : > { %5477 = vmatmul.mubr.msk.f32.vlgmr.msra.gmra.mrb[54].mxu0 %vm1016_vm5, %v3092_v7 }
0x1245   : > { %5479 = vmatprep.mubr.msk.f32.mxu0 %vm6142_vm0, %v6143_v6 }
0x1248   : > { %5480 = vmatmul.mubr.msk.f32.gmra.mrb[56].mxu0 %vm1016_vm5, %v3094_v8 }
0x1249   : > { %5482 = vmatprep.mubr.msk.f32.mxu0 %vm6142_vm0, %v6143_v6 }
0x124c   : > { %5483 = vmatmul.mubr.msk.f32.gmra.mrb[58].mxu0 %vm1016_vm5, %v3096_v10 }
0x124d   : > { %5502 = vmatprep.mubr.msk.f32.mxu0 %vm6142_vm0, %v6143_v6 }
0x130b   : > { %v2942_v19 = vpop.f32.mrb[48].mxu0 }
0x130c   : > { %v2956_v11 = vmul.f32 0.35355338, %v2942_v19  ;;  %v5448_v12 = vpop.f32.mrb[49].mxu0 }
0x130e   : > { %v2959_v13 = vsel %vm1112_vm7, %v2956_v11, -inf }
0x130f   : > { %2960 = vmax.xlane.f32.xlu0 %v2959_v13  ;;  %v2947_v14 = vpop.f32.mrb[50].mxu0 }
0x1310   : > { %v2957_v16 = vmul.f32 0.35355338, %v2947_v14  ;;  %v5451_v17 = vpop.f32.mrb[51].mxu0 }
0x1312   : > { %v2962_v18 = vsel %vm1112_vm7, %v2957_v16, -inf }
0x1313   : > { %2963 = vmax.xlane.f32.xlu1 %v2962_v18  ;;  %v2952_v32 = vpop.f32.mrb[52].mxu0 }
0x1314   : > { %v2958_v33 = vmul.f32 0.35355338, %v2952_v32  ;;  %v5454_v21 = vpop.f32.mrb[53].mxu0 }
0x1316   : > { %v2965_v23 = vsel %vm1119_vm8, %v2958_v33, -inf }
0x1317   : > { %2966 = vmax.xlane.f32.xlu0 %v2965_v23  ;;  %v3181_v24 = vpop.f32.mrb[54].mxu0 }
0x1318   : > { %v3195_v26 = vmul.f32 0.35355338, %v3181_v24  ;;  %v5478_v40 = vpop.f32.mrb[55].mxu0 }
0x131a   : > { %v3198_v30 = vsel %vm1112_vm7, %v3195_v26, -inf }
0x131b   : > { %3199 = vmax.xlane.f32.xlu0 %v3198_v30  ;;  %v3186_v34 = vpop.f32.mrb[56].mxu0 }
0x131c   : > { %v3196_v36 = vmul.f32 0.35355338, %v3186_v34  ;;  %v5481_v37 = vpop.f32.mrb[57].mxu0 }
0x131e   : > { %v3201_v39 = vsel %vm1112_vm7, %v3196_v36, -inf }
0x131f   : > { %3202 = vmax.xlane.f32.xlu0 %v3201_v39  ;;  %v3191_v43 = vpop.f32.mrb[58].mxu0 }
0x1320   : > { %v3197_v29 = vmul.f32 0.35355338, %v3191_v43  ;;  %v5484_v44 = vpop.f32.mrb[59].mxu0 }
0x1322   : > { %v3204_v45 = vsel %vm1119_vm8, %v3197_v29, -inf }
0x1323   : > { %3205 = vmax.xlane.f32.xlu1 %v3204_v45 }
0x1334   : > { %5898 = vrot.lane.b32.xlu1 %v6864_v53, %s7406_s0 }
0x139c   : > { %v2961_v31 = vpop.xlane.xlu0 %2960 }
0x139d   : > { %v2968_v28 = vsub.f32 %v2956_v11, %v2961_v31 }
0x139f   : > { %v2971_v35 = vmul.f32 1.442695, %v2968_v28 }
0x13a0   : > { %v2964_v46 = vpop.xlane.xlu1 %2963 }
0x13a1   : > { %6005 = vpow2.f32 %v2971_v35  ;;  %v2969_v55 = vsub.f32 %v2957_v16, %v2964_v46 }
0x13a3   : > { %v2973_v20 = vmul.f32 1.442695, %v2969_v55  ;;  %v4893_v55 = vld [vmem:[%s7402_s9 + $0x20] sm:$0xff] }
0x13a4   : > { %v2967_v22 = vpop.xlane.xlu0 %2966 }
0x13a5   : > { %6007 = vpow2.f32 %v2973_v20  ;;  %v2970_v47 = vsub.f32 %v2958_v33, %v2967_v22  ;;  %v4894_v20 = vld [vmem:[%s7402_s9 + $0x28] sm:$0xff] }
0x13a6   : > { %5501 = vmatpush3.msra.mxu0 %v4894_v20 }
0x13a7   : > { %v2975_v27 = vmul.f32 1.442695, %v2970_v47  ;;  %5749 = vmatprep.subr.bf16.mxu0 %v6141_v3 }
0x13a8   : > { %v3200_v48 = vpop.xlane.xlu0 %3199 }
0x13a9   : > { %6009 = vpow2.f32 %v2975_v27  ;;  %v3207_v25 = vsub.f32 %v3195_v26, %v3200_v48 }
0x13ab   : > { %v6006_v58 = vpop.eup %6005  ;;  %v3210_v41 = vmul.f32 1.442695, %v3207_v25 }
0x13ac   : > { %v3203_v49 = vpop.xlane.xlu0 %3202  ;;  %v2977_v52 = vsel %vm1112_vm7, %v6006_v58, 0.0 }
0x13ad   : > { %6011 = vpow2.f32 %v3210_v41  ;;  %v3208_v61 = vsub.f32 %v3196_v36, %v3203_v49  ;;  %2978 = vadd.xlane.f32.xlu0 %v2977_v52 }
0x13af   : > { %v6008_v57 = vpop.eup %6007  ;;  %v3212_v59 = vmul.f32 1.442695, %v3208_v61 }
0x13b0   : > { %v3206_v60 = vpop.xlane.xlu1 %3205  ;;  %v2980_v62 = vsel %vm1112_vm7, %v6008_v57, 0.0 }
0x13b1   : > { %6013 = vpow2.f32 %v3212_v59  ;;  %v3209_v63 = vsub.f32 %v3197_v29, %v3206_v60  ;;  %2981 = vadd.xlane.f32.xlu1 %v2980_v62 }
0x13b3   : > { %v6010_v0 = vpop.eup %6009  ;;  %v3214_v1 = vmul.f32 1.442695, %v3209_v63 }
0x13b4   : > { %v5899_v15 = vpop.permute.xlu1 %5898  ;;  %v2983_v2 = vsel %vm1119_vm8, %v6010_v0, 0.0 }
0x13b5   : > { %6015 = vpow2.f32 %v3214_v1  ;;  %v5901_v4 = vunpack.i.h.bf16 %v5899_v15  ;;  %v5900_v5 = vunpack.i.l.bf16 %v5899_v15  ;;  %2984 = vadd.xlane.f32.xlu0 %v2983_v2 }
0x13b7   : > { %v6012_v7 = vpop.eup %6011  ;;  %v5740_v8 = vpack.c.bf16 %v5901_v4, %v5900_v5 }
0x13b8   : > { %v3216_v10 = vsel %vm1112_vm7, %v6012_v7, 0.0 }
0x13b9   : > { %3217 = vadd.xlane.f32.xlu1 %v3216_v10  ;;  %5741 = vmatpush3.bf16.msra.mxu1 %v5740_v8 }
0x13ba   : > { %5459 = vmatprep.subr.mxu1 %v6143_v6 }
0x13bb   : > { %v6014_v19 = vpop.eup %6013 }
0x13bc   : > { %v3219_v11 = vsel %vm1112_vm7, %v6014_v19, 0.0 }
0x13bd   : > { %3220 = vadd.xlane.f32.xlu0 %v3219_v11 }
0x13bf   : > { %v6016_v12 = vpop.eup %6015 }
0x13c0   : > { %v3222_v13 = vsel %vm1119_vm8, %v6016_v12, 0.0 }
0x13c1   : > { %3223 = vadd.xlane.f32.xlu0 %v3222_v13 }
0x13ca   : > { %5903 = vrot.lane.b32.xlu1 %v6864_v53, %s7407_s2 }
0x13ce   : > { %3235 = vrot.lane.b32.xlu1 %v6868_v56, %s7407_s2  ;;  %s7411_s2 = smov 72  }
0x13d2   : > { %5908 = vrot.lane.b32.xlu1 %v6864_v53, %s7408_s6 }
0x13d6   : > { %3518 = vrot.lane.b32.xlu1 %v6868_v56, %s7408_s6  ;;  %s7412_s6 = smov 104  }
0x13d7   : > { %2996 = vrot.lane.b32.xlu0 %v6868_v56, %s7406_s0  ;;  %s7410_s0 = smov 48  }
0x13da   : > { %3510 = vrot.lane.b32.xlu1 %v6860_v38, %s7409_s4 }
0x13db   : > { %3508 = vrot.lane.b32.xlu0 %v6858_v50, %s7409_s4 }
0x13df   : > { %3512 = vrot.lane.b32.xlu0 %v6868_v56, %s7409_s4  ;;  %s4979_s4 = sshll.u32 %s6297_s5, 4  ;;  %s6155_s5 = smov [#allocation2]  }
0x13e0   : > { %s7272_s1 = scalar_lea.hbm %s7337_s23, %s4979_s4  ;;  %s6081_s8 = sshll.u32 %s6155_s5, 4  ;;  %s6082_s8 = int_to_ptr.vmem [resolvable:$false] %s6081_s8 }
0x143a   : > { %v2979_v14 = vpop.xlane.xlu0 %2978 }
0x143b   : > { %6017 = vrcp.f32 %v2979_v14 }
0x143e   : > { %v2982_v16 = vpop.xlane.xlu1 %2981 }
0x143f   : > { %6019 = vrcp.f32 %v2982_v16 }
0x1442   : > { %v2985_v17 = vpop.xlane.xlu0 %2984 }
0x1443   : > { %6021 = vrcp.f32 %v2985_v17 }
0x1445   : > { %v6018_v23 = vpop.eup %6017 }
0x1446   : > { %v3218_v18 = vpop.xlane.xlu1 %3217  ;;  %v2987_v40 = vmul.f32 %v6018_v23, %v6006_v58 }
0x1447   : > { %6023 = vrcp.f32 %v3218_v18 }
0x1449   : > { %v6020_v34 = vpop.eup %6019 }
0x144a   : > { %v3221_v32 = vpop.xlane.xlu0 %3220  ;;  %v5904_v33 = vpop.permute.xlu1 %5903  ;;  %v2989_v37 = vmul.f32 %v6020_v34, %v6008_v57 }
0x144b   : > { %v5906_v24 = vunpack.i.h.bf16 %v5904_v33  ;;  %v5905_v26 = vunpack.i.l.bf16 %v5904_v33  ;;  %6025 = vrcp.f32 %v3221_v32 }
0x144d   : > { %v5747_v36 = vpack.c.bf16 %v5906_v24, %v5905_v26  ;;  %v6022_v39 = vpop.eup %6021 }
0x144e   : > { %v3224_v21 = vpop.xlane.xlu0 %3223  ;;  %v3236_v43 = vpop.permute.xlu1 %3235  ;;  %v2991_v29 = vmul.f32 %v6022_v39, %v6010_v0 }
0x144f   : > { %6027 = vrcp.f32 %v3224_v21 }
0x1451   : > { %v6024_v44 = vpop.eup %6023 }
0x1452   : > { %v2997_v30 = vpop.permute.xlu0 %2996  ;;  %v3226_v45 = vmul.f32 %v6024_v44, %v6012_v7  ;;  %v5909_v48 = vpop.permute.xlu1 %5908 }
0x1453   : > { %5460 = vmatpush3.msk.msra.mxu1 %vm1164_vm9, %v2997_v30  ;;  %v5911_v58 = vunpack.i.h.bf16 %v5909_v48  ;;  %v5910_v41 = vunpack.i.l.bf16 %v5909_v48 }
0x1454   : > { %5462 = vmatmul.mubr.msk.f32.vlgmr.msra.gmra.mrb[54].mxu1 %vm1112_vm7, %v2987_v40  ;;  %5746 = vmatprep.subr.bf16.mxu1 %v6141_v3 }
0x1455   : > { %5748 = vmatpush3.bf16.msra.mxu1 %v5747_v36  ;;  %5464 = vmatprep.mubr.msk.f32.mxu1 %vm6142_vm0, %v6143_v6  ;;  %v6026_v31 = vpop.eup %6025  ;;  %v5750_v61 = vpack.c.bf16 %v5911_v58, %v5910_v41 }
0x1456   : > { %5489 = vmatprep.subr.mxu1 %v6143_v6  ;;  %v3228_v28 = vmul.f32 %v6026_v31, %v6014_v19  ;;  %v3519_v0 = vpop.permute.xlu1 %3518  ;;  %v3509_v15 = vpop.permute.xlu0 %3508 }
0x1458   : > { %5465 = vmatmul.mubr.msk.f32.gmra.mrb[56].mxu1 %vm1112_vm7, %v2989_v37 }
0x1459   : > { %5490 = vmatpush3.msk.msra.mxu1 %vm1164_vm9, %v3236_v43  ;;  %5467 = vmatprep.mubr.msk.f32.mxu1 %vm6142_vm0, %v6143_v6  ;;  %v6028_v35 = vpop.eup %6027 }
0x145a   : > { %5511 = vmatprep.subr.mxu1 %v6143_v6  ;;  %v3230_v46 = vmul.f32 %v6028_v35, %v6016_v12  ;;  %v3511_v2 = vpop.permute.xlu1 %3510  ;;  %v3513_v4 = vpop.permute.xlu0 %3512 }
0x145c   : > { %5468 = vmatmul.mubr.msk.f32.gmra.mrb[58].mxu1 %vm1112_vm7, %v2991_v29 }
0x145d   : > { %5491 = vmatprep.mubr.msk.f32.mxu1 %vm6142_vm0, %v6143_v6 }
0x1460   : > { %5492 = vmatmul.mubr.msk.f32.vlgmr.msra.gmra.mrb[60].mxu1 %vm1112_vm7, %v3226_v45 }
0x1461   : > { %5494 = vmatprep.mubr.msk.f32.mxu1 %vm6142_vm0, %v6143_v6  ;;  %5512 = vmatpush3.msra.mxu1 %v4893_v55 }
0x1462   : > { %5753 = vmatprep.subr.bf16.mxu1 %v6141_v3 }
0x1464   : > { %5495 = vmatmul.mubr.msk.f32.gmra.mrb[62].mxu1 %vm1112_vm7, %v3228_v28 }
0x1465   : > { %5497 = vmatprep.mubr.msk.f32.mxu1 %vm6142_vm0, %v6143_v6 }
0x1468   : > { %5498 = vmatmul.mubr.msk.f32.gmra.mrb[64].mxu1 %vm1112_vm7, %v3230_v46 }
0x1469   : > { %5513 = vmatprep.mubr.msk.f32.mxu1 %vm6142_vm0, %v6143_v6 }
0x1527   : > { %v3077_v22 = vpop.f32.mrb[54].mxu1 }
0x1528   : > { %v5463_v47 = vpop.f32.mrb[55].mxu1  ;;  %5514 = vmatmul.mubr.msk.f32.vlgmr.msra.gmra.mrb[66].mxu1 %vm1016_vm5, %v3077_v22 }
0x1529   : > { %5516 = vmatprep.mubr.msk.f32.mxu1 %vm6142_vm0, %v6143_v6 }
0x152b   : > { %v3082_v27 = vpop.f32.mrb[56].mxu1 }
0x152c   : > { %v5466_v25 = vpop.f32.mrb[57].mxu1  ;;  %5517 = vmatmul.mubr.msk.f32.gmra.mrb[68].mxu1 %vm1016_vm5, %v3082_v27 }
0x152d   : > { %5519 = vmatprep.mubr.msk.f32.mxu1 %vm6142_vm0, %v6143_v6 }
0x152f   : > { %v3087_v49 = vpop.f32.mrb[58].mxu1 }
0x1530   : > { %v5469_v52 = vpop.f32.mrb[59].mxu1  ;;  %5520 = vmatmul.mubr.msk.f32.gmra.mrb[70].mxu1 %vm1016_vm5, %v3087_v49 }
0x1531   : > { %5543 = vmatprep.mubr.msk.f32.mxu1 %vm6142_vm0, %v6143_v6 }
0x1533   : > { %v3316_v57 = vpop.f32.mrb[60].mxu1 }
0x1534   : > { %v5493_v59 = vpop.f32.mrb[61].mxu1  ;;  %5503 = vmatmul.mubr.msk.f32.vlgmr.msra.gmra.mrb[60].mxu0 %vm1016_vm5, %v3316_v57 }
0x1535   : > { %5752 = vmatpush3.bf16.xpose.msk.msra.mxu0 %vm6453_vm6, %v5750_v61  ;;  %5505 = vmatprep.mubr.msk.f32.mxu0 %vm6142_vm0, %v6143_v6 }
0x1536   : > { %5526 = vmatprep.subr.mxu0 %v6143_v6 }
0x1537   : > { %v3321_v60 = vpop.f32.mrb[62].mxu1 }
0x1538   : > { %v5496_v62 = vpop.f32.mrb[63].mxu1  ;;  %5506 = vmatmul.mubr.msk.f32.gmra.mrb[62].mxu0 %vm1016_vm5, %v3321_v60 }
0x1539   : > { %5508 = vmatprep.mubr.msk.f32.mxu0 %vm6142_vm0, %v6143_v6 }
0x153b   : > { %v3326_v63 = vpop.f32.mrb[64].mxu1 }
0x153c   : > { %v5499_v1 = vpop.f32.mrb[65].mxu1  ;;  %5509 = vmatmul.mubr.msk.f32.gmra.mrb[64].mxu0 %vm1016_vm5, %v3326_v63 }
0x153d   : > { %5527 = vmatpush3.xpose.msk.msra.mxu0 %vm1016_vm5, %v3519_v0  ;;  %5528 = vmatprep.mubr.msk.f32.mxu0 %vm6142_vm0, %v6143_v6 }
0x153e   : > { %5552 = vmatprep.subr.mxu0 %v6143_v6 }
0x1540   : > { %5529 = vmatmul.mubr.msk.f32.vlgmr.msra.gmra.mrb[66].mxu0 %vm1016_vm5, %v3509_v15 }
0x1541   : > { %5531 = vmatprep.mubr.msk.f32.mxu0 %vm6142_vm0, %v6143_v6  ;;  %5553 = vmatpush3.msra.mxu0 %v4895_v42 }
0x1542   : > { %5760 = vmatprep.subr.bf16.mxu0 %v6141_v3 }
0x1544   : > { %5532 = vmatmul.mubr.msk.f32.gmra.mrb[68].mxu0 %vm1016_vm5, %v3511_v2 }
0x1545   : > { %5534 = vmatprep.mubr.msk.f32.mxu0 %vm6142_vm0, %v6143_v6 }
0x1548   : > { %5535 = vmatmul.mubr.msk.f32.gmra.mrb[70].mxu0 %vm1016_vm5, %v3513_v4 }
0x1549   : > { %5554 = vmatprep.mubr.msk.f32.mxu0 %vm6142_vm0, %v6143_v6 }
0x15fb   : > { %v3494_v5 = vpop.f32.mrb[66].mxu1 }
0x15fc   : > { %v5515_v7 = vpop.f32.mrb[67].mxu1 }
0x15ff   : > { %v3499_v8 = vpop.f32.mrb[68].mxu1 }
0x1600   : > { %v5518_v10 = vpop.f32.mrb[69].mxu1 }
0x1603   : > { %v3504_v19 = vpop.f32.mrb[70].mxu1 }
0x1604   : > { %v5521_v11 = vpop.f32.mrb[71].mxu1 }
0x1607   : > { %v3405_v12 = vpop.f32.mrb[60].mxu0 }
0x1608   : > { %v7007_v13 = vadd.f32 %v3494_v5, %v3405_v12  ;;  %v5504_v14 = vpop.f32.mrb[61].mxu0 }
0x160b   : > { %v3410_v16 = vpop.f32.mrb[62].mxu0 }
0x160c   : > { %v7009_v17 = vadd.f32 %v3499_v8, %v3410_v16  ;;  %v5507_v18 = vpop.f32.mrb[63].mxu0 }
0x160f   : > { %v3415_v32 = vpop.f32.mrb[64].mxu0 }
0x1610   : > { %v7011_v33 = vadd.f32 %v3504_v19, %v3415_v32  ;;  %v5510_v21 = vpop.f32.mrb[65].mxu0 }
0x1613   : > { %v3598_v23 = vpop.f32.mrb[66].mxu0 }
0x1614   : > { %v3612_v24 = vmul.f32 0.35355338, %v3598_v23  ;;  %v5530_v26 = vpop.f32.mrb[67].mxu0 }
0x1616   : > { %v3615_v40 = vsel %vm1112_vm7, %v3612_v24, -inf }
0x1617   : > { %3616 = vmax.xlane.f32.xlu1 %v3615_v40  ;;  %v3603_v30 = vpop.f32.mrb[68].mxu0 }
0x1618   : > { %v3613_v34 = vmul.f32 0.35355338, %v3603_v30  ;;  %v5533_v36 = vpop.f32.mrb[69].mxu0 }
0x161a   : > { %v3618_v37 = vsel %vm1112_vm7, %v3613_v34, -inf }
0x161b   : > { %3619 = vmax.xlane.f32.xlu0 %v3618_v37  ;;  %v3608_v39 = vpop.f32.mrb[70].mxu0 }
0x161c   : > { %v3614_v43 = vmul.f32 0.35355338, %v3608_v39  ;;  %v5536_v29 = vpop.f32.mrb[71].mxu0 }
0x161e   : > { %v3621_v44 = vsel %vm1119_vm8, %v3614_v43, -inf }
0x161f   : > { %3622 = vmax.xlane.f32.xlu0 %v3621_v44 }
0x1628   : > { %5913 = vrot.lane.b32.xlu1 %v6864_v53, %s7410_s0 }
0x16a4   : > { %v3617_v45 = vpop.xlane.xlu1 %3616 }
0x16a5   : > { %v3624_v31 = vsub.f32 %v3612_v24, %v3617_v45 }
0x16a7   : > { %v3627_v28 = vmul.f32 1.442695, %v3624_v31 }
0x16a8   : > { %v5914_v35 = vpop.permute.xlu1 %5913  ;;  %v3620_v46 = vpop.xlane.xlu0 %3619 }
0x16a9   : > { %6029 = vpow2.f32 %v3627_v28  ;;  %v5916_v55 = vunpack.i.h.bf16 %v5914_v35  ;;  %v5915_v20 = vunpack.i.l.bf16 %v5914_v35  ;;  %v3625_v22 = vsub.f32 %v3613_v34, %v3620_v46 }
0x16ab   : > { %v5754_v47 = vpack.c.bf16 %v5916_v55, %v5915_v20  ;;  %v3629_v27 = vmul.f32 1.442695, %v3625_v22 }
0x16ac   : > { %v3623_v48 = vpop.xlane.xlu0 %3622 }
0x16ad   : > { %6031 = vpow2.f32 %v3629_v27  ;;  %v3626_v25 = vsub.f32 %v3614_v43, %v3623_v48  ;;  %5755 = vmatpush3.bf16.msra.mxu1 %v5754_v47 }
0x16ae   : > { %5541 = vmatprep.subr.mxu1 %v6143_v6 }
0x16af   : > { %v3631_v58 = vmul.f32 1.442695, %v3626_v25 }
0x16b1   : > { %6033 = vpow2.f32 %v3631_v58 }
0x16b3   : > { %v6030_v41 = vpop.eup %6029 }
0x16b4   : > { %v3633_v49 = vsel %vm1112_vm7, %v6030_v41, 0.0 }
0x16b5   : > { %3634 = vadd.xlane.f32.xlu0 %v3633_v49 }
0x16b7   : > { %v6032_v52 = vpop.eup %6031 }
0x16b8   : > { %v3636_v61 = vsel %vm1112_vm7, %v6032_v52, 0.0 }
0x16b9   : > { %3637 = vadd.xlane.f32.xlu1 %v3636_v61 }
0x16bb   : > { %v6034_v57 = vpop.eup %6033 }
0x16bc   : > { %v3639_v59 = vsel %vm1119_vm8, %v6034_v57, 0.0 }
0x16bd   : > { %3640 = vadd.xlane.f32.xlu0 %v3639_v59 }
0x16ca   : > { %5918 = vrot.lane.b32.xlu1 %v6864_v53, %s7411_s2 }
0x16ce   : > { %3849 = vrot.lane.b32.xlu1 %v6868_v56, %s7411_s2 }
0x16d2   : > { %3839 = vrot.lane.b32.xlu1 %v6858_v50, %s7412_s6 }
0x16d3   : > { %3652 = vrot.lane.b32.xlu0 %v6868_v56, %s7410_s0  ;;  %s701_s0 = sand.u32 1, %s6131_s30  }
0x16d4   : > { %s702_s29 = scalar_lea.vmem [#allocation2], %s701_s0  ;;  %s4736_s2 = scalar_lea.sflag [#allocation3], %s701_s0 }
0x1742   : > { %v3635_v60 = vpop.xlane.xlu0 %3634 }
0x1743   : > { %6035 = vrcp.f32 %v3635_v60 }
0x1746   : > { %v3638_v62 = vpop.xlane.xlu1 %3637 }
0x1747   : > { %6037 = vrcp.f32 %v3638_v62 }
0x174a   : > { %v3641_v63 = vpop.xlane.xlu0 %3640  ;;  %v5919_v1 = vpop.permute.xlu1 %5918 }
0x174b   : > { %6039 = vrcp.f32 %v3641_v63  ;;  %v5921_v4 = vunpack.i.h.bf16 %v5919_v1  ;;  %v5920_v5 = vunpack.i.l.bf16 %v5919_v1 }
0x174d   : > { %v6036_v0 = vpop.eup %6035  ;;  %v5757_v8 = vpack.c.bf16 %v5921_v4, %v5920_v5 }
0x174e   : > { %v3643_v15 = vmul.f32 %v6036_v0, %v6030_v41  ;;  %v3653_v2 = vpop.permute.xlu0 %3652  ;;  %v3850_v11 = vpop.permute.xlu1 %3849 }
0x174f   : > { %5542 = vmatpush3.msk.msra.mxu1 %vm1164_vm9, %v3653_v2 }
0x1750   : > { %5544 = vmatmul.mubr.msk.f32.vlgmr.msra.gmra.mrb[72].mxu1 %vm1112_vm7, %v3643_v15  ;;  %5756 = vmatprep.subr.bf16.mxu1 %v6141_v3 }
0x1751   : > { %v6038_v50 = vpop.eup %6037  ;;  %5546 = vmatprep.mubr.msk.f32.mxu1 %vm6142_vm0, %v6143_v6 }
0x1752   : > { %v3645_v7 = vmul.f32 %v6038_v50, %v6032_v52  ;;  %v3840_v12 = vpop.permute.xlu1 %3839  ;;  %v4896_v52 = vld [vmem:[%s7402_s9 + $0x38] sm:$0xff]  ;;  %s6083_s9 = scalar_lea.vmem %s6082_s8, 32 }
0x1754   : > { %5547 = vmatmul.mubr.msk.f32.gmra.mrb[74].mxu1 %vm1112_vm7, %v3645_v7 }
0x1755   : > { %v6040_v10 = vpop.eup %6039  ;;  %5549 = vmatprep.mubr.msk.f32.mxu1 %vm6142_vm0, %v6143_v6 }
0x1756   : > { %5759 = vmatpush3.bf16.xpose.msk.msra.mxu1 %vm6453_vm6, %v5757_v8  ;;  %v3647_v19 = vmul.f32 %v6040_v10, %v6034_v57 }
0x1757   : > { %5567 = vmatprep.subr.mxu1 %v6143_v6 }
0x1758   : > { %5550 = vmatmul.mubr.msk.f32.gmra.mrb[76].mxu1 %vm1112_vm7, %v3647_v19 }
0x1759   : > { %5569 = vmatprep.mubr.msk.f32.mxu1 %vm6142_vm0, %v6143_v6 }
0x175e   : > { %5568 = vmatpush3.xpose.msk.msra.mxu1 %vm1016_vm5, %v3850_v11  ;;  %v7104_v11 = vld [vmem:[%s7324_s10 + $0x1] ss:$0 sm:$0xff] }
0x175f   : > { %5593 = vmatprep.subr.mxu1 %v6143_v6 }
0x1761   : > { %5570 = vmatmul.mubr.msk.f32.vlgmr.msra.gmra.mrb[78].mxu1 %vm1016_vm5, %v3840_v12 }
0x1762   : > { %5572 = vmatprep.mubr.msk.f32.mxu1 %vm6142_vm0, %v6143_v6  ;;  %5594 = vmatpush3.msra.mxu1 %v4896_v52  ;;  %v4967_v52 = vld [vmem:[%s7329_s15 + $0x58] sm:$0xff] }
0x1763   : > { %5769 = vmatprep.subr.bf16.mxu1 %v6141_v3 }
0x1823   : > { %v3733_v14 = vpop.f32.mrb[72].mxu1 }
0x1824   : > { %v5545_v16 = vpop.f32.mrb[73].mxu1  ;;  %5555 = vmatmul.mubr.msk.f32.vlgmr.msra.gmra.mrb[72].mxu0 %vm1016_vm5, %v3733_v14 }
0x1825   : > { %5557 = vmatprep.mubr.msk.f32.mxu0 %vm6142_vm0, %v6143_v6 }
0x1827   : > { %v3738_v18 = vpop.f32.mrb[74].mxu1 }
0x1828   : > { %v5548_v32 = vpop.f32.mrb[75].mxu1  ;;  %5558 = vmatmul.mubr.msk.f32.gmra.mrb[74].mxu0 %vm1016_vm5, %v3738_v18 }
0x1829   : > { %5560 = vmatprep.mubr.msk.f32.mxu0 %vm6142_vm0, %v6143_v6 }
0x182b   : > { %v3743_v21 = vpop.f32.mrb[76].mxu1 }
0x182c   : > { %v5551_v23 = vpop.f32.mrb[77].mxu1  ;;  %5561 = vmatmul.mubr.msk.f32.gmra.mrb[76].mxu0 %vm1016_vm5, %v3743_v21 }
0x182d   : > { %5584 = vmatprep.mubr.msk.f32.mxu0 %vm6142_vm0, %v6143_v6 }
0x1834   : > { %v3929_v24 = vpop.f32.mrb[78].mxu1 }
0x1835   : > { %v3943_v26 = vmul.f32 0.35355338, %v3929_v24  ;;  %v5571_v40 = vpop.f32.mrb[79].mxu1 }
0x1837   : > { %v3946_v30 = vsel %vm1112_vm7, %v3943_v26, -inf }
0x1838   : > { %3947 = vmax.xlane.f32.xlu0 %v3946_v30 }
0x184e   : > { %5923 = vrot.lane.b32.xlu0 %v6864_v53, %s7413_s28 }
0x1852   : > { %3841 = vrot.lane.b32.xlu0 %v6860_v38, %s7412_s6 }
0x18c5   : > { %v3948_v34 = vpop.xlane.xlu0 %3947 }
0x18c6   : > { %v3955_v36 = vsub.f32 %v3943_v26, %v3948_v34 }
0x18c8   : > { %v3958_v37 = vmul.f32 1.442695, %v3955_v36 }
0x18c9   : > { %v5924_v39 = vpop.permute.xlu0 %5923 }
0x18ca   : > { %6041 = vpow2.f32 %v3958_v37  ;;  %v5926_v43 = vunpack.i.h.bf16 %v5924_v39  ;;  %v5925_v29 = vunpack.i.l.bf16 %v5924_v39  ;;  %v4955_v39 = vld [vmem:[%s7327_s13 + $0x20] sm:$0xff] }
0x18cc   : > { %v5761_v44 = vpack.c.bf16 %v5926_v43, %v5925_v29  ;;  %v4956_v43 = vld [vmem:[%s7327_s13 + $0x28] sm:$0xff] }
0x18cd   : > { %v3842_v45 = vpop.permute.xlu0 %3841  ;;  %v5764_v29 = vpack.c.bf16 %v4956_v43, %v4955_v39 }
0x18ce   : > { %5573 = vmatmul.mubr.msk.f32.gmra.mrb[80].mxu1 %vm1016_vm5, %v3842_v45  ;;  %5762 = vmatpush3.bf16.msra.mxu0 %v5761_v44  ;;  %v4957_v44 = vld [vmem:[%s7327_s13 + $0x30] sm:$0xff]  ;;  %v4958_v45 = vld [vmem:[%s7327_s13 + $0x38] sm:$0xff] }
0x18cf   : > { %5582 = vmatprep.subr.mxu0 %v6143_v6  ;;  %5575 = vmatprep.mubr.msk.f32.mxu1 %vm6142_vm0, %v6143_v6 }
0x18d4   : > { %v6042_v53 = vpop.eup %6041 }
0x18d5   : > { %v3964_v38 = vsel %vm1112_vm7, %v6042_v53, 0.0 }
0x18d6   : > { %3965 = vadd.xlane.f32.xlu1 %v3964_v38 }
0x18e7   : > { %3983 = vrot.lane.b32.xlu1 %v6868_v56, %s7413_s28  ;;  %s4748_s28 = sshll.u32 %s702_s29, 4  ;;  %s7274_s28 = int_to_ptr.vmem [resolvable:$true] %s4748_s28 }
0x18e8   : > { %p6084_p0 = scmp.lt.s32.totalorder %s7274_s28, %s6082_s8 }
0x18eb   : > { %3843 = vrot.lane.b32.xlu1 %v6868_v56, %s7412_s6  ;;  %s6077_s6 = scalar_lea.vmem %s7274_s28, 16 }
0x18ec   : > { %p6078_p11 = scmp.ne.s32.totalorder %s7274_s28, %s6077_s6  ;;  %p6085_p1 = scmp.lt.s32.totalorder %s6083_s9, %s6077_s6 }
0x18ee   : > { %p6079_p12 = pnand %p6078_p11, %p6314_p5  ;;  %p6086_p2 = por %p6085_p1, %p6084_p0 }
0x18f0   : > { %p6080_p13 = pneg %p6079_p12 }
0x18f2   : > { %p6087_p3 = pnand %p6086_p2, %p6080_p13 }
0x18f7   : > { %v3822_v31 = vpop.f32.mrb[72].mxu0 }
0x18f8   : > { %v3836_v28 = vadd.f32 %v3822_v31, %v7007_v13  ;;  %v5556_v35 = vpop.f32.mrb[73].mxu0 }
0x18fb   : > { %v3827_v46 = vpop.f32.mrb[74].mxu0 }
0x18fc   : > { %v7078_v55 = vadd.f32 %v3827_v46, %v7009_v17  ;;  %v5559_v20 = vpop.f32.mrb[75].mxu0  ;;  %v7138_v46 = vld [vmem:[%s7325_s11 + $0x1] ss:$0 sm:$0xff] }
0x18ff   : > { %v3832_v22 = vpop.f32.mrb[76].mxu0 }
0x1900   : > { %v7081_v47 = vadd.f32 %v3832_v22, %v7011_v33  ;;  %v5562_v27 = vpop.f32.mrb[77].mxu0  ;;  %v7143_v22 = vld [vmem:[%s7326_s12 + $0x1] ss:$0 sm:$0xff] }
0x1963   : > { %v3966_v48 = vpop.xlane.xlu1 %3965 }
0x1964   : > { %6043 = vrcp.f32 %v3966_v48 }
0x1967   : > { %v3984_v25 = vpop.permute.xlu1 %3983 }
0x1968   : > { %5583 = vmatpush3.msk.msra.mxu0 %vm1164_vm9, %v3984_v25 }
0x1969   : > { %5763 = vmatprep.subr.bf16.mxu0 %v6141_v3 }
0x196b   : > { %v3844_v56 = vpop.permute.xlu1 %3843 }
0x196c   : > { %5576 = vmatmul.mubr.msk.f32.gmra.mrb[82].mxu1 %vm1016_vm5, %v3844_v56 }
0x196d   : > { %5595 = vmatprep.mubr.msk.f32.mxu1 %vm6142_vm0, %v6143_v6 }
0x196e   : > { %v6044_v13 = vpop.eup %6043 }
0x196f   : > { %v3974_v17 = vmul.f32 %v6044_v13, %v6042_v53  ;;  %v5767_v53 = vpack.c.bf16 %v4958_v45, %v4957_v44 }
0x1971   : > { %5585 = vmatmul.mubr.msk.f32.vlgmr.msra.gmra.mrb[78].mxu0 %vm1112_vm7, %v3974_v17 }
0x1972   : > { %5587 = vmatprep.mubr.msk.f32.mxu0 %vm6142_vm0, %v6143_v6  ;;  %5765 = vmatpush3.bf16.msra.mxu0 %v5764_v29 }
0x1973   : > { %5766 = vmatprep.subr.bf16.mxu0 %v6141_v3 }
0x1976   : > { %5768 = vmatpush3.bf16.msra.mxu0 %v5767_v53 }
0x1977   : > { %5781 = vmatprep.subr.bf16.mxu0 %v6141_v3 }
0x19a1   : > { %v3934_v33 = vpop.f32.mrb[80].mxu1 }
0x19a2   : > { %v3944_v58 = vmul.f32 0.35355338, %v3934_v33  ;;  %v5574_v41 = vpop.f32.mrb[81].mxu1  ;;  %v4964_v33 = vld [vmem:[%s7329_s15 + $0x40] sm:$0xff] }
0x19a4   : > { %v3949_v49 = vsel %vm1112_vm7, %v3944_v58, -inf }
0x19a5   : > { %3950 = vmax.xlane.f32.xlu0 %v3949_v49  ;;  %v4966_v49 = vld [vmem:[%s7329_s15 + $0x50] sm:$0xff] }
0x1a32   : > { %v3951_v5 = vpop.xlane.xlu0 %3950 }
0x1a33   : > { %v3956_v50 = vsub.f32 %v3944_v58, %v3951_v5  ;;  %v4965_v58 = vld [vmem:[%s7329_s15 + $0x48] sm:$0xff] }
0x1a34   : > { %v5770_v41 = vpack.c.bf16 %v4965_v58, %v4964_v33 }
0x1a35   : > { %v3960_v7 = vmul.f32 1.442695, %v3956_v50 }
0x1a3f   : > { %v3939_v61 = vpop.f32.mrb[82].mxu1 }
0x1a40   : > { %v3945_v57 = vmul.f32 0.35355338, %v3939_v61  ;;  %v5577_v59 = vpop.f32.mrb[83].mxu1  ;;  %v5773_v61 = vpack.c.bf16 %v4967_v52, %v4966_v49 }
0x1a41   : > { %v4969_v59 = vld [vmem:[%s7329_s15 + $0x68] sm:$0xff] }
0x1a42   : > { %v3952_v60 = vsel %vm1119_vm8, %v3945_v57, -inf }
0x1a43   : > { %3953 = vmax.xlane.f32.xlu1 %v3952_v60 }
0x1a44   : > { %v4064_v62 = vpop.f32.mrb[78].mxu0 }
0x1a45   : > { %v5586_v63 = vpop.f32.mrb[79].mxu0  ;;  %5596 = vmatmul.mubr.msk.f32.vlgmr.msra.gmra.mrb[84].mxu1 %vm1016_vm5, %v4064_v62  ;;  %v4970_v62 = vld [vmem:[%s7329_s15 + $0x70] sm:$0xff] }
0x1a46   : > { %5598 = vmatprep.mubr.msk.f32.mxu1 %vm6142_vm0, %v6143_v6  ;;  %5771 = vmatpush3.bf16.msra.mxu1 %v5770_v41  ;;  %v4971_v63 = vld [vmem:[%s7329_s15 + $0x78] sm:$0xff] }
0x1a47   : > { %5772 = vmatprep.subr.bf16.mxu1 %v6141_v3 }
0x1a4a   : > { %5774 = vmatpush3.bf16.msra.mxu1 %v5773_v61 }
0x1a4b   : > { %5775 = vmatprep.subr.bf16.mxu1 %v6141_v3 }
0x1ad0   : > { %v3954_v0 = vpop.xlane.xlu1 %3953 }
0x1ad1   : > { %v3957_v1 = vsub.f32 %v3945_v57, %v3954_v0  ;;  %v4968_v57 = vld [vmem:[%s7329_s15 + $0x60] sm:$0xff]  ;;  %v5779_v0 = vpack.c.bf16 %v4971_v63, %v4970_v62 }
0x1ad2   : > { %v5776_v60 = vpack.c.bf16 %v4969_v59, %v4968_v57 }
0x1ad3   : > { %v3962_v15 = vmul.f32 1.442695, %v3957_v1  ;;  %v7186_v1 = vld [vmem:[%s7328_s14 + $0x1] ss:$0 sm:$0xff] }
0x1ad4   : > { %5777 = vmatpush3.bf16.msra.mxu1 %v5776_v60 }
0x1ad5   : > { %6045 = vpow2.f32 %v3962_v15  ;;  %5778 = vmatprep.subr.bf16.mxu1 %v6141_v3 }
0x1ad6   : > { %6047 = vpow2.f32 %v3960_v7 }
0x1ad8   : > { %5780 = vmatpush3.bf16.msra.mxu1 %v5779_v0 }
0x1adf   : > { %v6046_v2 = vpop.eup %6045 }
0x1ae0   : > { %v3970_v4 = vsel %vm1119_vm8, %v6046_v2, 0.0  ;;  %v6048_v16 = vpop.eup %6047 }
0x1ae1   : > { %3971 = vadd.xlane.f32.xlu1 %v3970_v4  ;;  %v3967_v18 = vsel %vm1112_vm7, %v6048_v16, 0.0 }
0x1b18   : > { %v4153_v8 = vpop.f32.mrb[84].mxu1 }
0x1b19   : > { %v4167_v10 = vadd.f32 %v4153_v8, %v3836_v28  ;;  %v5597_v19 = vpop.f32.mrb[85].mxu1 }
0x1b1b   : > { %v4170_v12 = vadd.f32 %v4167_v10, %v6806_v51 }
0x1b1d   : > { %v7108_v42 = vadd.f32 %v7104_v11, %v4170_v12 }
0x1b1f   : > { %v4188_v14 = vsel %vm843_vm3, %v7108_v42, 0.0 }
0x1b20   : > { %4189 = vadd.xlane.f32.xlu0 %v4188_v14 }
0x1b24   : > { %3968 = vadd.xlane.f32.xlu0 %v3967_v18 }
0x1b6e   : > { %v3972_v24 = vpop.xlane.xlu1 %3971 }
0x1bad   : > { %v4190_v32 = vpop.xlane.xlu0 %4189 }
0x1bae   : > { %v4197_v21 = vmul.f32 0.03125, %v4190_v32 }
0x1bb0   : > { %v4200_v23 = vsub.f32 %v7108_v42, %v4197_v21 }
0x1bb1   : > { %v3969_v26 = vpop.xlane.xlu0 %3968 }
0x1bb2   : > { %6049 = vrcp.f32 %v3969_v26  ;;  %v4203_v40 = vmul.f32 %v4200_v23, %v4200_v23 }
0x1bb3   : > { %6051 = vrcp.f32 %v3972_v24 }
0x1bb4   : > { %v4206_v51 = vsel %vm843_vm3, %v4203_v40, 0.0 }
0x1bb5   : > { %4207 = vadd.xlane.f32.xlu0 %v4206_v51 }
0x1bbc   : > { %v6050_v30 = vpop.eup %6049 }
0x1bbd   : > { %v3976_v34 = vmul.f32 %v6050_v30, %v6048_v16  ;;  %v6052_v36 = vpop.eup %6051 }
0x1bbe   : > { %v3978_v37 = vmul.f32 %v6052_v36, %v6046_v2 }
0x1bbf   : > { %5588 = vmatmul.mubr.msk.f32.gmra.mrb[80].mxu0 %vm1112_vm7, %v3976_v34 }
0x1bc0   : > { %5590 = vmatprep.mubr.msk.f32.mxu0 %vm6142_vm0, %v6143_v6 }
0x1bc3   : > { %5591 = vmatmul.mubr.msk.f32.gmra.mrb[82].mxu0 %vm1112_vm7, %v3978_v37 }
0x1bc4   : > { %5612 = vmatprep.mubr.msk.f32.mxu0 %vm6142_vm0, %v6143_v6 }
0x1c42   : > { %v4208_v38 = vpop.xlane.xlu0 %4207 }
0x1c43   : > { %v4215_v31 = vmul.f32 0.03125, %v4208_v38 }
0x1c45   : > { %v4218_v28 = vadd.f32 1e-05, %v4215_v31 }
0x1c47   : > { %6053 = vrsqrt.f32 %v4218_v28 }
0x1c51   : > { %v6054_v35 = vpop.eup %6053 }
0x1c52   : > { %v4224_v20 = vmul.f32 %v6054_v35, %v4200_v23 }
0x1c54   : > { %v4233_v27 = vmul.f32 %v7138_v46, %v4224_v20 }
0x1c56   : > { %v4242_v48 = vadd.f32 %v7143_v22, %v4233_v27 }
0x1c58   : > { %5613 = vmatmul.mubr.msk.f32.vlgmr.msra.gmra.mrb[84].mxu0 %vm843_vm3, %v4242_v48 }
0x1c59   : > { %5615 = vmatprep.mubr.msk.f32.mxu0 %vm6142_vm0, %v6143_v6 }
0x1c92   : > { %v4069_v25 = vpop.f32.mrb[80].mxu0 }
0x1c93   : > { %v5589_v56 = vpop.f32.mrb[81].mxu0  ;;  %5599 = vmatmul.mubr.msk.f32.gmra.mrb[86].mxu1 %vm1016_vm5, %v4069_v25 }
0x1c94   : > { %5601 = vmatprep.mubr.msk.f32.mxu1 %vm6142_vm0, %v6143_v6 }
0x1c96   : > { %v4074_v13 = vpop.f32.mrb[82].mxu0 }
0x1c97   : > { %v5592_v17 = vpop.f32.mrb[83].mxu0  ;;  %5602 = vmatmul.mubr.msk.f32.gmra.mrb[88].mxu1 %vm1016_vm5, %v4074_v13 }
0x1c98   : > { %5637 = vmatprep.mubr.msk.f32.mxu1 %vm6142_vm0, %v6143_v6 }
0x1d2b   : > { %v4333_v15 = vpop.f32.mrb[84].mxu0 }
0x1d2c   : > { %v4334_v2 = vadd.f32 %v7186_v1, %v4333_v15  ;;  %v5614_v4 = vpop.f32.mrb[85].mxu0 }
0x1d2e   : > { %v4350_v5 = vmul.f32 0.70710677, %v4334_v2  ;;  %v4347_v43 = vmul.f32 0.5, %v4334_v2 }
0x1d30   : > { %v4353_v50 = vand.u32 2147483647, %v4350_v5  ;;  %vm4413_vm14 = vcmp.ge.f32.partialorder %v4350_v5, 0.0 }
0x1d32   : > { %v4356_v7 = vmul.f32 0.3275911, %v4353_v50  ;;  %v4395_v10 = vsub.f32 0.0, %v4353_v50 }
0x1d34   : > { %v4359_v8 = vadd.f32 1.0, %v4356_v7  ;;  %v4398_v12 = vmul.f32 %v4395_v10, %v4353_v50 }
0x1d36   : > { %6055 = vrcp.f32 %v4359_v8  ;;  %v4401_v18 = vmul.f32 1.442695, %v4398_v12 }
0x1d38   : > { %6057 = vpow2.f32 %v4401_v18 }
0x1d40   : > { %v6056_v19 = vpop.eup %6055 }
0x1d41   : > { %v4368_v14 = vmul.f32 1.0614054, %v6056_v19 }
0x1d42   : > { %v6058_v30 = vpop.eup %6057 }
0x1d43   : > { %v4371_v16 = vadd.f32 -1.4531521, %v4368_v14 }
0x1d45   : > { %v4374_v32 = vmul.f32 %v6056_v19, %v4371_v16 }
0x1d47   : > { %v4377_v21 = vadd.f32 1.4214138, %v4374_v32 }
0x1d49   : > { %v4380_v23 = vmul.f32 %v6056_v19, %v4377_v21 }
0x1d4b   : > { %v4383_v24 = vadd.f32 -0.28449672, %v4380_v23 }
0x1d4d   : > { %v4386_v26 = vmul.f32 %v6056_v19, %v4383_v24  ;;  %v4550_v24 = vld [vmem:[%s7333_s19] sm:$0xff] }
0x1d4f   : > { %v4389_v40 = vadd.f32 0.2548296, %v4386_v26  ;;  %v4551_v26 = vld [vmem:[%s7333_s19 + $0x8] sm:$0xff] }
0x1d51   : > { %v4392_v51 = vmul.f32 %v6056_v19, %v4389_v40  ;;  %v5782_v40 = vpack.c.bf16 %v4551_v26, %v4550_v24 }
0x1d53   : > { %v4407_v34 = vmul.f32 %v6058_v30, %v4392_v51  ;;  %5783 = vmatpush3.bf16.msra.mxu0 %v5782_v40 }
0x1d54   : > { %5784 = vmatprep.subr.bf16.mxu0 %v6141_v3 }
0x1d55   : > { %v4410_v36 = vsub.f32 1.0, %v4407_v34 }
0x1d57   : > { %v4416_v37 = vsub.f32 0.0, %v4410_v36 }
0x1d59   : > { %v4419_v39 = vsel %vm4413_vm14, %v4410_v36, %v4416_v37 }
0x1d5a   : > { %v4422_v29 = vadd.f32 1.0, %v4419_v39  ;;  %v4533_v39 = vld [vmem:[%s7331_s17] sm:$0x1] }
0x1d5c   : > { %v4425_v44 = vmul.f32 %v4422_v29, %v4347_v43  ;;  %v4534_v29 = vld [vmem:[%s7332_s18] sm:$0x1] }
0x1d5e   : > { %5638 = vmatmul.mubr.msk.f32.vlgmr.msra.gmra.mrb[90].mxu1 %vm2594_vm11, %v4425_v44 }
0x1d5f   : > { %5640 = vmatprep.mubr.msk.f32.mxu1 %vm6142_vm0, %v6143_v6 }
0x1d66   : > { %v4158_v45 = vpop.f32.mrb[86].mxu1 }
0x1d67   : > { %v4168_v53 = vadd.f32 %v4158_v45, %v7078_v55  ;;  %v5600_v38 = vpop.f32.mrb[87].mxu1 }
0x1d69   : > { %v4171_v31 = vadd.f32 %v4168_v53, %v6811_v54 }
0x1d6a   : > { %v4163_v28 = vpop.f32.mrb[88].mxu1 }
0x1d6b   : > { %v4169_v35 = vadd.f32 %v4163_v28, %v7081_v47  ;;  %v5603_v20 = vpop.f32.mrb[89].mxu1  ;;  %v4182_v27 = vadd.f32 %v7104_v11, %v4171_v31 }
0x1d6d   : > { %v4172_v48 = vadd.f32 %v4169_v35, %v6816_v9  ;;  %v4191_v25 = vsel %vm843_vm3, %v4182_v27, 0.0  ;;  %v4973_v9 = vld [vmem:[%s7330_s16 + $0x1] ss:$0 sm:$0xff] }
0x1d6e   : > { %4192 = vadd.xlane.f32.xlu0 %v4191_v25 }
0x1d6f   : > { %v4183_v56 = vadd.f32 %v7104_v11, %v4172_v48 }
0x1d71   : > { %v4194_v13 = vsel %vm850_vm4, %v4183_v56, 0.0 }
0x1d72   : > { %4195 = vadd.xlane.f32.xlu1 %v4194_v13 }
0x1dfb   : > { %v4193_v55 = vpop.xlane.xlu0 %4192 }
0x1dfc   : > { %v4198_v17 = vmul.f32 0.03125, %v4193_v55 }
0x1dfe   : > { %v4201_v33 = vsub.f32 %v4182_v27, %v4198_v17 }
0x1dff   : > { %v4196_v47 = vpop.xlane.xlu1 %4195 }
0x1e00   : > { %v4204_v54 = vmul.f32 %v4201_v33, %v4201_v33  ;;  %v4199_v41 = vmul.f32 0.03125, %v4196_v47 }
0x1e02   : > { %v4209_v58 = vsel %vm843_vm3, %v4204_v54, 0.0  ;;  %v4202_v52 = vsub.f32 %v4183_v56, %v4199_v41 }
0x1e03   : > { %4210 = vadd.xlane.f32.xlu1 %v4209_v58 }
0x1e04   : > { %v4205_v60 = vmul.f32 %v4202_v52, %v4202_v52 }
0x1e06   : > { %v4212_v62 = vsel %vm850_vm4, %v4205_v60, 0.0 }
0x1e31   : > { %v4520_v49 = vpop.f32.mrb[90].mxu1 }
0x1e32   : > { %v4521_v61 = vadd.f32 %v4973_v9, %v4520_v49  ;;  %v5639_v11 = vpop.f32.mrb[91].mxu1 }
0x1e34   : > { %v4532_v57 = vadd.f32 %v4521_v61, %v7108_v42 }
0x1e36   : > { %v4535_v59 = vsel %vm850_vm4, %v4532_v57, 0.0 }
0x1e37   : > { %4536 = vadd.xlane.f32.xlu0 %v4535_v59 }
0x1e3b   : > { %4213 = vadd.xlane.f32.xlu0 %v4212_v62 }
0x1e90   : > { %v4211_v63 = vpop.xlane.xlu1 %4210 }
0x1e91   : > { %v4216_v0 = vmul.f32 0.03125, %v4211_v63 }
0x1e93   : > { %v4219_v15 = vadd.f32 1e-05, %v4216_v0 }
0x1e95   : > { %6059 = vrsqrt.f32 %v4219_v15 }
0x1e9f   : > { %v6060_v2 = vpop.eup %6059 }
0x1ea0   : > { %v4225_v4 = vmul.f32 %v6060_v2, %v4201_v33 }
0x1ea2   : > { %v4234_v5 = vmul.f32 %v7138_v46, %v4225_v4 }
0x1ea4   : > { %v4243_v50 = vadd.f32 %v7143_v22, %v4234_v5 }
0x1ea6   : > { %5616 = vmatmul.mubr.msk.f32.gmra.mrb[86].mxu0 %vm843_vm3, %v4243_v50 }
0x1ea7   : > { %5618 = vmatprep.mubr.msk.f32.mxu0 %vm6142_vm0, %v6143_v6 }
0x1ec4   : > { %v4537_v42 = vpop.xlane.xlu0 %4536 }
0x1ec5   : > { %v4538_v7 = vmul.f32 0.03125, %v4537_v42 }
0x1ec7   : > { %v4539_v8 = vsub.f32 %v4532_v57, %v4538_v7 }
0x1ec8   : > { %v4214_v10 = vpop.xlane.xlu0 %4213 }
0x1ec9   : > { %v4217_v19 = vmul.f32 0.03125, %v4214_v10  ;;  %v4540_v12 = vmul.f32 %v4539_v8, %v4539_v8 }
0x1ecb   : > { %v4220_v14 = vadd.f32 1e-05, %v4217_v19  ;;  %v4541_v16 = vsel %vm850_vm4, %v4540_v12, 0.0 }
0x1ecc   : > { %4542 = vadd.xlane.f32.xlu1 %v4541_v16 }
0x1ecd   : > { %6061 = vrsqrt.f32 %v4220_v14 }
0x1ed7   : > { %v6062_v18 = vpop.eup %6061 }
0x1ed8   : > { %v4226_v32 = vmul.f32 %v6062_v18, %v4202_v52 }
0x1eda   : > { %v4235_v21 = vmul.f32 %v7138_v46, %v4226_v32  ;;  %v4552_v46 = vld [vmem:[%s7333_s19 + $0x10] sm:$0xff] }
0x1edc   : > { %v4244_v23 = vadd.f32 %v7143_v22, %v4235_v21  ;;  %v4553_v22 = vld [vmem:[%s7333_s19 + $0x18] sm:$0xff] }
0x1edd   : > { %v5785_v51 = vpack.c.bf16 %v4553_v22, %v4552_v46 }
0x1ede   : > { %5619 = vmatmul.mubr.msk.f32.gmra.mrb[88].mxu0 %vm843_vm3, %v4244_v23 }
0x1edf   : > { %5654 = vmatprep.mubr.msk.f32.mxu0 %vm6142_vm0, %v6143_v6  ;;  %5786 = vmatpush3.bf16.msra.mxu0 %v5785_v51 }
0x1ee0   : > { %5787 = vmatprep.subr.bf16.mxu0 %v6141_v3 }
0x1f59   : > { %v4543_v30 = vpop.xlane.xlu1 %4542 }
0x1f5a   : > { %v4544_v34 = vmul.f32 0.03125, %v4543_v30 }
0x1f5c   : > { %v4545_v36 = vadd.f32 1e-05, %v4544_v34 }
0x1f5e   : > { %6063 = vrsqrt.f32 %v4545_v36  ;;  %v4655_v36 = vld [vmem:[%s7335_s21] sm:$0xff] }
0x1f68   : > { %v6064_v37 = vpop.eup %6063 }
0x1f69   : > { %v4547_v43 = vmul.f32 %v6064_v37, %v4539_v8  ;;  %v4656_v37 = vld [vmem:[%s7335_s21 + $0x8] sm:$0xff] }
0x1f6b   : > { %v4548_v44 = vmul.f32 %v4547_v43, %v4533_v39  ;;  %v5788_v39 = vpack.c.bf16 %v4656_v37, %v4655_v36  ;;  %v4657_v43 = vld [vmem:[%s7335_s21 + $0x10] sm:$0xff] }
0x1f6d   : > { %v4549_v45 = vadd.f32 %v4548_v44, %v4534_v29  ;;  %v4658_v29 = vld [vmem:[%s7335_s21 + $0x18] sm:$0xff] }
0x1f6e   : > { %v5791_v44 = vpack.c.bf16 %v4658_v29, %v4657_v43 }
0x1f6f   : > { %5655 = vmatmul.mubr.msk.f32.vlgmr.msra.gmra.mrb[90].mxu0 %vm843_vm3, %v4549_v45  ;;  %v4554_v45 = vld [vmem:[%s7334_s20] sm:$0x1] }
0x1f70   : > { %5665 = vmatprep.mubr.msk.f32.mxu0 %vm6142_vm0, %v6143_v6  ;;  %5789 = vmatpush3.bf16.msra.mxu0 %v5788_v39 }
0x1f71   : > { %5790 = vmatprep.subr.bf16.mxu0 %v6141_v3 }
0x1f74   : > { %5792 = vmatpush3.bf16.msra.mxu0 %v5791_v44 }
0x1f79   : > { %v4338_v53 = vpop.f32.mrb[86].mxu0 }
0x1f7a   : > { %v4339_v38 = vadd.f32 %v7186_v1, %v4338_v53  ;;  %v5617_v31 = vpop.f32.mrb[87].mxu0 }
0x1f7c   : > { %v4351_v28 = vmul.f32 0.70710677, %v4339_v38  ;;  %v4348_v60 = vmul.f32 0.5, %v4339_v38 }
0x1f7e   : > { %v4354_v35 = vand.u32 2147483647, %v4351_v28  ;;  %vm4414_vm15 = vcmp.ge.f32.partialorder %v4351_v28, 0.0 }
0x1f80   : > { %v4357_v20 = vmul.f32 0.3275911, %v4354_v35  ;;  %v4396_v48 = vsub.f32 0.0, %v4354_v35 }
0x1f82   : > { %v4360_v27 = vadd.f32 1.0, %v4357_v20  ;;  %v4399_v56 = vmul.f32 %v4396_v48, %v4354_v35 }
0x1f84   : > { %6065 = vrcp.f32 %v4360_v27  ;;  %v4403_v17 = vmul.f32 1.442695, %v4399_v56 }
0x1f86   : > { %6067 = vpow2.f32 %v4403_v17 }
0x1f8e   : > { %v6066_v25 = vpop.eup %6065 }
0x1f8f   : > { %v4369_v13 = vmul.f32 1.0614054, %v6066_v25 }
0x1f90   : > { %v6068_v52 = vpop.eup %6067 }
0x1f91   : > { %v4372_v55 = vadd.f32 -1.4531521, %v4369_v13 }
0x1f93   : > { %v4375_v33 = vmul.f32 %v6066_v25, %v4372_v55 }
0x1f95   : > { %v4378_v54 = vadd.f32 1.4214138, %v4375_v33 }
0x1f97   : > { %v4381_v58 = vmul.f32 %v6066_v25, %v4378_v54 }
0x1f99   : > { %v4384_v47 = vadd.f32 -0.28449672, %v4381_v58 }
0x1f9b   : > { %v4387_v41 = vmul.f32 %v6066_v25, %v4384_v47 }
0x1f9d   : > { %v4390_v9 = vadd.f32 0.2548296, %v4387_v41 }
0x1f9f   : > { %v4393_v49 = vmul.f32 %v6066_v25, %v4390_v9 }
0x1fa1   : > { %v4408_v61 = vmul.f32 %v6068_v52, %v4393_v49 }
0x1fa3   : > { %v4411_v11 = vsub.f32 1.0, %v4408_v61 }
0x1fa5   : > { %v4417_v57 = vsub.f32 0.0, %v4411_v11 }
0x1fa7   : > { %v4420_v59 = vsel %vm4414_vm15, %v4411_v11, %v4417_v57 }
0x1fa8   : > { %v4423_v62 = vadd.f32 1.0, %v4420_v59 }
0x1faa   : > { %v4426_v63 = vmul.f32 %v4423_v62, %v4348_v60 }
0x1fac   : > { %5641 = vmatmul.mubr.msk.f32.gmra.mrb[92].mxu1 %vm2594_vm11, %v4426_v63 }
0x1fad   : > { %5643 = vmatprep.mubr.msk.f32.mxu1 %vm6142_vm0, %v6143_v6 }
0x1fb1   : > { %v4343_v0 = vpop.f32.mrb[88].mxu0 }
0x1fb2   : > { %v4344_v15 = vadd.f32 %v7186_v1, %v4343_v0  ;;  %v5620_v2 = vpop.f32.mrb[89].mxu0 }
0x1fb4   : > { %v4352_v4 = vmul.f32 0.70710677, %v4344_v15  ;;  %v4349_v51 = vmul.f32 0.5, %v4344_v15 }
0x1fb6   : > { %v4355_v5 = vand.u32 2147483647, %v4352_v4  ;;  %vm4415_vm0 = vcmp.ge.f32.partialorder %v4352_v4, 0.0  ;;  %v4659_v4 = vld [vmem:[%s7336_s22] sm:$0x1] }
0x1fb8   : > { %v4358_v50 = vmul.f32 0.3275911, %v4355_v5  ;;  %v4397_v7 = vsub.f32 0.0, %v4355_v5 }
0x1fba   : > { %v4361_v42 = vadd.f32 1.0, %v4358_v50  ;;  %v4400_v10 = vmul.f32 %v4397_v7, %v4355_v5 }
0x1fbc   : > { %6069 = vrcp.f32 %v4361_v42  ;;  %v4405_v14 = vmul.f32 1.442695, %v4400_v10 }
0x1fbe   : > { %6071 = vpow2.f32 %v4405_v14 }
0x1fc6   : > { %v6070_v8 = vpop.eup %6069 }
0x1fc7   : > { %v4370_v19 = vmul.f32 1.0614054, %v6070_v8 }
0x1fc8   : > { %v6072_v24 = vpop.eup %6071 }
0x1fc9   : > { %v4373_v12 = vadd.f32 -1.4531521, %v4370_v19 }
0x1fcb   : > { %v4376_v16 = vmul.f32 %v6070_v8, %v4373_v12 }
0x1fcd   : > { %v4379_v18 = vadd.f32 1.4214138, %v4376_v16 }
0x1fcf   : > { %v4382_v32 = vmul.f32 %v6070_v8, %v4379_v18 }
0x1fd1   : > { %v4385_v6 = vadd.f32 -0.28449672, %v4382_v32 }
0x1fd3   : > { %v4388_v21 = vmul.f32 %v6070_v8, %v4385_v6 }
0x1fd5   : > { %v4391_v23 = vadd.f32 0.2548296, %v4388_v21 }
0x1fd7   : > { %v4394_v1 = vmul.f32 %v6070_v8, %v4391_v23 }
0x1fd9   : > { %v4409_v26 = vmul.f32 %v6072_v24, %v4394_v1 }
0x1fdb   : > { %v4412_v40 = vsub.f32 1.0, %v4409_v26 }
0x1fdd   : > { %v4418_v46 = vsub.f32 0.0, %v4412_v40 }
0x1fdf   : > { %v4421_v22 = vsel %vm4415_vm0, %v4412_v40, %v4418_v46 }
0x1fe0   : > { %v4424_v30 = vadd.f32 1.0, %v4421_v22 }
0x1fe2   : > { %v4427_v34 = vmul.f32 %v4424_v30, %v4349_v51 }
0x1fe4   : > { %5644 = vmatmul.mubr.msk.f32.gmra.mrb[94].mxu1 %vm2594_vm11, %v4427_v34 }
0x2042   : > { %v4624_v53 = vpop.f32.mrb[90].mxu0 }
0x2043   : > { %v4625_v38 = vadd.f32 %v4624_v53, %v4554_v45  ;;  %v5656_v31 = vpop.f32.mrb[91].mxu0 }
0x2045   : > { %v4629_v28 = vmul.f32 0.70710677, %v4625_v38  ;;  %v4628_v59 = vmul.f32 0.5, %v4625_v38 }
0x2047   : > { %v4630_v35 = vand.u32 2147483647, %v4629_v28  ;;  %vm4650_vm1 = vcmp.ge.f32.partialorder %v4629_v28, 0.0 }
0x2049   : > { %v4631_v3 = vmul.f32 0.3275911, %v4630_v35  ;;  %v4644_v27 = vsub.f32 0.0, %v4630_v35 }
0x204b   : > { %v4632_v20 = vadd.f32 1.0, %v4631_v3  ;;  %v4645_v25 = vmul.f32 %v4644_v27, %v4630_v35 }
0x204d   : > { %6073 = vrcp.f32 %v4632_v20  ;;  %v4646_v55 = vmul.f32 1.442695, %v4645_v25 }
0x204f   : > { %6075 = vpow2.f32 %v4646_v55 }
0x2057   : > { %v6074_v48 = vpop.eup %6073 }
0x2058   : > { %v4635_v56 = vmul.f32 1.0614054, %v6074_v48 }
0x2059   : > { %v6076_v49 = vpop.eup %6075 }
0x205a   : > { %v4636_v13 = vadd.f32 -1.4531521, %v4635_v56 }
0x205c   : > { %v4637_v17 = vmul.f32 %v6074_v48, %v4636_v13 }
0x205e   : > { %v4638_v33 = vadd.f32 1.4214138, %v4637_v17 }
0x2060   : > { %v4639_v54 = vmul.f32 %v6074_v48, %v4638_v33 }
0x2062   : > { %v4640_v58 = vadd.f32 -0.28449672, %v4639_v54 }
0x2064   : > { %v4641_v47 = vmul.f32 %v6074_v48, %v4640_v58 }
0x2066   : > { %v4642_v41 = vadd.f32 0.2548296, %v4641_v47 }
0x2068   : > { %v4643_v9 = vmul.f32 %v6074_v48, %v4642_v41 }
0x206a   : > { %v4648_v52 = vmul.f32 %v6076_v49, %v4643_v9 }
0x206c   : > { %v4649_v61 = vsub.f32 1.0, %v4648_v52 }
0x206e   : > { %v4651_v11 = vsub.f32 0.0, %v4649_v61 }
0x2070   : > { %v4652_v57 = vsel %vm4650_vm1, %v4649_v61, %v4651_v11 }
0x2071   : > { %v4653_v60 = vadd.f32 1.0, %v4652_v57 }
0x2073   : > { %v4654_v62 = vmul.f32 %v4653_v60, %v4628_v59 }
0x2075   : > { %5666 = vmatmul.mubr.msk.f32.vlgmr.msra.gmra.mrb[92].mxu0 %vm843_vm3, %v4654_v62 }
0x207f   : > { %v4525_v63 = vpop.f32.mrb[92].mxu1 }
0x2080   : > { %v5642_v0 = vpop.f32.mrb[93].mxu1 }
0x20b7   : > { %v4529_v15 = vpop.f32.mrb[94].mxu1 }
0x20b8   : > { %v5645_v2 = vpop.f32.mrb[95].mxu1 }
0x2148   : > { %v4729_v5 = vpop.f32.mrb[92].mxu0 }
0x2149   : > { %v4730_v50 = vadd.f32 %v4729_v5, %v4659_v4  ;;  %v5667_v42 = vpop.f32.mrb[93].mxu0 }
0x214b   : > { %4734 = vst.msk [vmem:[%s702_s29] sm:$0x1] %vm4733_vm2, %v4730_v50 }
0x214c   : > { %6090 = shalt.err (!%p6087_p3)
}
0x214d   : > { %s6091_s0 = scalar_lea.hbm %s7272_s1, 16  ;;  %s6095_s3 = scalar_lea.hbm %s7337_s23, 32 }
0x214e   : > { %p6092_p4 = scmp.ne.s32.totalorder %s7272_s1, %s6091_s0  ;;  %p6096_p9 = scmp.lt.u32.totalorder %s7272_s1, %s7337_s23 }
0x214f   : > { %p6097_p10 = scmp.lt.u32.totalorder %s6095_s3, %s6091_s0  ;;  %p6099_p12 = scmp.lt.u32.totalorder %s6091_s0, %s7272_s1 }
0x2150   : > { %p6093_p7 = pnand %p6092_p4, %p6314_p5 }
0x2151   : > { %p6098_p11 = por %p6097_p10, %p6096_p9 }
0x2152   : > { %p6094_p8 = pneg %p6093_p7 }
0x2153   : > { %p6100_p13 = por %p6099_p12, %p6098_p11 }
0x2155   : > { %p6101_p0 = pnand %p6100_p13, %p6094_p8 }
0x2157   : > { %6104 = shalt.err (!%p6101_p0)
}
0x2158   : > { %5794 = dma.vmem_to_hbm [thread:$0]  (%p6314_p5), %s7274_s28, 16, %s7272_s1, %s4736_s2  }
0x2159 PF: > { %s7414_s9 = sld [smem:[#allocation5_spill]]  ;;  %p5800_p1 = scmp.ge.s32.totalorder %s6139_s25, 2 }
0x215b   : > { %p5797_p2 = pnand %p5800_p1, %p6318_p6 }
0x215f   : > { %s4760_s5 = sand.u32 1, %s7414_s9  }
0x2160   : > { %s4761_s4 = scalar_lea.sflag [#allocation3], %s4760_s5 }
0x2161   : > { %6122 = dma.done.wait (!%p5797_p2), %s4761_s4, 16  }
0x2162   : > { %6124 = vsyncadd (!%p5797_p2), %s4761_s4, 4294967280  ;;  %s7416_s25 = sld [smem:[#allocation7_spill]]  ;;  %s7417_s0 = sld [smem:[#allocation6_spill]] }
0x2163   : > { %s7418_s24 = sld [smem:[#allocation8_spill]]  ;;  %s7419_s4 = smov %s6131_s30 }
0x2168   : > { %p33_p3 = scmp.ge.s32.totalorder %s7416_s25, 4   ;;  %s7420_s30 = smov %s7417_s0 }
0x216a   :  { %35 = sbr.rel (!%p33_p3) target bundleno = 14 (0xe), region = 159 }
0x2171   :  { %4765 = vsyncpa [#allocation3], 1 }
0x2172   :  { %4767 = vsyncpa [#allocation3 + $0x1], 1 }

</bundles_post_ra>
